<compile_context>
chip_gen: v6e
topology: v6e:2x2x1
jax: 0.10.0
libtpu: 0.0.40
codegen_flags: <defaults>
</compile_context>

<pallas_src>
import functools

import jax
import jax.numpy as jnp
from jax import lax
from jax.experimental import pallas as pl
from jax.experimental.pallas import tpu as pltpu

LN_EPS = 1e-5
_LOG2 = 0.6931471805599453           # softplus(0) = log(2); SSP(x) = softplus(x) - log(2)
MATMUL_DTYPE = jnp.bfloat16          # MXU operand dtype (f32 accumulate). jnp.float32 = exact.


def _ssp(h):
    # shifted softplus: log(1 + exp(x)) - log(2), numerically stable
    return jnp.logaddexp(h, 0.0) - _LOG2


def edge_mlp_kernel(src_ref, dest_ref, edge_ref, w_ref, vec_ref, seg_ref, o_ref):
    """Lane-dense packed layout: activation tiles are [rows, L] with PACK edges per row.

    w_ref   : [5, L, 2L]  wide weights [blockdiag(W) | blockdiag(W)@seg] for
              (W1_src, W1_dest, W1_edge, W2, W3), MATMUL_DTYPE
    vec_ref : [12, L] f32: (b1, b1@seg, g1, be1, b2, b2@seg, g2, be2, b3, b3@seg, g3, be3)
    seg_ref : [L, L]  MATMUL_DTYPE segmented-mean matrix kron(I_PACK, ones(H,H)/H)
    """
    L = seg_ref.shape[-1]
    seg = seg_ref[...]
    vec = vec_ref[...]

    def mm_wide(a, widx):
        # [rows, L] @ [L, 2L] -> [rows, 2L]; cols [0:L) are x@W, cols [L:2L) are x@(W@seg).
        return jnp.dot(a.astype(MATMUL_DTYPE), w_ref[widx],
                       preferred_element_type=jnp.float32)

    def ln_ssp(hw, v0):
        b, bmu = vec[v0:v0 + 1], vec[v0 + 1:v0 + 2]
        gamma, beta = vec[v0 + 2:v0 + 3], vec[v0 + 3:v0 + 4]
        h = hw[:, :L] + b              # pre-LayerNorm activations
        mu = hw[:, L:] + bmu           # per-edge mean, fused into the weight matmul
        c = h - mu
        var = jnp.dot((c * c).astype(MATMUL_DTYPE), seg,
                      preferred_element_type=jnp.float32)
        y = c * lax.rsqrt(var + LN_EPS) * gamma + beta
        return _ssp(y)

    # Layer 1: fused concat -> src@W1a + dest@W1b + edge@W1c (f32 accumulation)
    hw = (mm_wide(src_ref[...], 0) + mm_wide(dest_ref[...], 1)
          + mm_wide(edge_ref[...], 2))
    h = ln_ssp(hw, 0)
    h = ln_ssp(mm_wide(h, 3), 4)       # Layer 2
    h = ln_ssp(mm_wide(h, 4), 8)       # Layer 3
    o_ref[...] = h.astype(o_ref.dtype)


@functools.partial(jax.jit, static_argnames=("tile_e",))
def edge_model_forward(src, dest, edge_attr, params, *, tile_e=8192):
    """src, dest, edge_attr: [E, H] float32 -> [E, H] float32."""
    E, H = src.shape
    if H <= 128:
        assert 128 % H == 0, "hidden_dim must divide 128 (or be a multiple of 128)"
        pack = 128 // H
    else:
        assert H % 128 == 0, "hidden_dim must divide 128 or be a multiple of 128"
        pack = 1
    lanes = pack * H

    # Pack PACK edges per 128-lane row.  Pad only when E is not a PACK multiple
    # (<= PACK-1 edges); otherwise the reshape is a free row-major view: zero extra copies.
    e_pad = -(-E // pack) * pack
    pad = e_pad - E
    rows_total = e_pad // pack

    def prep(a):
        if pad:
            a = jnp.pad(a, ((0, pad), (0, 0)))
        return a.reshape(rows_total, lanes)

    src_p, dest_p, edge_p = prep(src), prep(dest), prep(edge_attr)

    # Tile sizing: large tiles to amortize per-step overhead, but keep >= 2 grid steps when
    # there is enough work so "parallel" can split across both v7x TensorCores.
    if rows_total <= 8:
        rows_per_tile = rows_total                       # single tiny tile (full dim)
    else:
        target = max(8, (tile_e // pack) // 8 * 8)
        half = -(-rows_total // 2)                       # ceil(rows_total / 2)
        half = -(-half // 8) * 8                         # rounded up to a sublane multiple
        rows_per_tile = max(8, min(target, half))
    grid = (pl.cdiv(rows_total, rows_per_tile),)

    (w1, b1, g1, be1, w2, b2, g2, be2, w3, b3, g3, be3) = params
    eye = jnp.eye(pack, dtype=jnp.float32)
    seg = jnp.kron(eye, jnp.full((H, H), 1.0 / H, jnp.float32))      # [lanes, lanes]

    def wide(w):   # [H, H] -> [lanes, 2*lanes] = [blockdiag(W) | blockdiag(W) @ seg]
        bd = jnp.kron(eye, w.astype(jnp.float32))
        return jnp.concatenate([bd, bd @ seg], axis=1)

    w_packed = jnp.stack([
        wide(w1[:H]), wide(w1[H:2 * H]), wide(w1[2 * H:]), wide(w2), wide(w3),
    ]).astype(MATMUL_DTYPE)                                          # [5, lanes, 2*lanes]

    def tile_vec(v):   # [1, H] -> [lanes], repeated per packed edge slot
        return jnp.tile(v.reshape(1, H), (1, pack)).reshape(lanes)

    def pack_layer(b, g, be):
        bt = tile_vec(b)
        return [bt, bt @ seg, tile_vec(g), tile_vec(be)]

    vec_packed = jnp.stack(
        pack_layer(b1, g1, be1) + pack_layer(b2, g2, be2) + pack_layer(b3, g3, be3)
    ).astype(jnp.float32)                                            # [12, lanes]

    act_spec = pl.BlockSpec((rows_per_tile, lanes), lambda i: (i, 0))

    out = pl.pallas_call(
        edge_mlp_kernel,
        out_shape=jax.ShapeDtypeStruct((rows_total, lanes), src.dtype),
        grid_spec=pltpu.PrefetchScalarGridSpec(
            num_scalar_prefetch=0,
            grid=grid,
            in_specs=[
                act_spec, act_spec, act_spec,                               # src/dest/edge tiles
                pl.BlockSpec((5, lanes, 2 * lanes), lambda i: (0, 0, 0)),   # all weights, 1 DMA
                pl.BlockSpec((12, lanes), lambda i: (0, 0)),                # bias/gamma/beta
                pl.BlockSpec((lanes, lanes), lambda i: (0, 0)),             # seg-mean matrix
            ],
            out_specs=act_spec,
        ),
        compiler_params=pltpu.CompilerParams(dimension_semantics=("parallel",)),
    )(src_p, dest_p, edge_p, w_packed, vec_packed, seg.astype(MATMUL_DTYPE))

    out = out.reshape(e_pad, H)
    return out[:E] if pad else out


def init_edge_model_params(key, hidden_dim):
    """Deterministic synthetic init (Xavier-uniform weights, zero bias,
    LayerNorm gamma=1, beta=0) matching the PyTorch module's shapes."""
    # TODO(synk): the PyTorch `init_weights` helper is not defined in the spec; Xavier-uniform
    # with zero bias is used as a stand-in (forward-pass semantics are unaffected).
    H = hidden_dim
    ks = jax.random.split(key, 3)

    def xavier(k, fan_in, fan_out):
        limit = jnp.sqrt(6.0 / (fan_in + fan_out))
        return jax.random.uniform(k, (fan_in, fan_out), jnp.float32, -limit, limit)

    w1 = xavier(ks[0], 3 * H, H)
    w2 = xavier(ks[1], H, H)
    w3 = xavier(ks[2], H, H)
    zeros = jnp.zeros((1, H), jnp.float32)
    ones = jnp.ones((1, H), jnp.float32)
    return (
        w1, zeros, ones, zeros,   # Linear1 (W, b), LayerNorm1 (gamma, beta)
        w2, zeros, ones, zeros,   # Linear2, LayerNorm2
        w3, zeros, ones, zeros,   # Linear3, LayerNorm3
    )


def _layernorm(h, gamma, beta):
    mu = jnp.mean(h, axis=-1, keepdims=True)
    var = jnp.mean(jnp.square(h - mu), axis=-1, keepdims=True)
    return (h - mu) * lax.rsqrt(var + LN_EPS) * gamma + beta


def edge_model_reference(src, dest, edge_attr, params):
    """Exact f32 forward pass (mirrors the PyTorch module, no bf16 anywhere)."""
    (w1, b1, g1, be1, w2, b2, g2, be2, w3, b3, g3, be3) = params
    x = jnp.concatenate([src, dest, edge_attr], axis=1)
    h = _ssp(_layernorm(x @ w1 + b1, g1, be1))
    h = _ssp(_layernorm(h @ w2 + b2, g2, be2))
    h = _ssp(_layernorm(h @ w3 + b3, g3, be3))
    return h


if __name__ == "__main__":
    hidden_dim = 32
    num_edges = 1000   # NOT a tile multiple -> exercises the ragged-last-block path (2 grid steps)

    key = jax.random.PRNGKey(0)
    k_src, k_dst, k_edge, k_param = jax.random.split(key, 4)

    src = jax.random.normal(k_src, (num_edges, hidden_dim), jnp.float32)
    dest = jax.random.normal(k_dst, (num_edges, hidden_dim), jnp.float32)
    edge_attr = jax.random.normal(k_edge, (num_edges, hidden_dim), jnp.float32)

    params = init_edge_model_params(k_param, hidden_dim)

    out = edge_model_forward(src, dest, edge_attr, params)
    out = jax.block_until_ready(out)

    ref = edge_model_reference(src, dest, edge_attr, params)
    assert out.shape == (num_edges, hidden_dim)
    # bf16 MXU operands (f32 accumulation) vs the exact f32 reference; 5e-2 abs/rel covers the
    # documented bf16 policy over three LayerNorm'd layers while catching structural bugs.
    # Set MATMUL_DTYPE = jnp.float32 above for a bit-faithful f32 check.
    assert jnp.allclose(out, ref, atol=5e-2, rtol=5e-2), "mismatch vs f32 reference"

    print("KERNEL_OK")
</pallas_src>

<mosaic_0001>
module attributes {stable_mosaic.version = 11 : i64} {
  func.func @edge_mlp_kernel(%arg0: i32, %arg1: memref<128x128xf32, #tpu.memory_space<vmem>>, %arg2: memref<128x128xf32, #tpu.memory_space<vmem>>, %arg3: memref<128x128xf32, #tpu.memory_space<vmem>>, %arg4: memref<5x128x256xbf16, #tpu.memory_space<vmem>>, %arg5: memref<12x128xf32, #tpu.memory_space<vmem>>, %arg6: memref<128x128xbf16, #tpu.memory_space<vmem>>, %arg7: memref<128x128xf32, #tpu.memory_space<vmem>>) attributes {dimension_semantics = [#tpu.dimension_semantics<parallel>], iteration_bounds = array<i64: 2>, scalar_prefetch = 0 : i64, scratch_operands = 0 : i64, tpu.core_type = #tpu.core_type<tc>, window_params = [{transform_indices = @transform_0, window_bounds = array<i64: 128, 128>}, {transform_indices = @transform_1, window_bounds = array<i64: 128, 128>}, {transform_indices = @transform_2, window_bounds = array<i64: 128, 128>}, {pipeline_mode = #tpu.pipeline_mode<synchronous>, transform_indices = @transform_3, window_bounds = array<i64: 5, 128, 256>}, {pipeline_mode = #tpu.pipeline_mode<synchronous>, transform_indices = @transform_4, window_bounds = array<i64: 12, 128>}, {pipeline_mode = #tpu.pipeline_mode<synchronous>, transform_indices = @transform_5, window_bounds = array<i64: 128, 128>}, {transform_indices = @transform_6, window_bounds = array<i64: 128, 128>}]} {
    %c0 = arith.constant 0 : index
    %c0_0 = arith.constant 0 : index
    %0 = vector.load %arg6[%c0, %c0_0] : memref<128x128xbf16, #tpu.memory_space<vmem>>, vector<128x128xbf16>
    %c0_1 = arith.constant 0 : index
    %c0_2 = arith.constant 0 : index
    %1 = vector.load %arg5[%c0_1, %c0_2] : memref<12x128xf32, #tpu.memory_space<vmem>>, vector<12x128xf32>
    %c0_3 = arith.constant 0 : index
    %c0_4 = arith.constant 0 : index
    %2 = vector.load %arg1[%c0_3, %c0_4] : memref<128x128xf32, #tpu.memory_space<vmem>>, vector<128x128xf32>
    %3 = arith.truncf %2 : vector<128x128xf32> to vector<128x128xbf16>
    %c0_5 = arith.constant 0 : index
    %c0_6 = arith.constant 0 : index
    %c0_7 = arith.constant 0 : index
    %4 = vector.load %arg4[%c0_5, %c0_6, %c0_7] : memref<5x128x256xbf16, #tpu.memory_space<vmem>>, vector<1x128x256xbf16>
    %5 = vector.shape_cast %4 : vector<1x128x256xbf16> to vector<128x256xbf16>
    %cst = arith.constant dense<0.000000e+00> : vector<128x256xf32>
    %6 = tpu.matmul %3, %5, %cst {dimension_numbers = #tpu.dot_dimension_numbers<[1], [0], [0], [1], [0, 0, 1, 1], [], []>} : vector<128x128xbf16>, vector<128x256xbf16>, vector<128x256xf32> -> vector<128x256xf32>
    %c0_8 = arith.constant 0 : index
    %c0_9 = arith.constant 0 : index
    %7 = vector.load %arg2[%c0_8, %c0_9] : memref<128x128xf32, #tpu.memory_space<vmem>>, vector<128x128xf32>
    %8 = arith.truncf %7 : vector<128x128xf32> to vector<128x128xbf16>
    %c1 = arith.constant 1 : index
    %c0_10 = arith.constant 0 : index
    %c0_11 = arith.constant 0 : index
    %9 = vector.load %arg4[%c1, %c0_10, %c0_11] : memref<5x128x256xbf16, #tpu.memory_space<vmem>>, vector<1x128x256xbf16>
    %10 = vector.shape_cast %9 : vector<1x128x256xbf16> to vector<128x256xbf16>
    %cst_12 = arith.constant dense<0.000000e+00> : vector<128x256xf32>
    %11 = tpu.matmul %8, %10, %cst_12 {dimension_numbers = #tpu.dot_dimension_numbers<[1], [0], [0], [1], [0, 0, 1, 1], [], []>} : vector<128x128xbf16>, vector<128x256xbf16>, vector<128x256xf32> -> vector<128x256xf32>
    %12 = arith.addf %6, %11 : vector<128x256xf32>
    %c0_13 = arith.constant 0 : index
    %c0_14 = arith.constant 0 : index
    %13 = vector.load %arg3[%c0_13, %c0_14] : memref<128x128xf32, #tpu.memory_space<vmem>>, vector<128x128xf32>
    %14 = arith.truncf %13 : vector<128x128xf32> to vector<128x128xbf16>
    %c2 = arith.constant 2 : index
    %c0_15 = arith.constant 0 : index
    %c0_16 = arith.constant 0 : index
    %15 = vector.load %arg4[%c2, %c0_15, %c0_16] : memref<5x128x256xbf16, #tpu.memory_space<vmem>>, vector<1x128x256xbf16>
    %16 = vector.shape_cast %15 : vector<1x128x256xbf16> to vector<128x256xbf16>
    %cst_17 = arith.constant dense<0.000000e+00> : vector<128x256xf32>
    %17 = tpu.matmul %14, %16, %cst_17 {dimension_numbers = #tpu.dot_dimension_numbers<[1], [0], [0], [1], [0, 0, 1, 1], [], []>} : vector<128x128xbf16>, vector<128x256xbf16>, vector<128x256xf32> -> vector<128x256xf32>
    %18 = arith.addf %12, %17 : vector<128x256xf32>
    %19 = vector.extract_strided_slice %1 {offsets = [0, 0], sizes = [1, 128], strides = [1, 1]} : vector<12x128xf32> to vector<1x128xf32>
    %20 = vector.extract_strided_slice %1 {offsets = [1, 0], sizes = [1, 128], strides = [1, 1]} : vector<12x128xf32> to vector<1x128xf32>
    %21 = vector.extract_strided_slice %1 {offsets = [2, 0], sizes = [1, 128], strides = [1, 1]} : vector<12x128xf32> to vector<1x128xf32>
    %22 = vector.extract_strided_slice %1 {offsets = [3, 0], sizes = [1, 128], strides = [1, 1]} : vector<12x128xf32> to vector<1x128xf32>
    %23 = vector.extract_strided_slice %18 {offsets = [0, 0], sizes = [128, 128], strides = [1, 1]} : vector<128x256xf32> to vector<128x128xf32>
    %24 = vector.broadcast %19 : vector<1x128xf32> to vector<128x128xf32>
    %25 = arith.addf %23, %24 : vector<128x128xf32>
    %26 = vector.extract_strided_slice %18 {offsets = [0, 128], sizes = [128, 128], strides = [1, 1]} : vector<128x256xf32> to vector<128x128xf32>
    %27 = vector.broadcast %20 : vector<1x128xf32> to vector<128x128xf32>
    %28 = arith.addf %26, %27 : vector<128x128xf32>
    %29 = arith.subf %25, %28 : vector<128x128xf32>
    %30 = arith.mulf %29, %29 : vector<128x128xf32>
    %31 = arith.truncf %30 : vector<128x128xf32> to vector<128x128xbf16>
    %cst_18 = arith.constant dense<0.000000e+00> : vector<128x128xf32>
    %32 = tpu.matmul %31, %0, %cst_18 {dimension_numbers = #tpu.dot_dimension_numbers<[1], [0], [0], [1], [0, 0, 1, 1], [], []>} : vector<128x128xbf16>, vector<128x128xbf16>, vector<128x128xf32> -> vector<128x128xf32>
    %cst_19 = arith.constant 9.99999974E-6 : f32
    %33 = vector.broadcast %cst_19 : f32 to vector<128x128xf32>
    %34 = arith.addf %32, %33 : vector<128x128xf32>
    %35 = math.rsqrt %34 : vector<128x128xf32>
    %36 = arith.mulf %29, %35 : vector<128x128xf32>
    %37 = vector.broadcast %21 : vector<1x128xf32> to vector<128x128xf32>
    %38 = arith.mulf %36, %37 : vector<128x128xf32>
    %39 = vector.broadcast %22 : vector<1x128xf32> to vector<128x128xf32>
    %40 = arith.addf %38, %39 : vector<128x128xf32>
    %cst_20 = arith.constant 0.000000e+00 : f32
    %41 = vector.broadcast %cst_20 : f32 to vector<128x128xf32>
    %42 = arith.maximumf %40, %41 : vector<128x128xf32>
    %43 = vector.broadcast %cst_20 : f32 to vector<128x128xf32>
    %44 = arith.subf %40, %43 : vector<128x128xf32>
    %45 = arith.cmpf one, %44, %44 : vector<128x128xf32>
    %46 = vector.broadcast %cst_20 : f32 to vector<128x128xf32>
    %47 = arith.addf %40, %46 : vector<128x128xf32>
    %48 = math.absf %44 : vector<128x128xf32>
    %cst_21 = arith.constant 0.000000e+00 : f32
    %49 = vector.broadcast %cst_21 : f32 to vector<128x128xf32>
    %50 = arith.subf %49, %48 : vector<128x128xf32>
    %51 = math.exp %50 : vector<128x128xf32>
    %52 = math.log1p %51 : vector<128x128xf32>
    %53 = arith.addf %42, %52 : vector<128x128xf32>
    %54 = arith.select %45, %47, %53 : vector<128x128xi1>, vector<128x128xf32>
    %cst_22 = arith.constant 0.693147182 : f32
    %55 = vector.broadcast %cst_22 : f32 to vector<128x128xf32>
    %56 = arith.subf %54, %55 : vector<128x128xf32>
    %57 = arith.truncf %56 : vector<128x128xf32> to vector<128x128xbf16>
    %c3 = arith.constant 3 : index
    %c0_23 = arith.constant 0 : index
    %c0_24 = arith.constant 0 : index
    %58 = vector.load %arg4[%c3, %c0_23, %c0_24] : memref<5x128x256xbf16, #tpu.memory_space<vmem>>, vector<1x128x256xbf16>
    %59 = vector.shape_cast %58 : vector<1x128x256xbf16> to vector<128x256xbf16>
    %cst_25 = arith.constant dense<0.000000e+00> : vector<128x256xf32>
    %60 = tpu.matmul %57, %59, %cst_25 {dimension_numbers = #tpu.dot_dimension_numbers<[1], [0], [0], [1], [0, 0, 1, 1], [], []>} : vector<128x128xbf16>, vector<128x256xbf16>, vector<128x256xf32> -> vector<128x256xf32>
    %61 = vector.extract_strided_slice %1 {offsets = [4, 0], sizes = [1, 128], strides = [1, 1]} : vector<12x128xf32> to vector<1x128xf32>
    %62 = vector.extract_strided_slice %1 {offsets = [5, 0], sizes = [1, 128], strides = [1, 1]} : vector<12x128xf32> to vector<1x128xf32>
    %63 = vector.extract_strided_slice %1 {offsets = [6, 0], sizes = [1, 128], strides = [1, 1]} : vector<12x128xf32> to vector<1x128xf32>
    %64 = vector.extract_strided_slice %1 {offsets = [7, 0], sizes = [1, 128], strides = [1, 1]} : vector<12x128xf32> to vector<1x128xf32>
    %65 = vector.extract_strided_slice %60 {offsets = [0, 0], sizes = [128, 128], strides = [1, 1]} : vector<128x256xf32> to vector<128x128xf32>
    %66 = vector.broadcast %61 : vector<1x128xf32> to vector<128x128xf32>
    %67 = arith.addf %65, %66 : vector<128x128xf32>
    %68 = vector.extract_strided_slice %60 {offsets = [0, 128], sizes = [128, 128], strides = [1, 1]} : vector<128x256xf32> to vector<128x128xf32>
    %69 = vector.broadcast %62 : vector<1x128xf32> to vector<128x128xf32>
    %70 = arith.addf %68, %69 : vector<128x128xf32>
    %71 = arith.subf %67, %70 : vector<128x128xf32>
    %72 = arith.mulf %71, %71 : vector<128x128xf32>
    %73 = arith.truncf %72 : vector<128x128xf32> to vector<128x128xbf16>
    %cst_26 = arith.constant dense<0.000000e+00> : vector<128x128xf32>
    %74 = tpu.matmul %73, %0, %cst_26 {dimension_numbers = #tpu.dot_dimension_numbers<[1], [0], [0], [1], [0, 0, 1, 1], [], []>} : vector<128x128xbf16>, vector<128x128xbf16>, vector<128x128xf32> -> vector<128x128xf32>
    %cst_27 = arith.constant 9.99999974E-6 : f32
    %75 = vector.broadcast %cst_27 : f32 to vector<128x128xf32>
    %76 = arith.addf %74, %75 : vector<128x128xf32>
    %77 = math.rsqrt %76 : vector<128x128xf32>
    %78 = arith.mulf %71, %77 : vector<128x128xf32>
    %79 = vector.broadcast %63 : vector<1x128xf32> to vector<128x128xf32>
    %80 = arith.mulf %78, %79 : vector<128x128xf32>
    %81 = vector.broadcast %64 : vector<1x128xf32> to vector<128x128xf32>
    %82 = arith.addf %80, %81 : vector<128x128xf32>
    %cst_28 = arith.constant 0.000000e+00 : f32
    %83 = vector.broadcast %cst_28 : f32 to vector<128x128xf32>
    %84 = arith.maximumf %82, %83 : vector<128x128xf32>
    %85 = vector.broadcast %cst_28 : f32 to vector<128x128xf32>
    %86 = arith.subf %82, %85 : vector<128x128xf32>
    %87 = arith.cmpf one, %86, %86 : vector<128x128xf32>
    %88 = vector.broadcast %cst_28 : f32 to vector<128x128xf32>
    %89 = arith.addf %82, %88 : vector<128x128xf32>
    %90 = math.absf %86 : vector<128x128xf32>
    %cst_29 = arith.constant 0.000000e+00 : f32
    %91 = vector.broadcast %cst_29 : f32 to vector<128x128xf32>
    %92 = arith.subf %91, %90 : vector<128x128xf32>
    %93 = math.exp %92 : vector<128x128xf32>
    %94 = math.log1p %93 : vector<128x128xf32>
    %95 = arith.addf %84, %94 : vector<128x128xf32>
    %96 = arith.select %87, %89, %95 : vector<128x128xi1>, vector<128x128xf32>
    %cst_30 = arith.constant 0.693147182 : f32
    %97 = vector.broadcast %cst_30 : f32 to vector<128x128xf32>
    %98 = arith.subf %96, %97 : vector<128x128xf32>
    %99 = arith.truncf %98 : vector<128x128xf32> to vector<128x128xbf16>
    %c4 = arith.constant 4 : index
    %c0_31 = arith.constant 0 : index
    %c0_32 = arith.constant 0 : index
    %100 = vector.load %arg4[%c4, %c0_31, %c0_32] : memref<5x128x256xbf16, #tpu.memory_space<vmem>>, vector<1x128x256xbf16>
    %101 = vector.shape_cast %100 : vector<1x128x256xbf16> to vector<128x256xbf16>
    %cst_33 = arith.constant dense<0.000000e+00> : vector<128x256xf32>
    %102 = tpu.matmul %99, %101, %cst_33 {dimension_numbers = #tpu.dot_dimension_numbers<[1], [0], [0], [1], [0, 0, 1, 1], [], []>} : vector<128x128xbf16>, vector<128x256xbf16>, vector<128x256xf32> -> vector<128x256xf32>
    %103 = vector.extract_strided_slice %1 {offsets = [8, 0], sizes = [1, 128], strides = [1, 1]} : vector<12x128xf32> to vector<1x128xf32>
    %104 = vector.extract_strided_slice %1 {offsets = [9, 0], sizes = [1, 128], strides = [1, 1]} : vector<12x128xf32> to vector<1x128xf32>
    %105 = vector.extract_strided_slice %1 {offsets = [10, 0], sizes = [1, 128], strides = [1, 1]} : vector<12x128xf32> to vector<1x128xf32>
    %106 = vector.extract_strided_slice %1 {offsets = [11, 0], sizes = [1, 128], strides = [1, 1]} : vector<12x128xf32> to vector<1x128xf32>
    %107 = vector.extract_strided_slice %102 {offsets = [0, 0], sizes = [128, 128], strides = [1, 1]} : vector<128x256xf32> to vector<128x128xf32>
    %108 = vector.broadcast %103 : vector<1x128xf32> to vector<128x128xf32>
    %109 = arith.addf %107, %108 : vector<128x128xf32>
    %110 = vector.extract_strided_slice %102 {offsets = [0, 128], sizes = [128, 128], strides = [1, 1]} : vector<128x256xf32> to vector<128x128xf32>
    %111 = vector.broadcast %104 : vector<1x128xf32> to vector<128x128xf32>
    %112 = arith.addf %110, %111 : vector<128x128xf32>
    %113 = arith.subf %109, %112 : vector<128x128xf32>
    %114 = arith.mulf %113, %113 : vector<128x128xf32>
    %115 = arith.truncf %114 : vector<128x128xf32> to vector<128x128xbf16>
    %cst_34 = arith.constant dense<0.000000e+00> : vector<128x128xf32>
    %116 = tpu.matmul %115, %0, %cst_34 {dimension_numbers = #tpu.dot_dimension_numbers<[1], [0], [0], [1], [0, 0, 1, 1], [], []>} : vector<128x128xbf16>, vector<128x128xbf16>, vector<128x128xf32> -> vector<128x128xf32>
    %cst_35 = arith.constant 9.99999974E-6 : f32
    %117 = vector.broadcast %cst_35 : f32 to vector<128x128xf32>
    %118 = arith.addf %116, %117 : vector<128x128xf32>
    %119 = math.rsqrt %118 : vector<128x128xf32>
    %120 = arith.mulf %113, %119 : vector<128x128xf32>
    %121 = vector.broadcast %105 : vector<1x128xf32> to vector<128x128xf32>
    %122 = arith.mulf %120, %121 : vector<128x128xf32>
    %123 = vector.broadcast %106 : vector<1x128xf32> to vector<128x128xf32>
    %124 = arith.addf %122, %123 : vector<128x128xf32>
    %cst_36 = arith.constant 0.000000e+00 : f32
    %125 = vector.broadcast %cst_36 : f32 to vector<128x128xf32>
    %126 = arith.maximumf %124, %125 : vector<128x128xf32>
    %127 = vector.broadcast %cst_36 : f32 to vector<128x128xf32>
    %128 = arith.subf %124, %127 : vector<128x128xf32>
    %129 = arith.cmpf one, %128, %128 : vector<128x128xf32>
    %130 = vector.broadcast %cst_36 : f32 to vector<128x128xf32>
    %131 = arith.addf %124, %130 : vector<128x128xf32>
    %132 = math.absf %128 : vector<128x128xf32>
    %cst_37 = arith.constant 0.000000e+00 : f32
    %133 = vector.broadcast %cst_37 : f32 to vector<128x128xf32>
    %134 = arith.subf %133, %132 : vector<128x128xf32>
    %135 = math.exp %134 : vector<128x128xf32>
    %136 = math.log1p %135 : vector<128x128xf32>
    %137 = arith.addf %126, %136 : vector<128x128xf32>
    %138 = arith.select %129, %131, %137 : vector<128x128xi1>, vector<128x128xf32>
    %cst_38 = arith.constant 0.693147182 : f32
    %139 = vector.broadcast %cst_38 : f32 to vector<128x128xf32>
    %140 = arith.subf %138, %139 : vector<128x128xf32>
    %c0_39 = arith.constant 0 : index
    %c0_40 = arith.constant 0 : index
    %141 = vector.load %arg7[%c0_39, %c0_40] : memref<128x128xf32, #tpu.memory_space<vmem>>, vector<128x128xf32>
    tpu.vector_store %arg7[%c0_39, %c0_40], %140 {strides = array<i32>} : memref<128x128xf32, #tpu.memory_space<vmem>>, vector<128x128xf32>,
    return
  }
  func.func @transform_0(%arg0: i32) -> (i32, i32) {
    %c0_i32 = arith.constant 0 : i32
    %c0_i32_0 = arith.constant 0 : i32
    return %arg0, %c0_i32 : i32, i32
  }
  func.func @transform_1(%arg0: i32) -> (i32, i32) {
    %c0_i32 = arith.constant 0 : i32
    %c0_i32_0 = arith.constant 0 : i32
    return %arg0, %c0_i32 : i32, i32
  }
  func.func @transform_2(%arg0: i32) -> (i32, i32) {
    %c0_i32 = arith.constant 0 : i32
    %c0_i32_0 = arith.constant 0 : i32
    return %arg0, %c0_i32 : i32, i32
  }
  func.func @transform_3(%arg0: i32) -> (i32, i32, i32) {
    %c0_i32 = arith.constant 0 : i32
    %c0_i32_0 = arith.constant 0 : i32
    %c0_i32_1 = arith.constant 0 : i32
    %c0_i32_2 = arith.constant 0 : i32
    return %c0_i32, %c0_i32_0, %c0_i32_1 : i32, i32, i32
  }
  func.func @transform_4(%arg0: i32) -> (i32, i32) {
    %c0_i32 = arith.constant 0 : i32
    %c0_i32_0 = arith.constant 0 : i32
    %c0_i32_1 = arith.constant 0 : i32
    return %c0_i32, %c0_i32_0 : i32, i32
  }
  func.func @transform_5(%arg0: i32) -> (i32, i32) {
    %c0_i32 = arith.constant 0 : i32
    %c0_i32_0 = arith.constant 0 : i32
    %c0_i32_1 = arith.constant 0 : i32
    return %c0_i32, %c0_i32_0 : i32, i32
  }
  func.func @transform_6(%arg0: i32) -> (i32, i32) {
    %c0_i32 = arith.constant 0 : i32
    %c0_i32_0 = arith.constant 0 : i32
    return %arg0, %c0_i32 : i32, i32
  }
}

</mosaic_0001>

<bundles_post_ra>
// kernel: tile.52
= control target key start
LH: loop header
LB: loop body
LE: loop exit
PB: predicated region body
PF: predicated region fallthrough
CT: control target
= control target key end

     0   :  { %vm8_vm0 = vcmask 261120   ;;  %s40_s8 = smov 32   ;;  %s41_s9 = smov 64   ;;  %vm14_vm1 = vcmask 1048320   ;;  %vm20_vm2 = vcmask 785920   ;;  %vm26_vm3 = vcmask 523520   ;;  %s58_s0 = inlined_call_operand.vmem [shape: f32[4,32], index: 0, kind: input, shape index: {}]   ;;  %s59_s1 = inlined_call_operand.vmem [shape: f32[128], index: 1, kind: output, shape index: {}]  }
   0x1   :  { %v5_v0 = vld [vmem:[%s58_s0] sm:$0xf]  ;;  %s39_s0 = smov 96  }
   0x2   :  { %6 = vst [vmem:[#allocation1] sm:$0xf] %v5_v0 }
   0x9   :  { %v11_v1 = vld [vmem:[#allocation1 + $0x3] sm:$0x1]   ;;  %v23_v2 = vld [vmem:[#allocation1 + $0x1] sm:$0x1]   ;;  %v7_v3 = vld [vmem:[#allocation1] sm:$0x1]  }
   0xa   :  { %12 = vrot.lane.b32.xlu0 %v11_v1, %s39_s0  ;;  %24 = vrot.lane.b32.xlu1 %v23_v2, %s40_s8  ;;  %v17_v4 = vld [vmem:[#allocation1 + $0x2] sm:$0x1]   ;;  %9 = vst.msk [vmem:[#allocation0] sm:$0x1] %vm8_vm0, %v7_v3  }
   0xe   :  { %18 = vrot.lane.b32.xlu0 %v17_v4, %s41_s9 }
  0x7c   :  { %v13_v5 = vpop.permute.xlu0 %12   ;;  %v25_v6 = vpop.permute.xlu1 %24  }
  0x7d   :  { %15 = vst.msk [vmem:[#allocation0] sm:$0x1] %vm14_vm1, %v13_v5  }
  0x80   :  { %v19_v7 = vpop.permute.xlu0 %18  }
  0x81   :  { %21 = vst.msk [vmem:[#allocation0] sm:$0x1] %vm20_vm2, %v19_v7  }
  0x82   :  { %27 = vst.msk [vmem:[#allocation0] sm:$0x1] %vm26_vm3, %v25_v6  }
  0x89   :  { %v32_v8 = vld [vmem:[#allocation0] sm:$0x1] }
  0x8a   :  { %35 = vst [vmem:[%s59_s1] sm:$0x1] %v32_v8 }

// kernel: edge_model_forward.1
= control target key start
LH: loop header
LB: loop body
LE: loop exit
PB: predicated region body
PF: predicated region fallthrough
CT: control target
= control target key end

     0   :  { %s4127_s21 = smov 0   ;;  %s5933_s0 = inlined_call_operand.vmem [shape: f32[250,128], index: 0, kind: input, shape index: {}]   ;;  %s5934_s1 = inlined_call_operand.vmem [shape: f32[250,128], index: 1, kind: input, shape index: {}]   ;;  %s5935_s2 = inlined_call_operand.vmem [shape: f32[250,128], index: 2, kind: input, shape index: {}]   ;;  %s5936_s3 = inlined_call_operand.vmem [shape: bf16[5,128,256], index: 3, kind: input, shape index: {}]   ;;  %s5937_s4 = inlined_call_operand.vmem [shape: f32[12,128], index: 4, kind: input, shape index: {}]   ;;  %s5938_s5 = inlined_call_operand.vmem [shape: bf16[128,128], index: 5, kind: input, shape index: {}]   ;;  %s5939_s6 = inlined_call_operand.vmem [shape: f32[250,128], index: 6, kind: output, shape index: {}]  }
   0x1 LB: > { %s3290_s22 = sadd.s32 4294967295, %s4089_s21   ;;  %p3294_p0 = scmp.ge.s32.totalorder %s4089_s21, 1  ;;  %s4089_s21 = sphi %s4127_s21, %s16_s21  }
   0x2   : > { %p235_p1 = scmp.lt.s32.totalorder %s4089_s21, 3 }
   0x4   : > { %p236_p2 = pnand %p3294_p0, %p235_p1 }
   0x6   : > { %239 = sbr.rel (%p236_p2) target bundleno = 1627 (0x65b), region = 44 }
   0xb   : > { %v3658_v0 = vld [vmem:[%s5936_s3 + $0xf4] ss:$8 sps:$4 sm:$0xff]   ;;  %v5940_v2 = vmov 0   ;;  %v3662_v3 = vld [vmem:[%s5936_s3 + $0xf0] ss:$8 sps:$4 sm:$0xff]   ;;  %s3295_s29 = sshll.u32 %s3290_s22, 4 }
   0xc   : > { %v3660_v1 = vld [vmem:[%s5936_s3 + $0x74] ss:$8 sps:$4 sm:$0xff]   ;;  %511 = vmatprep.mubr.bf16.mxu0 %v5940_v2  ;;  %704 = vmatprep.mubr.bf16.mxu1 %v5940_v2  ;;  %v3663_v4 = vld [vmem:[%s5936_s3 + $0x70] ss:$8 sps:$4 sm:$0xff]   ;;  %v3664_v5 = vld [vmem:[%s5936_s3 + $0xe4] ss:$8 sps:$4 sm:$0xff]  }
   0xd   : > { %479 = vmatprep.subr.bf16.mxu0 %v3658_v0  ;;  %672 = vmatprep.subr.bf16.mxu1 %v3660_v1  ;;  %v3666_v6 = vld [vmem:[%s5936_s3 + $0x64] ss:$8 sps:$4 sm:$0xff]   ;;  %v3668_v7 = vld [vmem:[%s5936_s3 + $0xe0] ss:$8 sps:$4 sm:$0xff]   ;;  %v3670_v9 = vld [vmem:[%s5936_s3 + $0xd4] ss:$8 sps:$4 sm:$0xff]  }
   0xe   : > { %480 = vmatpush1.bf16.msra.mxu0 %v3662_v3  ;;  %673 = vmatpush1.bf16.msra.mxu1 %v3663_v4  ;;  %v3669_v8 = vld [vmem:[%s5936_s3 + $0x60] ss:$8 sps:$4 sm:$0xff]   ;;  %v3672_v10 = vld [vmem:[%s5936_s3 + $0x54] ss:$8 sps:$4 sm:$0xff]   ;;  %v3674_v11 = vld [vmem:[%s5936_s3 + $0xd0] ss:$8 sps:$4 sm:$0xff]  }
   0xf   : > { %481 = vmatprep.subr.bf16.mxu0 %v3664_v5  ;;  %674 = vmatprep.subr.bf16.mxu1 %v3666_v6  ;;  %v3675_v12 = vld [vmem:[%s5936_s3 + $0x50] ss:$8 sps:$4 sm:$0xff]   ;;  %v3676_v13 = vld [vmem:[%s5936_s3 + $0xc4] ss:$8 sps:$4 sm:$0xff]   ;;  %v3680_v15 = vld [vmem:[%s5936_s3 + $0xc0] ss:$8 sps:$4 sm:$0xff]  }
  0x10   : > { %v3678_v14 = vld [vmem:[%s5936_s3 + $0x44] ss:$8 sps:$4 sm:$0xff]   ;;  %v3681_v16 = vld [vmem:[%s5936_s3 + $0x40] ss:$8 sps:$4 sm:$0xff]   ;;  %v3682_v17 = vld [vmem:[%s5936_s3 + $0xb4] ss:$8 sps:$4 sm:$0xff]  }
  0x11   : > { %v3684_v18 = vld [vmem:[%s5936_s3 + $0x34] ss:$8 sps:$4 sm:$0xff]   ;;  %p276_p3 = scmp.lt.s32.totalorder %s3295_s29, 31  ;;  %v3686_v19 = vld [vmem:[%s5936_s3 + $0xb0] ss:$8 sps:$4 sm:$0xff]  }
  0x12   : > { %482 = vmatpush1.bf16.msra.mxu0 %v3668_v7  ;;  %675 = vmatpush1.bf16.msra.mxu1 %v3669_v8  ;;  %v3687_v20 = vld [vmem:[%s5936_s3 + $0x30] ss:$8 sps:$4 sm:$0xff]   ;;  %v3688_v21 = vld [vmem:[%s5936_s3 + $0xa4] ss:$8 sps:$4 sm:$0xff]   ;;  %v3692_v23 = vld [vmem:[%s5936_s3 + $0xa0] ss:$8 sps:$4 sm:$0xff]  }
  0x13   : > { %483 = vmatprep.subr.bf16.mxu0 %v3670_v9  ;;  %676 = vmatprep.subr.bf16.mxu1 %v3672_v10  ;;  %v3690_v22 = vld [vmem:[%s5936_s3 + $0x24] ss:$8 sps:$4 sm:$0xff]   ;;  %s5999_s29 = smov (!%p276_p3, %s3295_s29), 31  ;;  %v3693_v24 = vld [vmem:[%s5936_s3 + $0x20] ss:$8 sps:$4 sm:$0xff]  }
  0x14   : > { %v3694_v25 = vld [vmem:[%s5936_s3 + $0x94] ss:$8 sps:$4 sm:$0xff]   ;;  %s4217_s8 = sshll.u32 %s5999_s29, 3  ;;  %v3698_v27 = vld [vmem:[%s5936_s3 + $0x90] ss:$8 sps:$4 sm:$0xff]  }
  0x15   : > { %v3696_v26 = vld [vmem:[%s5936_s3 + $0x14] ss:$8 sps:$4 sm:$0xff]   ;;  %v3699_v28 = vld [vmem:[%s5936_s3 + $0x10] ss:$8 sps:$4 sm:$0xff]   ;;  %v3700_v29 = vld [vmem:[%s5936_s3 + $0x84] ss:$8 sps:$4 sm:$0xff]   ;;  %s4232_s29 = scalar_lea.vmem %s5934_s1, %s4217_s8  ;;  %s4238_s18 = scalar_lea.vmem %s5933_s0, %s4217_s8 }
  0x16   : > { %484 = vmatpush1.bf16.msra.mxu0 %v3674_v11  ;;  %677 = vmatpush1.bf16.msra.mxu1 %v3675_v12  ;;  %v3702_v30 = vld [vmem:[%s5936_s3 + $0x4] ss:$8 sps:$4 sm:$0xff]   ;;  %v3704_v31 = vld [vmem:[%s5936_s3 + $0x80] ss:$8 sps:$4 sm:$0xff]   ;;  %v3708_v37 = vld [vmem:[%s5936_s3 + $0x174] ss:$8 sps:$4 sm:$0xff]   ;;  %s4347_s19 = scalar_lea.vmem %s5935_s2, %s4217_s8  ;;  %s5710_s22 = scalar_lea.vmem %s5939_s6, %s4217_s8 }
  0x17   : > { %485 = vmatprep.subr.bf16.mxu0 %v3676_v13  ;;  %678 = vmatprep.subr.bf16.mxu1 %v3678_v14  ;;  %v3705_v32 = vld [vmem:[%s5936_s3] ss:$8 sps:$4 sm:$0xff]   ;;  %v3706_v40 = vld [vmem:[%s5936_s3 + $0x170] ss:$8 sps:$4 sm:$0xff]   ;;  %v3711_v41 = vld [vmem:[%s5936_s3 + $0x164] ss:$8 sps:$4 sm:$0xff]  }
  0x18   : > { %v358_v33 = vld [vmem:[%s4232_s29] sm:$0xff]  ;;  %v359_v34 = vld [vmem:[%s4232_s29 + $0x8] sm:$0xff]  ;;  %v360_v42 = vld [vmem:[%s4232_s29 + $0x10] sm:$0xff] }
  0x19   : > { %v318_v35 = vld [vmem:[%s4238_s18] sm:$0xff]  ;;  %v319_v36 = vld [vmem:[%s4238_s18 + $0x8] sm:$0xff]  ;;  %v374_v38 = vpack.c.bf16 %v359_v34, %v358_v33  ;;  %v361_v43 = vld [vmem:[%s4232_s29 + $0x18] sm:$0xff] }
  0x1a   : > { %486 = vmatpush1.bf16.msra.mxu0 %v3680_v15  ;;  %679 = vmatpush1.bf16.msra.mxu1 %v3681_v16  ;;  %v334_v39 = vpack.c.bf16 %v319_v36, %v318_v35  ;;  %v320_v44 = vld [vmem:[%s4238_s18 + $0x10] sm:$0xff]  ;;  %v321_v45 = vld [vmem:[%s4238_s18 + $0x18] sm:$0xff]  ;;  %v3709_v46 = vld [vmem:[%s5936_s3 + $0x160] ss:$8 sps:$4 sm:$0xff]   ;;  %v375_v48 = vpack.c.bf16 %v361_v43, %v360_v42 }
  0x1b   : > { %487 = vmatprep.subr.bf16.mxu0 %v3682_v17  ;;  %680 = vmatprep.subr.bf16.mxu1 %v3684_v18  ;;  %v3714_v47 = vld [vmem:[%s5936_s3 + $0x154] ss:$8 sps:$4 sm:$0xff]   ;;  %v335_v49 = vpack.c.bf16 %v321_v45, %v320_v44  ;;  %v3712_v50 = vld [vmem:[%s5936_s3 + $0x150] ss:$8 sps:$4 sm:$0xff]   ;;  %v3717_v51 = vld [vmem:[%s5936_s3 + $0x144] ss:$8 sps:$4 sm:$0xff]  }
  0x1c   : > { %v362_v52 = vld [vmem:[%s4232_s29 + $0x20] sm:$0xff]  ;;  %v363_v53 = vld [vmem:[%s4232_s29 + $0x28] sm:$0xff]  ;;  %v3720_v57 = vld [vmem:[%s5936_s3 + $0x134] ss:$8 sps:$4 sm:$0xff]  }
  0x1d   : > { %v322_v54 = vld [vmem:[%s4238_s18 + $0x20] sm:$0xff]  ;;  %v323_v55 = vld [vmem:[%s4238_s18 + $0x28] sm:$0xff]  ;;  %v376_v58 = vpack.c.bf16 %v363_v53, %v362_v52  ;;  %v3718_v60 = vld [vmem:[%s5936_s3 + $0x130] ss:$8 sps:$4 sm:$0xff]  }
  0x1e   : > { %488 = vmatpush1.bf16.msra.mxu0 %v3686_v19  ;;  %681 = vmatpush1.bf16.msra.mxu1 %v3687_v20  ;;  %v3715_v56 = vld [vmem:[%s5936_s3 + $0x140] ss:$8 sps:$4 sm:$0xff]   ;;  %v336_v59 = vpack.c.bf16 %v323_v55, %v322_v54  ;;  %v3723_v61 = vld [vmem:[%s5936_s3 + $0x124] ss:$8 sps:$4 sm:$0xff]   ;;  %v364_v62 = vld [vmem:[%s4232_s29 + $0x30] sm:$0xff] }
  0x1f   : > { %489 = vmatprep.subr.bf16.mxu0 %v3688_v21  ;;  %682 = vmatprep.subr.bf16.mxu1 %v3690_v22  ;;  %v365_v63 = vld [vmem:[%s4232_s29 + $0x38] sm:$0xff]  ;;  %v324_v0 = vld [vmem:[%s4238_s18 + $0x30] sm:$0xff]  ;;  %v3721_v3 = vld [vmem:[%s5936_s3 + $0x120] ss:$8 sps:$4 sm:$0xff]  }
  0x20   : > { %v325_v1 = vld [vmem:[%s4238_s18 + $0x38] sm:$0xff]  ;;  %v377_v5 = vpack.c.bf16 %v365_v63, %v364_v62  ;;  %v3729_v8 = vld [vmem:[%s5936_s3 + $0x104] ss:$8 sps:$4 sm:$0xff]   ;;  %v3727_v13 = vld [vmem:[%s5936_s3 + $0x100] ss:$8 sps:$4 sm:$0xff]  }
  0x21   : > { %v3726_v4 = vld [vmem:[%s5936_s3 + $0x114] ss:$8 sps:$4 sm:$0xff]   ;;  %v337_v6 = vpack.c.bf16 %v325_v1, %v324_v0  ;;  %v3724_v7 = vld [vmem:[%s5936_s3 + $0x110] ss:$8 sps:$4 sm:$0xff]   ;;  %v366_v9 = vld [vmem:[%s4232_s29 + $0x40] sm:$0xff] }
  0x22   : > { %490 = vmatpush1.bf16.msra.mxu0 %v3692_v23  ;;  %683 = vmatpush1.bf16.msra.mxu1 %v3693_v24  ;;  %v367_v10 = vld [vmem:[%s4232_s29 + $0x48] sm:$0xff]  ;;  %v326_v11 = vld [vmem:[%s4238_s18 + $0x40] sm:$0xff]  ;;  %v368_v16 = vld [vmem:[%s4232_s29 + $0x50] sm:$0xff] }
  0x23   : > { %491 = vmatprep.subr.bf16.mxu0 %v3694_v25  ;;  %684 = vmatprep.subr.bf16.mxu1 %v3696_v26  ;;  %v327_v12 = vld [vmem:[%s4238_s18 + $0x48] sm:$0xff]  ;;  %v378_v14 = vpack.c.bf16 %v367_v10, %v366_v9  ;;  %v369_v17 = vld [vmem:[%s4232_s29 + $0x58] sm:$0xff]  ;;  %v328_v18 = vld [vmem:[%s4238_s18 + $0x50] sm:$0xff] }
  0x24   : > { %v338_v15 = vpack.c.bf16 %v327_v12, %v326_v11  ;;  %v329_v19 = vld [vmem:[%s4238_s18 + $0x58] sm:$0xff]  ;;  %v379_v20 = vpack.c.bf16 %v369_v17, %v368_v16  ;;  %v370_v22 = vld [vmem:[%s4232_s29 + $0x60] sm:$0xff]  ;;  %v371_v23 = vld [vmem:[%s4232_s29 + $0x68] sm:$0xff] }
  0x25   : > { %v339_v21 = vpack.c.bf16 %v329_v19, %v328_v18  ;;  %v330_v24 = vld [vmem:[%s4238_s18 + $0x60] sm:$0xff]  ;;  %v331_v25 = vld [vmem:[%s4238_s18 + $0x68] sm:$0xff]  ;;  %v380_v26 = vpack.c.bf16 %v371_v23, %v370_v22  ;;  %v791_v43 = vld [vmem:[%s4347_s19 + $0x30] sm:$0xff] }
  0x26   : > { %492 = vmatpush1.bf16.msra.mxu0 %v3698_v27  ;;  %685 = vmatpush1.bf16.msra.mxu1 %v3699_v28  ;;  %v340_v27 = vpack.c.bf16 %v331_v25, %v330_v24  ;;  %v372_v28 = vld [vmem:[%s4232_s29 + $0x70] sm:$0xff]  ;;  %v785_v34 = vld [vmem:[%s4347_s19] sm:$0xff]  ;;  %v786_v35 = vld [vmem:[%s4347_s19 + $0x8] sm:$0xff] }
  0x27   : > { %493 = vmatprep.subr.bf16.mxu0 %v3700_v29  ;;  %686 = vmatprep.subr.bf16.mxu1 %v3702_v30  ;;  %v373_v29 = vld [vmem:[%s4232_s29 + $0x78] sm:$0xff]  ;;  %v332_v30 = vld [vmem:[%s4238_s18 + $0x70] sm:$0xff]  ;;  %v801_v36 = vpack.c.bf16 %v786_v35, %v785_v34  ;;  %v797_v54 = vld [vmem:[%s4347_s19 + $0x60] sm:$0xff] }
  0x28   : > { %v792_v44 = vld [vmem:[%s4347_s19 + $0x38] sm:$0xff]  ;;  %v3731_v52 = vld [vmem:[%s5938_s5 + $0x30] sm:$0xff]   ;;  %v798_v55 = vld [vmem:[%s4347_s19 + $0x68] sm:$0xff] }
  0x29   : > { %v804_v45 = vpack.c.bf16 %v792_v44, %v791_v43  ;;  %v3734_v62 = vld [vmem:[%s5938_s5 + $0x18] sm:$0xff]   ;;  %v3735_v63 = vld [vmem:[%s5938_s5 + $0x10] sm:$0xff]   ;;  %v3736_v0 = vld [vmem:[%s5938_s5 + $0x8] sm:$0xff]  }
  0x2a   : > { %494 = vmatpush1.bf16.msra.mxu0 %v3704_v31  ;;  %687 = vmatpush1.bf16.msra.mxu1 %v3705_v32  ;;  %v333_v31 = vld [vmem:[%s4238_s18 + $0x78] sm:$0xff]  ;;  %v381_v32 = vpack.c.bf16 %v373_v29, %v372_v28  ;;  %v3737_v1 = vld [vmem:[%s5938_s5] sm:$0xff]  }
  0x2b   : > { %906 = vmatprep.subr.bf16.mxu0 %v3708_v37  ;;  %v341_v33 = vpack.c.bf16 %v333_v31, %v332_v30  ;;  %v787_v37 = vld [vmem:[%s4347_s19 + $0x10] sm:$0xff] }
  0x2d   : > { %512 = vmatmul.mubr.bf16.vlgmr.msra.gmra.mxu0 %v374_v38  ;;  %705 = vmatmul.mubr.bf16.vlgmr.msra.gmra.mxu1 %v334_v39  ;;  %v788_v38 = vld [vmem:[%s4347_s19 + $0x18] sm:$0xff] }
  0x2e   : > { %907 = vmatpush1.bf16.msra.mxu0 %v3706_v40  ;;  %521 = vmatprep.mubr.bf16.mxu0 %v5940_v2  ;;  %v802_v39 = vpack.c.bf16 %v788_v38, %v787_v37  ;;  %v789_v40 = vld [vmem:[%s4347_s19 + $0x20] sm:$0xff] }
  0x2f   : > { %714 = vmatprep.mubr.bf16.mxu1 %v5940_v2  ;;  %908 = vmatprep.subr.bf16.mxu0 %v3711_v41  ;;  %v790_v41 = vld [vmem:[%s4347_s19 + $0x28] sm:$0xff] }
  0x30   : > { %v803_v42 = vpack.c.bf16 %v790_v41, %v789_v40 }
  0x32   : > { %909 = vmatpush1.bf16.msra.mxu0 %v3709_v46  ;;  %v793_v46 = vld [vmem:[%s4347_s19 + $0x40] sm:$0xff] }
  0x33   : > { %910 = vmatprep.subr.bf16.mxu0 %v3714_v47  ;;  %v794_v47 = vld [vmem:[%s4347_s19 + $0x48] sm:$0xff] }
  0x35   : > { %522 = vmatmul.mubr.bf16.gmra.mxu0 %v375_v48  ;;  %715 = vmatmul.mubr.bf16.gmra.mxu1 %v335_v49  ;;  %v4367_v48 = vld [vmem:[%s5938_s5 + $0x38] sm:$0xff]   ;;  %v805_v49 = vpack.c.bf16 %v794_v47, %v793_v46 }
  0x36   : > { %531 = vmatprep.mubr.bf16.mxu0 %v5940_v2  ;;  %724 = vmatprep.mubr.bf16.mxu1 %v5940_v2  ;;  %5949 = vst [vmem:[#allocation2_spill] sm:$0xff] %v4367_v48 }
  0x37   : > { %911 = vmatpush1.bf16.msra.mxu0 %v3712_v50  ;;  %3553 = vmatprep.subr.bf16.mxu1 %v4367_v48  ;;  %v795_v50 = vld [vmem:[%s4347_s19 + $0x50] sm:$0xff] }
  0x38   : > { %912 = vmatprep.subr.bf16.mxu0 %v3717_v51  ;;  %3554 = vmatpush3.bf16.msra.mxu1 %v4367_v48  ;;  %v796_v51 = vld [vmem:[%s4347_s19 + $0x58] sm:$0xff] }
  0x39   : > { %3555 = vmatprep.subr.bf16.mxu1 %v3731_v52  ;;  %v806_v53 = vpack.c.bf16 %v796_v51, %v795_v50 }
  0x3b   : > { %913 = vmatpush1.bf16.msra.mxu0 %v3715_v56  ;;  %v3732_v56 = vld [vmem:[%s5938_s5 + $0x28] sm:$0xff]  }
  0x3c   : > { %914 = vmatprep.subr.bf16.mxu0 %v3720_v57  ;;  %3556 = vmatpush3.bf16.msra.mxu1 %v3731_v52  ;;  %v807_v57 = vpack.c.bf16 %v798_v55, %v797_v54 }
  0x3d   : > { %532 = vmatmul.mubr.bf16.gmra.mxu0 %v376_v58  ;;  %725 = vmatmul.mubr.bf16.gmra.mxu1 %v336_v59  ;;  %v799_v58 = vld [vmem:[%s4347_s19 + $0x70] sm:$0xff]  ;;  %v800_v59 = vld [vmem:[%s4347_s19 + $0x78] sm:$0xff] }
  0x3e   : > { %541 = vmatprep.mubr.bf16.mxu0 %v5940_v2  ;;  %734 = vmatprep.mubr.bf16.mxu1 %v5940_v2 }
  0x3f   : > { %915 = vmatpush1.bf16.msra.mxu0 %v3718_v60  ;;  %3557 = vmatprep.subr.bf16.mxu1 %v3732_v56  ;;  %v3733_v60 = vld [vmem:[%s5938_s5 + $0x20] sm:$0xff]  }
  0x40   : > { %916 = vmatprep.subr.bf16.mxu0 %v3723_v61  ;;  %3558 = vmatpush3.bf16.msra.mxu1 %v3732_v56  ;;  %v808_v61 = vpack.c.bf16 %v800_v59, %v799_v58 }
  0x41   : > { %3559 = vmatprep.subr.bf16.mxu1 %v3733_v60 }
  0x43   : > { %917 = vmatpush1.bf16.msra.mxu0 %v3721_v3 }
  0x44   : > { %918 = vmatprep.subr.bf16.mxu0 %v3726_v4  ;;  %3560 = vmatpush3.bf16.msra.mxu1 %v3733_v60 }
  0x45   : > { %542 = vmatmul.mubr.bf16.gmra.mxu0 %v377_v5  ;;  %735 = vmatmul.mubr.bf16.gmra.mxu1 %v337_v6 }
  0x46   : > { %551 = vmatprep.mubr.bf16.mxu0 %v5940_v2  ;;  %744 = vmatprep.mubr.bf16.mxu1 %v5940_v2 }
  0x47   : > { %919 = vmatpush1.bf16.msra.mxu0 %v3724_v7  ;;  %3561 = vmatprep.subr.bf16.mxu1 %v3734_v62 }
  0x48   : > { %920 = vmatprep.subr.bf16.mxu0 %v3729_v8  ;;  %3562 = vmatpush3.bf16.msra.mxu1 %v3734_v62 }
  0x49   : > { %3563 = vmatprep.subr.bf16.mxu1 %v3735_v63 }
  0x4b   : > { %921 = vmatpush1.bf16.msra.mxu0 %v3727_v13 }
  0x4c   : > { %3585 = vmatprep.subr.bf16.mxu0 %v4367_v48  ;;  %3564 = vmatpush3.bf16.msra.mxu1 %v3735_v63 }
  0x4d   : > { %552 = vmatmul.mubr.bf16.gmra.mxu0 %v378_v14  ;;  %745 = vmatmul.mubr.bf16.gmra.mxu1 %v338_v15 }
  0x4e   : > { %561 = vmatprep.mubr.bf16.mxu0 %v5940_v2  ;;  %754 = vmatprep.mubr.bf16.mxu1 %v5940_v2 }
  0x4f   : > { %3565 = vmatprep.subr.bf16.mxu1 %v3736_v0 }
  0x50   : > { %3566 = vmatpush3.bf16.msra.mxu1 %v3736_v0 }
  0x51   : > { %3567 = vmatprep.subr.bf16.mxu1 %v3737_v1 }
  0x54   : > { %3568 = vmatpush3.bf16.msra.mxu1 %v3737_v1 }
  0x55   : > { %562 = vmatmul.mubr.bf16.gmra.mxu0 %v379_v20  ;;  %755 = vmatmul.mubr.bf16.gmra.mxu1 %v339_v21 }
  0x56   : > { %571 = vmatprep.mubr.bf16.mxu0 %v5940_v2  ;;  %764 = vmatprep.mubr.bf16.mxu1 %v5940_v2 }
  0x5d   : > { %572 = vmatmul.mubr.bf16.gmra.mxu0 %v380_v26  ;;  %765 = vmatmul.mubr.bf16.gmra.mxu1 %v340_v27 }
  0x5e   : > { %581 = vmatprep.mubr.bf16.mxu0 %v5940_v2  ;;  %774 = vmatprep.mubr.bf16.mxu1 %v5940_v2 }
  0x65   : > { %582 = vmatmul.mubr.bf16.gmra.mxu0 %v381_v32  ;;  %775 = vmatmul.mubr.bf16.gmra.mxu1 %v341_v33 }
  0x66   : > { %938 = vmatprep.mubr.bf16.mxu0 %v5940_v2 }
  0x6d   : > { %939 = vmatmul.mubr.bf16.vlgmr.msra.gmra.mxu0 %v801_v36 }
  0x6e   : > { %948 = vmatprep.mubr.bf16.mxu0 %v5940_v2  ;;  %3586 = vmatpush3.bf16.msra.mxu0 %v4367_v48 }
  0x6f   : > { %3587 = vmatprep.subr.bf16.mxu0 %v3731_v52 }
  0x72   : > { %3588 = vmatpush3.bf16.msra.mxu0 %v3731_v52 }
  0x73   : > { %3589 = vmatprep.subr.bf16.mxu0 %v3732_v56 }
  0x75   : > { %949 = vmatmul.mubr.bf16.gmra.mxu0 %v802_v39 }
  0x76   : > { %958 = vmatprep.mubr.bf16.mxu0 %v5940_v2  ;;  %3590 = vmatpush3.bf16.msra.mxu0 %v3732_v56 }
  0x77   : > { %3591 = vmatprep.subr.bf16.mxu0 %v3733_v60 }
  0x7a   : > { %3592 = vmatpush3.bf16.msra.mxu0 %v3733_v60 }
  0x7b   : > { %3593 = vmatprep.subr.bf16.mxu0 %v3734_v62 }
  0x7d   : > { %959 = vmatmul.mubr.bf16.gmra.mxu0 %v803_v42 }
  0x7e   : > { %968 = vmatprep.mubr.bf16.mxu0 %v5940_v2  ;;  %3594 = vmatpush3.bf16.msra.mxu0 %v3734_v62 }
  0x7f   : > { %3595 = vmatprep.subr.bf16.mxu0 %v3735_v63 }
  0x82   : > { %3596 = vmatpush3.bf16.msra.mxu0 %v3735_v63 }
  0x83   : > { %3597 = vmatprep.subr.bf16.mxu0 %v3736_v0 }
  0x85   : > { %969 = vmatmul.mubr.bf16.gmra.mxu0 %v804_v45  ;;  %v1051_v45 = vlaneseq }
  0x86   : > { %978 = vmatprep.mubr.bf16.mxu0 %v5940_v2  ;;  %3598 = vmatpush3.bf16.msra.mxu0 %v3736_v0 }
  0x87   : > { %3599 = vmatprep.subr.bf16.mxu0 %v3737_v1  ;;  %v4473_v50 = vshrl.u32 %v1051_v45, 7 }
  0x89   : > { %5950 = vst [vmem:[#allocation3_spill] sm:$0xff] %v4473_v50  ;;  %v5943_v54 = vsub.s32 0, %v4473_v50  ;;  %v5946_v55 = vsub.s32 1, %v4473_v50 }
  0x8a   : > { %3600 = vmatpush3.bf16.msra.mxu0 %v3737_v1 }
  0x8d   : > { %979 = vmatmul.mubr.bf16.gmra.mxu0 %v805_v49 }
  0x8e   : > { %988 = vmatprep.mubr.bf16.mxu0 %v5940_v2 }
  0x95   : > { %989 = vmatmul.mubr.bf16.gmra.mxu0 %v806_v53 }
  0x96   : > { %998 = vmatprep.mubr.bf16.mxu0 %v5940_v2 }
  0x9d   : > { %999 = vmatmul.mubr.bf16.gmra.mxu0 %v807_v57  ;;  %v4488_v57 = vld [vmem:[%s5937_s4] sm:$0xff] }
  0x9e   : > { %1008 = vmatprep.mubr.bf16.mxu0 %v5940_v2  ;;  %5952 = vst [vmem:[#allocation5_spill] sm:$0xff] %v4488_v57  ;;  %v4495_v63 = vrot.slane %v4488_v57, %v5943_v54  ;;  %v4500_v0 = vrot.slane %v4488_v57, %v5946_v55 }
  0xa5   : > { %1009 = vmatmul.mubr.bf16.gmra.mxu0 %v808_v61 }
  0xed   : > { %v513_v3 = vpop.f32.mrf.mxu0  ;;  %v706_v4 = vpop.f32.mrf.mxu1 }
  0xee   : > { %v707_v58 = vadd.f32 %v706_v4, %v513_v3 }
  0xef   : > { %v515_v5 = vpop.f32.mrf.mxu0  ;;  %v708_v6 = vpop.f32.mrf.mxu1 }
  0xf0   : > { %v709_v60 = vadd.f32 %v708_v6, %v515_v5 }
  0xf1   : > { %v517_v7 = vpop.f32.mrf.mxu0  ;;  %v710_v8 = vpop.f32.mrf.mxu1 }
  0xf2   : > { %v711_v45 = vadd.f32 %v710_v8, %v517_v7 }
  0xf3   : > { %v519_v9 = vpop.f32.mrf.mxu0  ;;  %v712_v11 = vpop.f32.mrf.mxu1 }
  0xf4   : > { %v713_v3 = vadd.f32 %v712_v11, %v519_v9 }
  0xf5   : > { %v4403_v10 = vpop.f32.mrf.mxu0  ;;  %v716_v14 = vpop.f32.mrf.mxu1 }
  0xf6   : > { %v717_v54 = vadd.f32 %v716_v14, %v4403_v10 }
  0xf7   : > { %v4405_v12 = vpop.f32.mrf.mxu0  ;;  %v718_v17 = vpop.f32.mrf.mxu1 }
  0xf8   : > { %v719_v57 = vadd.f32 %v718_v17, %v4405_v12 }
  0xf9   : > { %v4407_v13 = vpop.f32.mrf.mxu0  ;;  %v4417_v20 = vpop.f32.mrf.mxu1 }
  0xfb   : > { %v4409_v15 = vpop.f32.mrf.mxu0  ;;  %v4423_v23 = vpop.f32.mrf.mxu1 }
  0xfc   : > { %v723_v14 = vadd.f32 %v4423_v23, %v4409_v15 }
  0xfd   : > { %v4411_v16 = vpop.f32.mrf.mxu0  ;;  %v4429_v26 = vpop.f32.mrf.mxu1 }
  0xff   : > { %v4413_v18 = vpop.f32.mrf.mxu0  ;;  %v4435_v29 = vpop.f32.mrf.mxu1 }
 0x101   : > { %v4415_v19 = vpop.f32.mrf.mxu0  ;;  %v4441_v32 = vpop.f32.mrf.mxu1 }
 0x103   : > { %v4419_v21 = vpop.f32.mrf.mxu0  ;;  %v4447_v35 = vpop.f32.mrf.mxu1 }
 0x105   : > { %v4421_v22 = vpop.f32.mrf.mxu0  ;;  %v4453_v38 = vpop.f32.mrf.mxu1 }
 0x107   : > { %v4425_v24 = vpop.f32.mrf.mxu0  ;;  %v4459_v41 = vpop.f32.mrf.mxu1 }
 0x109   : > { %v4427_v25 = vpop.f32.mrf.mxu0  ;;  %v4465_v44 = vpop.f32.mrf.mxu1 }
 0x10b   : > { %v4431_v27 = vpop.f32.mrf.mxu0  ;;  %v4471_v49 = vpop.f32.mrf.mxu1 }
 0x10d   : > { %v4433_v28 = vpop.f32.mrf.mxu0  ;;  %v4479_v53 = vpop.f32.mrf.mxu1 }
 0x10f   : > { %v4437_v30 = vpop.f32.mrf.mxu0  ;;  %v4490_v61 = vpop.f32.mrf.mxu1 }
 0x111   : > { %v4439_v31 = vpop.f32.mrf.mxu0  ;;  %v4502_v4 = vpop.f32.mrf.mxu1 }
 0x113   : > { %v4443_v33 = vpop.f32.mrf.mxu0  ;;  %v4510_v7 = vpop.f32.mrf.mxu1 }
 0x115   : > { %v4445_v34 = vpop.f32.mrf.mxu0  ;;  %v4522_v17 = vpop.f32.mrf.mxu1 }
 0x117   : > { %v4449_v36 = vpop.f32.mrf.mxu0 }
 0x119   : > { %v4451_v37 = vpop.f32.mrf.mxu0 }
 0x11b   : > { %v4455_v39 = vpop.f32.mrf.mxu0 }
 0x11d   : > { %v4457_v40 = vpop.f32.mrf.mxu0 }
 0x11f   : > { %v4461_v42 = vpop.f32.mrf.mxu0 }
 0x121   : > { %v4463_v43 = vpop.f32.mrf.mxu0 }
 0x123   : > { %v4467_v46 = vpop.f32.mrf.mxu0 }
 0x125   : > { %v4469_v47 = vpop.f32.mrf.mxu0 }
 0x127   : > { %v4475_v51 = vpop.f32.mrf.mxu0 }
 0x129   : > { %v4477_v52 = vpop.f32.mrf.mxu0 }
 0x12b   : > { %v4483_v56 = vpop.f32.mrf.mxu0 }
 0x12c   : > { %5951 = vst [vmem:[#allocation4_spill] sm:$0xff] %v4483_v56 }
 0x12d   : > { %v940_v59 = vpop.f32.mrf.mxu0 }
 0x12e   : > { %v1019_v62 = vadd.f32 %v940_v59, %v707_v58 }
 0x12f   : > { %v942_v1 = vpop.f32.mrf.mxu0 }
 0x130   : > { %v1020_v2 = vadd.f32 %v942_v1, %v709_v60  ;;  %v1055_v5 = vadd.f32 %v4495_v63, %v1019_v62 }
 0x131   : > { %v944_v48 = vpop.f32.mrf.mxu0 }
 0x132   : > { %v1075_v6 = vadd.f32 %v4500_v0, %v1020_v2  ;;  %v1021_v58 = vadd.f32 %v944_v48, %v711_v45  ;;  %v721_v2 = vadd.f32 %v4417_v20, %v4407_v13 }
 0x133   : > { %v946_v59 = vpop.f32.mrf.mxu0 }
 0x134   : > { %v4507_v56 = vsub.f32 %v1055_v5, %v1075_v6  ;;  %v1022_v50 = vadd.f32 %v946_v59, %v713_v3  ;;  %v1056_v8 = vadd.f32 %v4495_v63, %v1021_v58  ;;  %v729_v3 = vadd.f32 %v4435_v29, %v4413_v18  ;;  %v4534_v5 = vpop.f32.mrf.mxu1 }
 0x135   : > { %v950_v55 = vpop.f32.mrf.mxu0 }
 0x136   : > { %v1076_v9 = vadd.f32 %v4500_v0, %v1022_v50  ;;  %v1023_v11 = vadd.f32 %v950_v55, %v717_v54  ;;  %v1107_v12 = vmul.f32 %v4507_v56, %v4507_v56  ;;  %v727_v55 = vadd.f32 %v4429_v26, %v4411_v16 }
 0x137   : > { %v952_v60 = vpop.f32.mrf.mxu0  ;;  %v731_v16 = vadd.f32 %v4441_v32, %v4415_v19 }
 0x138   : > { %v4516_v48 = vsub.f32 %v1056_v8, %v1076_v9  ;;  %v1024_v10 = vadd.f32 %v952_v60, %v719_v57  ;;  %v1057_v1 = vadd.f32 %v4495_v63, %v1023_v11  ;;  %v733_v11 = vadd.f32 %v4447_v35, %v4419_v21  ;;  %v4546_v60 = vpop.f32.mrf.mxu1 }
 0x139   : > { %v954_v62 = vpop.f32.mrf.mxu0 }
 0x13a   : > { %v1077_v50 = vadd.f32 %v4500_v0, %v1024_v10  ;;  %v1025_v54 = vadd.f32 %v954_v62, %v721_v2  ;;  %v1108_v13 = vmul.f32 %v4516_v48, %v4516_v48  ;;  %v737_v62 = vadd.f32 %v4453_v38, %v4421_v22 }
 0x13b   : > { %v956_v20 = vpop.f32.mrf.mxu0 }
 0x13c   : > { %v4530_v57 = vsub.f32 %v1057_v1, %v1077_v50  ;;  %v1026_v15 = vadd.f32 %v956_v20, %v723_v14  ;;  %v1123_v23 = vpack.c.bf16 %v1108_v13, %v1107_v12  ;;  %v1058_v6 = vadd.f32 %v4495_v63, %v1025_v54  ;;  %v762_v54 = vpop.f32.mrf.mxu1 }
 0x13d   : > { %v960_v45 = vpop.f32.mrf.mxu0  ;;  %v739_v50 = vadd.f32 %v4459_v41, %v4425_v24 }
 0x13e   : > { %v1078_v58 = vadd.f32 %v4500_v0, %v1026_v15  ;;  %v1027_v59 = vadd.f32 %v960_v45, %v727_v55  ;;  %3569 = vmatprep.mubr.bf16.mxu1 %v1123_v23  ;;  %v1109_v18 = vmul.f32 %v4530_v57, %v4530_v57  ;;  %v741_v23 = vadd.f32 %v4465_v44, %v4427_v25  ;;  %v766_v41 = vpop.f32.mrf.mxu1 }
 0x13f   : > { %v962_v8 = vpop.f32.mrf.mxu0  ;;  %v743_v45 = vadd.f32 %v4471_v49, %v4431_v27  ;;  %v747_v44 = vadd.f32 %v4479_v53, %v4433_v28 }
 0x140   : > { %v4540_v26 = vsub.f32 %v1058_v6, %v1078_v58  ;;  %v1028_v9 = vadd.f32 %v962_v8, %v729_v3  ;;  %v1059_v10 = vadd.f32 %v4495_v63, %v1027_v59 }
 0x141   : > { %v964_v29 = vpop.f32.mrf.mxu0 }
 0x142   : > { %v1110_v2 = vmul.f32 %v4540_v26, %v4540_v26  ;;  %v1079_v14 = vadd.f32 %v4500_v0, %v1028_v9  ;;  %v1029_v19 = vadd.f32 %v964_v29, %v731_v16 }
 0x143   : > { %v966_v32 = vpop.f32.mrf.mxu0 }
 0x144   : > { %v1124_v12 = vpack.c.bf16 %v1110_v2, %v1109_v18  ;;  %v4554_v21 = vsub.f32 %v1059_v10, %v1079_v14  ;;  %v1030_v35 = vadd.f32 %v966_v32, %v733_v11  ;;  %v1060_v13 = vadd.f32 %v4495_v63, %v1029_v19  ;;  %v768_v18 = vpop.f32.mrf.mxu1 }
 0x145   : > { %v970_v1 = vpop.f32.mrf.mxu0  ;;  %v749_v11 = vadd.f32 %v4490_v61, %v4437_v30  ;;  %v751_v19 = vadd.f32 %v4502_v4, %v4439_v31  ;;  %v753_v32 = vadd.f32 %v4510_v7, %v4443_v33  ;;  %v757_v4 = vadd.f32 %v4522_v17, %v4445_v34 }
 0x146   : > { %v1080_v20 = vadd.f32 %v4500_v0, %v1030_v35  ;;  %v1031_v55 = vadd.f32 %v970_v1, %v737_v62  ;;  %3570 = vmatmul.mubr.bf16.vlgmr.msra.gmra.mxu1 %v1124_v12  ;;  %v1111_v24 = vmul.f32 %v4554_v21, %v4554_v21  ;;  %v770_v61 = vpop.f32.mrf.mxu1 }
 0x147   : > { %v972_v15 = vpop.f32.mrf.mxu0 }
 0x148   : > { %v4562_v22 = vsub.f32 %v1060_v13, %v1080_v20  ;;  %v1032_v38 = vadd.f32 %v972_v15, %v739_v50  ;;  %v1061_v6 = vadd.f32 %v4495_v63, %v1031_v55  ;;  %v759_v55 = vadd.f32 %v4534_v5, %v4449_v36  ;;  %v772_v15 = vpop.f32.mrf.mxu1 }
 0x149   : > { %v974_v3 = vpop.f32.mrf.mxu0 }
 0x14a   : > { %v1081_v58 = vadd.f32 %v4500_v0, %v1032_v38  ;;  %v1033_v59 = vadd.f32 %v974_v3, %v741_v23  ;;  %v1112_v8 = vmul.f32 %v4562_v22, %v4562_v22  ;;  %v776_v5 = vpop.f32.mrf.mxu1 }
 0x14b   : > { %v976_v25 = vpop.f32.mrf.mxu0 }
 0x14c   : > { %v4574_v16 = vsub.f32 %v1061_v6, %v1081_v58  ;;  %v1034_v27 = vadd.f32 %v976_v25, %v743_v45  ;;  %v1125_v49 = vpack.c.bf16 %v1112_v8, %v1111_v24  ;;  %v1062_v29 = vadd.f32 %v4495_v63, %v1033_v59 }
 0x14d   : > { %v980_v9 = vpop.f32.mrf.mxu0  ;;  %v761_v24 = vadd.f32 %v4546_v60, %v4451_v37  ;;  %v763_v6 = vadd.f32 %v762_v54, %v4455_v39  ;;  %v767_v37 = vadd.f32 %v766_v41, %v4457_v40  ;;  %v773_v41 = vadd.f32 %v772_v15, %v4467_v46 }
 0x14e   : > { %v1082_v2 = vadd.f32 %v4500_v0, %v1034_v27  ;;  %v1035_v10 = vadd.f32 %v980_v9, %v747_v44  ;;  %3573 = vmatprep.mubr.bf16.mxu1 %v1125_v49  ;;  %v1113_v30 = vmul.f32 %v4574_v16, %v4574_v16  ;;  %v769_v9 = vadd.f32 %v768_v18, %v4461_v42 }
 0x14f   : > { %v982_v14 = vpop.f32.mrf.mxu0 }
 0x150   : > { %v4582_v28 = vsub.f32 %v1062_v29, %v1082_v2  ;;  %v1036_v53 = vadd.f32 %v982_v14, %v749_v11  ;;  %v1063_v12 = vadd.f32 %v4495_v63, %v1035_v10  ;;  %v778_v11 = vpop.f32.mrf.mxu1 }
 0x151   : > { %v984_v62 = vpop.f32.mrf.mxu0 }
 0x152   : > { %v1083_v35 = vadd.f32 %v4500_v0, %v1036_v53  ;;  %v1037_v1 = vadd.f32 %v984_v62, %v751_v19  ;;  %v1114_v50 = vmul.f32 %v4582_v28, %v4582_v28  ;;  %v771_v19 = vadd.f32 %v770_v61, %v4463_v43  ;;  %v780_v42 = vpop.f32.mrf.mxu1 }
 0x153   : > { %v986_v31 = vpop.f32.mrf.mxu0  ;;  %v777_v43 = vadd.f32 %v776_v5, %v4469_v47 }
 0x154   : > { %v4594_v13 = vsub.f32 %v1063_v12, %v1083_v35  ;;  %v1038_v33 = vadd.f32 %v986_v31, %v753_v32  ;;  %v1126_v7 = vpack.c.bf16 %v1114_v50, %v1113_v30  ;;  %v1064_v23 = vadd.f32 %v4495_v63, %v1037_v1 }
 0x155   : > { %v990_v20 = vpop.f32.mrf.mxu0 }
 0x156   : > { %v1084_v38 = vadd.f32 %v4500_v0, %v1038_v33  ;;  %v1039_v45 = vadd.f32 %v990_v20, %v757_v4  ;;  %3574 = vmatmul.mubr.bf16.gmra.mxu1 %v1126_v7  ;;  %v1115_v36 = vmul.f32 %v4594_v13, %v4594_v13  ;;  %v779_v4 = vadd.f32 %v778_v11, %v4475_v51  ;;  %v782_v33 = vpop.f32.mrf.mxu1  ;;  %v3741_v11 = vld [vmem:[%s5936_s3 + $0x1e0] ss:$8 sps:$4 sm:$0xff]  }
 0x157   : > { %v992_v3 = vpop.f32.mrf.mxu0 }
 0x158   : > { %v4602_v34 = vsub.f32 %v1064_v23, %v1084_v38  ;;  %v1040_v17 = vadd.f32 %v992_v3, %v759_v55  ;;  %v1065_v59 = vadd.f32 %v4495_v63, %v1039_v45  ;;  %v781_v23 = vadd.f32 %v780_v42, %v4477_v52  ;;  %v5953_v45 = vld [vmem:[#allocation4_spill] sm:$0xff] }
 0x159   : > { %v994_v58 = vpop.f32.mrf.mxu0  ;;  %v783_v3 = vadd.f32 %v782_v33, %v5953_v45  ;;  %v3756_v42 = vld [vmem:[%s5936_s3 + $0x190] ss:$8 sps:$4 sm:$0xff]  }
 0x15a   : > { %v1085_v8 = vadd.f32 %v4500_v0, %v1040_v17  ;;  %v1041_v25 = vadd.f32 %v994_v58, %v761_v24  ;;  %v1116_v44 = vmul.f32 %v4602_v34, %v4602_v34 }
 0x15b   : > { %v996_v27 = vpop.f32.mrf.mxu0 }
 0x15c   : > { %v4612_v60 = vsub.f32 %v1065_v59, %v1085_v8  ;;  %v1042_v49 = vadd.f32 %v996_v27, %v763_v6  ;;  %v1127_v39 = vpack.c.bf16 %v1116_v44, %v1115_v36  ;;  %v1066_v29 = vadd.f32 %v4495_v63, %v1041_v25 }
 0x15d   : > { %v1000_v54 = vpop.f32.mrf.mxu0 }
 0x15e   : > { %v1086_v2 = vadd.f32 %v4500_v0, %v1042_v49  ;;  %v1043_v10 = vadd.f32 %v1000_v54, %v767_v37  ;;  %3577 = vmatprep.mubr.bf16.mxu1 %v1127_v39  ;;  %v1117_v62 = vmul.f32 %v4612_v60, %v4612_v60  ;;  %v5954_v54 = vmov 0  }
 0x15f   : > { %v1002_v14 = vpop.f32.mrf.mxu0 }
 0x160   : > { %v4618_v53 = vsub.f32 %v1066_v29, %v1086_v2  ;;  %v1044_v40 = vadd.f32 %v1002_v14, %v769_v9  ;;  %v1067_v18 = vadd.f32 %v4495_v63, %v1043_v10  ;;  %v3740_v9 = vld [vmem:[%s5936_s3 + $0x1f4] ss:$8 sps:$4 sm:$0xff]   ;;  %v3744_v2 = vld [vmem:[%s5936_s3 + $0x1d0] ss:$8 sps:$4 sm:$0xff]   ;;  %v3749_v10 = vld [vmem:[%s5936_s3 + $0x1c4] ss:$8 sps:$4 sm:$0xff]  }
 0x161   : > { %v1004_v32 = vpop.f32.mrf.mxu0  ;;  %1757 = vmatprep.subr.bf16.mxu1 %v3740_v9  ;;  %v3746_v29 = vld [vmem:[%s5936_s3 + $0x1d4] ss:$8 sps:$4 sm:$0xff]   ;;  %v3747_v14 = vld [vmem:[%s5936_s3 + $0x1c0] ss:$8 sps:$4 sm:$0xff]  }
 0x162   : > { %v1087_v30 = vadd.f32 %v4500_v0, %v1044_v40  ;;  %v1045_v12 = vadd.f32 %v1004_v32, %v771_v19  ;;  %v1118_v35 = vmul.f32 %v4618_v53, %v4618_v53  ;;  %v3752_v19 = vld [vmem:[%s5936_s3 + $0x1b4] ss:$8 sps:$4 sm:$0xff]   ;;  %v3750_v40 = vld [vmem:[%s5936_s3 + $0x1b0] ss:$8 sps:$4 sm:$0xff]   ;;  %v3753_v32 = vld [vmem:[%s5936_s3 + $0x1a0] ss:$8 sps:$4 sm:$0xff]  }
 0x163   : > { %v1006_v1 = vpop.f32.mrf.mxu0 }
 0x164   : > { %v4628_v61 = vsub.f32 %v1067_v18, %v1087_v30  ;;  %v1046_v50 = vadd.f32 %v1006_v1, %v773_v41  ;;  %v1128_v46 = vpack.c.bf16 %v1118_v35, %v1117_v62  ;;  %v1068_v7 = vadd.f32 %v4495_v63, %v1045_v12  ;;  %v3755_v41 = vld [vmem:[%s5936_s3 + $0x1a4] ss:$8 sps:$4 sm:$0xff]   ;;  %v3758_v62 = vld [vmem:[%s5936_s3 + $0x194] ss:$8 sps:$4 sm:$0xff]   ;;  %v3759_v30 = vld [vmem:[%s5936_s3 + $0x180] ss:$8 sps:$4 sm:$0xff]  }
 0x165   : > { %v1010_v31 = vpop.f32.mrf.mxu0  ;;  %v3761_v18 = vld [vmem:[%s5936_s3 + $0x184] ss:$8 sps:$4 sm:$0xff]  }
 0x166   : > { %v1088_v20 = vadd.f32 %v4500_v0, %v1046_v50  ;;  %v1047_v55 = vadd.f32 %v1010_v31, %v777_v43  ;;  %3578 = vmatmul.mubr.bf16.gmra.mxu1 %v1128_v46  ;;  %v1119_v17 = vmul.f32 %v4628_v61, %v4628_v61  ;;  %v5955_v12 = vld [vmem:[#allocation2_spill] sm:$0xff] }
 0x167   : > { %v1012_v15 = vpop.f32.mrf.mxu0 }
 0x168   : > { %v4634_v38 = vsub.f32 %v1068_v7, %v1088_v20  ;;  %v1048_v47 = vadd.f32 %v1012_v15, %v779_v4  ;;  %v1069_v51 = vadd.f32 %v4495_v63, %v1047_v55  ;;  %v5956_v7 = vld [vmem:[#allocation3_spill] sm:$0xff]  ;;  %v5957_v15 = vld [vmem:[#allocation5_spill] sm:$0xff] }
 0x169   : > { %v1014_v24 = vpop.f32.mrf.mxu0  ;;  %v1310_v20 = vsub.s32 2, %v5956_v7  ;;  %v1330_v55 = vsub.s32 3, %v5956_v7 }
 0x16a   : > { %v1089_v6 = vadd.f32 %v4500_v0, %v1048_v47  ;;  %v1049_v58 = vadd.f32 %v1014_v24, %v781_v23  ;;  %v1120_v36 = vmul.f32 %v4634_v38, %v4634_v38 }
 0x16b   : > { %v1016_v5 = vpop.f32.mrf.mxu0  ;;  %v4708_v23 = vrot.slane %v5957_v15, %v1310_v20 }
 0x16c   : > { %v4643_v59 = vsub.f32 %v1069_v51, %v1089_v6  ;;  %v1050_v52 = vadd.f32 %v1016_v5, %v783_v3  ;;  %v1129_v8 = vpack.c.bf16 %v1120_v36, %v1119_v17  ;;  %v1070_v25 = vadd.f32 %v4495_v63, %v1049_v58  ;;  %v3738_v63 = vld [vmem:[%s5936_s3 + $0x1f0] ss:$8 sps:$4 sm:$0xff]  }
 0x16d   : > { %1758 = vmatpush1.bf16.msra.mxu1 %v3738_v63  ;;  %v4714_v51 = vrot.slane %v5957_v15, %v1330_v55 }
 0x16e   : > { %v1090_v44 = vadd.f32 %v4500_v0, %v1050_v52  ;;  %3581 = vmatprep.mubr.bf16.mxu1 %v1129_v8  ;;  %v1121_v37 = vmul.f32 %v4643_v59, %v4643_v59  ;;  %v3743_v0 = vld [vmem:[%s5936_s3 + $0x1e4] ss:$8 sps:$4 sm:$0xff]  }
 0x16f   : > { %1759 = vmatprep.subr.bf16.mxu1 %v3743_v0 }
 0x170   : > { %v4647_v27 = vsub.f32 %v1070_v25, %v1090_v44 }
 0x171   : > { %1760 = vmatpush1.bf16.msra.mxu1 %v3741_v11 }
 0x172   : > { %v1122_v49 = vmul.f32 %v4647_v27, %v4647_v27  ;;  %1761 = vmatprep.subr.bf16.mxu1 %v3746_v29 }
 0x174   : > { %v1130_v39 = vpack.c.bf16 %v1122_v49, %v1121_v37 }
 0x175   : > { %1762 = vmatpush1.bf16.msra.mxu1 %v3744_v2 }
 0x176   : > { %3582 = vmatmul.mubr.bf16.gmra.mxu1 %v1130_v39  ;;  %1763 = vmatprep.subr.bf16.mxu1 %v3749_v10 }
 0x177   : > { %1789 = vmatprep.mubr.bf16.mxu1 %v5954_v54 }
 0x179   : > { %1764 = vmatpush1.bf16.msra.mxu1 %v3747_v14 }
 0x17a   : > { %1765 = vmatprep.subr.bf16.mxu1 %v3752_v19 }
 0x17d   : > { %1766 = vmatpush1.bf16.msra.mxu1 %v3750_v40 }
 0x17e   : > { %1767 = vmatprep.subr.bf16.mxu1 %v3755_v41 }
 0x181   : > { %1768 = vmatpush1.bf16.msra.mxu1 %v3753_v32 }
 0x182   : > { %1769 = vmatprep.subr.bf16.mxu1 %v3758_v62 }
 0x185   : > { %1770 = vmatpush1.bf16.msra.mxu1 %v3756_v42 }
 0x186   : > { %1771 = vmatprep.subr.bf16.mxu1 %v3761_v18 }
 0x189   : > { %1772 = vmatpush1.bf16.msra.mxu1 %v3759_v30 }
 0x18a   : > { %3617 = vmatprep.subr.bf16.mxu1 %v5955_v12 }
 0x206   : > { %v3571_v35 = vpop.f32.mrf.mxu1 }
 0x207   : > { %v1222_v1 = vadd.f32 1e-05, %v3571_v35 }
 0x208   : > { %v1213_v43 = vpop.f32.mrf.mxu1 }
 0x209   : > { %3786 = vrsqrt.f32 %v1222_v1  ;;  %v1214_v50 = vadd.f32 1e-05, %v1213_v43 }
 0x20a   : > { %v3572_v46 = vpop.f32.mrf.mxu1 }
 0x20b   : > { %3788 = vrsqrt.f32 %v1214_v50  ;;  %v1225_v31 = vadd.f32 1e-05, %v3572_v46 }
 0x20c   : > { %v1216_v4 = vpop.f32.mrf.mxu1 }
 0x20d   : > { %3790 = vrsqrt.f32 %v1225_v31  ;;  %v1217_v33 = vadd.f32 1e-05, %v1216_v4 }
 0x20f   : > { %3792 = vrsqrt.f32 %v1217_v33 }
 0x216   : > { %v3787_v47 = vpop.eup %3786  ;;  %v3575_v45 = vpop.f32.mrf.mxu1 }
 0x217   : > { %v1294_v3 = vmul.f32 %v3787_v47, %v4530_v57  ;;  %v1238_v24 = vadd.f32 1e-05, %v3575_v45 }
 0x218   : > { %v3789_v17 = vpop.eup %3788  ;;  %v1229_v6 = vpop.f32.mrf.mxu1 }
 0x219   : > { %v1292_v58 = vmul.f32 %v3789_v17, %v4507_v56  ;;  %v1230_v36 = vadd.f32 1e-05, %v1229_v6  ;;  %v1314_v5 = vmul.f32 %v4708_v23, %v1294_v3  ;;  %3794 = vrsqrt.f32 %v1238_v24 }
 0x21a   : > { %v3791_v52 = vpop.eup %3790  ;;  %v3576_v8 = vpop.f32.mrf.mxu1 }
 0x21b   : > { %v1312_v25 = vmul.f32 %v4708_v23, %v1292_v58  ;;  %v1295_v57 = vmul.f32 %v3791_v52, %v4540_v26  ;;  %3796 = vrsqrt.f32 %v1230_v36  ;;  %v4721_v49 = vadd.f32 %v4714_v51, %v1314_v5 }
 0x21c   : > { %v3793_v44 = vpop.eup %3792  ;;  %v1232_v37 = vpop.f32.mrf.mxu1  ;;  %v1241_v9 = vadd.f32 1e-05, %v3576_v8 }
 0x21d   : > { %v4724_v39 = vadd.f32 %v4714_v51, %v1312_v25  ;;  %v1293_v56 = vmul.f32 %v3793_v44, %v4516_v48  ;;  %v1233_v63 = vadd.f32 1e-05, %v1232_v37  ;;  %v1315_v0 = vmul.f32 %v4708_v23, %v1295_v57 }
 0x21e   : > { %v1398_v11 = vand.u32 2147483647, %v4721_v49  ;;  %vm1366_vm6 = vcmp.ne.f32.partialorder %v4721_v49, %v4721_v49 }
 0x21f   : > { %v1396_v29 = vand.u32 2147483647, %v4724_v39  ;;  %v1313_v26 = vmul.f32 %v4708_v23, %v1293_v56  ;;  %3798 = vrsqrt.f32 %v1233_v63  ;;  %v4732_v2 = vadd.f32 %v4714_v51, %v1315_v0 }
 0x220   : > { %v1414_v10 = vsub.f32 0.0, %v1398_v11  ;;  %3800 = vrsqrt.f32 %v1241_v9  ;;  %vm1364_vm1 = vcmp.ne.f32.partialorder %v4724_v39, %v4724_v39 }
 0x221   : > { %v1412_v14 = vsub.f32 0.0, %v1396_v29  ;;  %v4735_v19 = vadd.f32 %v4714_v51, %v1313_v26  ;;  %v1399_v48 = vand.u32 2147483647, %v4732_v2  ;;  %vm1367_vm7 = vcmp.ne.f32.partialorder %v4732_v2, %v4732_v2 }
 0x222   : > { %v1432_v40 = vmul.f32 1.442695, %v1414_v10 }
 0x223   : > { %v1428_v41 = vmul.f32 1.442695, %v1412_v14  ;;  %v1397_v32 = vand.u32 2147483647, %v4735_v19  ;;  %v1415_v62 = vsub.f32 0.0, %v1399_v48  ;;  %vm1365_vm5 = vcmp.ne.f32.partialorder %v4735_v19, %v4735_v19 }
 0x224   : > { %3802 = vpow2.f32 %v1432_v40 }
 0x225   : > { %3804 = vpow2.f32 %v1428_v41  ;;  %v1413_v42 = vsub.f32 0.0, %v1397_v32  ;;  %v1434_v30 = vmul.f32 1.442695, %v1415_v62 }
 0x226   : > { %v3579_v18 = vpop.f32.mrf.mxu1  ;;  %v3795_v12 = vpop.eup %3794 }
 0x227   : > { %v1430_v35 = vmul.f32 1.442695, %v1413_v42  ;;  %3806 = vpow2.f32 %v1434_v30  ;;  %v1298_v31 = vmul.f32 %v3795_v12, %v4574_v16  ;;  %v1254_v15 = vadd.f32 1e-05, %v3579_v18 }
 0x228   : > { %v3797_v1 = vpop.eup %3796  ;;  %v1245_v43 = vpop.f32.mrf.mxu1  ;;  %v1350_v42 = vmax.f32 %v4721_v49, 0.0  ;;  %v1348_v30 = vmax.f32 %v4724_v39, 0.0 }
 0x229   : > { %3808 = vpow2.f32 %v1430_v35  ;;  %v1296_v50 = vmul.f32 %v3797_v1, %v4554_v21  ;;  %v1246_v46 = vadd.f32 1e-05, %v1245_v43  ;;  %v1318_v6 = vmul.f32 %v4708_v23, %v1298_v31 }
 0x22a   : > { %v3580_v4 = vpop.f32.mrf.mxu1 }
 0x22b   : > { %3810 = vrsqrt.f32 %v1246_v46  ;;  %v1316_v45 = vmul.f32 %v4708_v23, %v1296_v50  ;;  %v1257_v58 = vadd.f32 1e-05, %v3580_v4 }
 0x22c   : > { %v3799_v33 = vpop.eup %3798  ;;  %v1248_v47 = vpop.f32.mrf.mxu1 }
 0x22d   : > { %v1297_v3 = vmul.f32 %v3799_v33, %v4562_v22  ;;  %v1249_v24 = vadd.f32 1e-05, %v1248_v47  ;;  %v3801_v17 = vpop.eup %3800  ;;  %v4746_v16 = vadd.f32 %v4714_v51, %v1316_v45  ;;  %v4754_v22 = vadd.f32 %v4714_v51, %v1318_v6 }
 0x22e   : > { %v1299_v5 = vmul.f32 %v3801_v17, %v4582_v28 }
 0x22f   : > { %3812 = vrsqrt.f32 %v1249_v24  ;;  %v1317_v21 = vmul.f32 %v4708_v23, %v1297_v3  ;;  %v1400_v44 = vand.u32 2147483647, %v4746_v16  ;;  %v1402_v0 = vand.u32 2147483647, %v4754_v22 }
 0x230   : > { %3814 = vrsqrt.f32 %v1254_v15  ;;  %v1319_v28 = vmul.f32 %v4708_v23, %v1299_v5  ;;  %vm1368_vm8 = vcmp.ne.f32.partialorder %v4746_v16, %v4746_v16 }
 0x231   : > { %v4748_v36 = vpop.eup %3802  ;;  %3816 = vrsqrt.f32 %v1257_v58  ;;  %v4759_v57 = vadd.f32 %v4714_v51, %v1317_v21  ;;  %v1416_v48 = vsub.f32 0.0, %v1400_v44  ;;  %v1418_v18 = vsub.f32 0.0, %v1402_v0 }
 0x232   : > { %v4751_v52 = vpop.eup %3804  ;;  %v1478_v25 = vadd.f32 1.0, %v4748_v36  ;;  %v4773_v41 = vadd.f32 %v4714_v51, %v1319_v28  ;;  %v1481_v1 = vmul.f32 -0.5, %v4748_v36 }
 0x233   : > { %v1460_v8 = vadd.f32 1.0, %v4751_v52  ;;  %v1463_v11 = vmul.f32 -0.5, %v4751_v52  ;;  %v1401_v14 = vand.u32 2147483647, %v4759_v57  ;;  %v1466_v35 = vand.u32 2147483647, %v4751_v52 }
 0x234   : > { %v4762_v37 = vpop.eup %3806  ;;  %v1436_v33 = vmul.f32 1.442695, %v1416_v48  ;;  %v1403_v45 = vand.u32 2147483647, %v4773_v41  ;;  %v1440_v24 = vmul.f32 1.442695, %v1418_v18  ;;  %vm1369_vm9 = vcmp.ne.f32.partialorder %v4759_v57, %v4759_v57 }
 0x235   : > { %3818 = vlog2.f32 %v1460_v8  ;;  %v1487_v63 = vadd.f32 1.0, %v4762_v37  ;;  %v1464_v12 = vadd.f32 1.0, %v1463_v11  ;;  %v1490_v31 = vmul.f32 -0.5, %v4762_v37 }
 0x236   : > { %v4765_v56 = vpop.eup %3808  ;;  %v3583_v9 = vpop.f32.mrf.mxu1  ;;  %3820 = vlog2.f32 %v1478_v25  ;;  %v1417_v4 = vsub.f32 0.0, %v1401_v14  ;;  %v1419_v58 = vsub.f32 0.0, %v1403_v45  ;;  %vm4790_vm0 = vcmp.lt.f32.partialorder %v1466_v35, 0.0004427343 }
 0x237   : > { %v1469_v29 = vadd.f32 1.0, %v4765_v56  ;;  %3822 = vlog2.f32 %v1487_v63  ;;  %v1270_v50 = vadd.f32 1e-05, %v3583_v9  ;;  %v1472_v6 = vmul.f32 -0.5, %v4765_v56 }
 0x238   : > { %v3811_v26 = vpop.eup %3810  ;;  %v1261_v10 = vpop.f32.mrf.mxu1  ;;  %v1438_v3 = vmul.f32 1.442695, %v1417_v4  ;;  %v1442_v28 = vmul.f32 1.442695, %v1419_v58  ;;  %v1491_v0 = vadd.f32 1.0, %v1490_v31  ;;  %v1482_v35 = vadd.f32 1.0, %v1481_v1 }
 0x239   : > { %v1262_v40 = vadd.f32 1e-05, %v1261_v10  ;;  %v1300_v32 = vmul.f32 %v3811_v26, %v4594_v13  ;;  %3824 = vlog2.f32 %v1469_v29  ;;  %v1473_v10 = vadd.f32 1.0, %v1472_v6 }
 0x23a   : > { %v3584_v62 = vpop.f32.mrf.mxu1  ;;  %v1349_v1 = vmax.f32 %v4735_v19, 0.0  ;;  %vm1371_vm14 = vcmp.ne.f32.partialorder %v4773_v41, %v4773_v41 }
 0x23b   : > { %3826 = vrsqrt.f32 %v1262_v40  ;;  %v1320_v17 = vmul.f32 %v4708_v23, %v1300_v32  ;;  %v1273_v25 = vadd.f32 1e-05, %v3584_v62  ;;  %v1474_v45 = vmul.f32 %v4765_v56, %v1473_v10 }
 0x23c   : > { %v3813_v43 = vpop.eup %3812  ;;  %v1264_v46 = vpop.f32.mrf.mxu1  ;;  %3828 = vpow2.f32 %v1436_v33  ;;  %v1484_v33 = vand.u32 2147483647, %v4748_v36 }
 0x23d   : > { %v3815_v13 = vpop.eup %3814  ;;  %v1301_v15 = vmul.f32 %v3813_v43, %v4602_v34  ;;  %v1265_v47 = vadd.f32 1e-05, %v1264_v46  ;;  %v4788_v34 = vadd.f32 %v4714_v51, %v1320_v17 }
 0x23e   : > { %v3817_v5 = vpop.eup %3816  ;;  %v1302_v8 = vmul.f32 %v3815_v13, %v4612_v60  ;;  %v1465_v60 = vmul.f32 %v4751_v52, %v1464_v12  ;;  %v1475_v52 = vand.u32 2147483647, %v4765_v56  ;;  %v1351_v12 = vmax.f32 %v4732_v2, 0.0 }
 0x23f   : > { %3830 = vrsqrt.f32 %v1265_v47  ;;  %v1321_v21 = vmul.f32 %v4708_v23, %v1301_v15  ;;  %v1404_v11 = vand.u32 2147483647, %v4788_v34  ;;  %v1303_v29 = vmul.f32 %v3817_v5, %v4618_v53 }
 0x240   : > { %3832 = vpow2.f32 %v1438_v3  ;;  %v1322_v32 = vmul.f32 %v4708_v23, %v1302_v8  ;;  %v1493_v53 = vand.u32 2147483647, %v4762_v37  ;;  %v1492_v13 = vmul.f32 %v4762_v37, %v1491_v0 }
 0x241   : > { %3834 = vpow2.f32 %v1440_v24  ;;  %v4795_v9 = vadd.f32 %v4714_v51, %v1321_v21  ;;  %v1420_v40 = vsub.f32 0.0, %v1404_v11  ;;  %v1323_v15 = vmul.f32 %v4708_v23, %v1303_v29 }
 0x242   : > { %v3819_v63 = vpop.eup %3818  ;;  %3836 = vrsqrt.f32 %v1270_v50  ;;  %v4814_v24 = vadd.f32 %v4714_v51, %v1322_v32  ;;  %vm1476_vm2 = vcmp.lt.f32.partialorder %v1475_v52, 0.0004427343  ;;  %vm4817_vm3 = vcmp.lt.f32.partialorder %v1493_v53, 0.0004427343 }
 0x243   : > { %v1462_v26 = vmul.f32 0.6931472, %v3819_v63  ;;  %3838 = vpow2.f32 %v1442_v28  ;;  %v3821_v14 = vpop.eup %3820  ;;  %v1405_v48 = vand.u32 2147483647, %v4795_v9  ;;  %v1444_v46 = vmul.f32 1.442695, %v1420_v40 }
 0x244   : > { %3840 = vrsqrt.f32 %v1273_v25  ;;  %v3823_v62 = vpop.eup %3822  ;;  %v1480_v3 = vmul.f32 0.6931472, %v3821_v14  ;;  %v1483_v37 = vmul.f32 %v4748_v36, %v1482_v35  ;;  %vm4830_vm4 = vcmp.lt.f32.partialorder %v1484_v33, 0.0004427343 }
 0x245   : > { %v1468_v18 = vsel %vm4790_vm0, %v1465_v60, %v1462_v26  ;;  %v1489_v43 = vmul.f32 0.6931472, %v3823_v62  ;;  %v1421_v50 = vsub.f32 0.0, %v1405_v48  ;;  %3842 = vpow2.f32 %v1444_v46 }
 0x246   : > { %v3825_v31 = vpop.eup %3824  ;;  %v1604_v4 = vadd.f32 %v1468_v18, %v1348_v30  ;;  %v4835_v44 = vadd.f32 %v4714_v51, %v1323_v15  ;;  %v1486_v28 = vsel %vm4830_vm4, %v1483_v37, %v1480_v3  ;;  %v1406_v60 = vand.u32 2147483647, %v4814_v24 }
 0x247   : > { %v1471_v47 = vmul.f32 0.6931472, %v3825_v31  ;;  %v1495_v58 = vsel %vm4817_vm3, %v1492_v13, %v1489_v43  ;;  %v1446_v56 = vmul.f32 1.442695, %v1421_v50  ;;  %v1606_v40 = vadd.f32 %v1486_v28, %v1350_v42 }
 0x248   : > { %v3827_v30 = vpop.eup %3826  ;;  %v1620_v8 = vsel %vm1364_vm1, %v4724_v39, %v1604_v4  ;;  %v1607_v29 = vadd.f32 %v1495_v58, %v1351_v12  ;;  %v1354_v18 = vmax.f32 %v4754_v22, 0.0  ;;  %v1422_v12 = vsub.f32 0.0, %v1406_v60 }
 0x249   : > { %v1477_v6 = vsel %vm1476_vm2, %v1474_v45, %v1471_v47  ;;  %v4824_v21 = vpop.eup %3828  ;;  %v1304_v39 = vmul.f32 %v3827_v30, %v4628_v61  ;;  %3844 = vpow2.f32 %v1446_v56  ;;  %v3391_v10 = vadd.f32 -0.6931472, %v1620_v8  ;;  %v4075_v45 = vld [vmem:[%s5938_s5 + $0x30] sm:$0xff]  }
 0x24a   : > { %v1605_v5 = vadd.f32 %v1477_v6, %v1349_v1  ;;  %v1496_v63 = vadd.f32 1.0, %v4824_v21  ;;  %v1623_v43 = vsel %vm1367_vm7, %v4732_v2, %v1607_v29  ;;  %v1499_v46 = vmul.f32 -0.5, %v4824_v21 }
 0x24b   : > { %v1324_v42 = vmul.f32 %v4708_v23, %v1304_v39  ;;  %v1352_v2 = vmax.f32 %v4746_v16, 0.0  ;;  %v1353_v4 = vmax.f32 %v4759_v57, 0.0  ;;  %v3394_v15 = vadd.f32 -0.6931472, %v1623_v43  ;;  %v4077_v43 = vld [vmem:[%s5938_s5 + $0x20] sm:$0xff]  }
 0x24c   : > { %v3831_v36 = vpop.eup %3830  ;;  %v1621_v11 = vsel %vm1365_vm5, %v4735_v19, %v1605_v5  ;;  %3846 = vlog2.f32 %v1496_v63  ;;  %v1407_v19 = vand.u32 2147483647, %v4835_v44  ;;  %v1448_v47 = vmul.f32 1.442695, %v1422_v12  ;;  %v4076_v63 = vld [vmem:[%s5938_s5 + $0x28] sm:$0xff]  }
 0x24d   : > { %v4843_v0 = vpop.eup %3832  ;;  %v3392_v14 = vadd.f32 -0.6931472, %v1621_v11  ;;  %v1305_v35 = vmul.f32 %v3831_v36, %v4634_v38  ;;  %v1622_v38 = vsel %vm1366_vm6, %v4721_v49, %v1606_v40  ;;  %v1355_v49 = vmax.f32 %v4773_v41, 0.0 }
 0x24e   : > { %v4847_v26 = vpop.eup %3834  ;;  %v1505_v61 = vadd.f32 1.0, %v4843_v0  ;;  %v1423_v33 = vsub.f32 0.0, %v1407_v19  ;;  %v4884_v17 = vadd.f32 %v4714_v51, %v1324_v42  ;;  %v3393_v6 = vadd.f32 -0.6931472, %v1622_v38 }
 0x24f   : > { %v3837_v48 = vpop.eup %3836  ;;  %v1652_v62 = vpack.c.bf16 %v3392_v14, %v3391_v10  ;;  %v1514_v52 = vadd.f32 1.0, %v4847_v26  ;;  %v1325_v1 = vmul.f32 %v4708_v23, %v1305_v35  ;;  %v1508_v58 = vmul.f32 -0.5, %v4843_v0 }
 0x250   : > { %v4857_v32 = vpop.eup %3838  ;;  %3848 = vlog2.f32 %v1505_v61  ;;  %v1306_v50 = vmul.f32 %v3837_v48, %v4643_v59  ;;  %v4074_v59 = vld [vmem:[%s5938_s5 + $0x38] sm:$0xff]   ;;  %v1450_v3 = vmul.f32 1.442695, %v1423_v33  ;;  %v1517_v56 = vmul.f32 -0.5, %v4847_v26 }
 0x251   : > { %v3841_v53 = vpop.eup %3840  ;;  %1790 = vmatmul.mubr.bf16.vlgmr.msra.gmra.mxu1 %v1652_v62  ;;  %3850 = vlog2.f32 %v1514_v52  ;;  %v1523_v31 = vadd.f32 1.0, %v4857_v32  ;;  %v1653_v8 = vpack.c.bf16 %v3394_v15, %v3393_v6  ;;  %v4895_v25 = vadd.f32 %v4714_v51, %v1325_v1  ;;  %v4078_v6 = vld [vmem:[%s5938_s5 + $0x18] sm:$0xff]  }
 0x252   : > { %1799 = vmatprep.mubr.bf16.mxu1 %v5954_v54  ;;  %3618 = vmatpush3.bf16.msra.mxu1 %v4074_v59  ;;  %v1307_v13 = vmul.f32 %v3841_v53, %v4647_v27  ;;  %v4886_v30 = vpop.eup %3842  ;;  %v1500_v27 = vadd.f32 1.0, %v1499_v46  ;;  %v1326_v37 = vmul.f32 %v4708_v23, %v1306_v50  ;;  %v1408_v36 = vand.u32 2147483647, %v4884_v17 }
 0x253   : > { %3852 = vlog2.f32 %v1523_v31  ;;  %3619 = vmatprep.subr.bf16.mxu1 %v4075_v45  ;;  %v1532_v5 = vadd.f32 1.0, %v4886_v30  ;;  %v1502_v60 = vand.u32 2147483647, %v4824_v21  ;;  %v1511_v39 = vand.u32 2147483647, %v4843_v0 }
 0x254   : > { %3854 = vpow2.f32 %v1448_v47  ;;  %v1327_v28 = vmul.f32 %v4708_v23, %v1307_v13  ;;  %v4905_v11 = vadd.f32 %v4714_v51, %v1326_v37  ;;  %v1501_v10 = vmul.f32 %v4824_v21, %v1500_v27 }
 0x255   : > { %3856 = vpow2.f32 %v1450_v3  ;;  %v1526_v23 = vmul.f32 -0.5, %v4857_v32  ;;  %v1409_v14 = vand.u32 2147483647, %v4895_v25  ;;  %v1424_v48 = vsub.f32 0.0, %v1408_v36 }
 0x256   : > { %3620 = vmatpush3.bf16.msra.mxu1 %v4075_v45  ;;  %3858 = vlog2.f32 %v1532_v5  ;;  %v4907_v29 = vpop.eup %3844  ;;  %v1509_v61 = vadd.f32 1.0, %v1508_v58  ;;  %v1518_v19 = vadd.f32 1.0, %v1517_v56  ;;  %v1520_v62 = vand.u32 2147483647, %v4847_v26 }
 0x257   : > { %3621 = vmatprep.subr.bf16.mxu1 %v4076_v63  ;;  %v1541_v52 = vadd.f32 1.0, %v4907_v29  ;;  %v1425_v21 = vsub.f32 0.0, %v1409_v14  ;;  %v1452_v53 = vmul.f32 1.442695, %v1424_v48  ;;  %v4918_v35 = vadd.f32 %v4714_v51, %v1327_v28 }
 0x258   : > { %vm1503_vm10 = vcmp.lt.f32.partialorder %v1502_v60, 0.0004427343  ;;  %vm4923_vm11 = vcmp.lt.f32.partialorder %v1511_v39, 0.0004427343  ;;  %v1529_v50 = vand.u32 2147483647, %v4857_v32  ;;  %v1510_v13 = vmul.f32 %v4843_v0, %v1509_v61 }
 0x259   : > { %1800 = vmatmul.mubr.bf16.gmra.mxu1 %v1653_v8  ;;  %v3847_v40 = vpop.eup %3846  ;;  %3860 = vlog2.f32 %v1541_v52  ;;  %v1527_v38 = vadd.f32 1.0, %v1526_v23  ;;  %v1454_v33 = vmul.f32 1.442695, %v1425_v21  ;;  %v1535_v47 = vmul.f32 -0.5, %v4886_v30  ;;  %v4079_v23 = vld [vmem:[%s5938_s5 + $0x10] sm:$0xff]  }
 0x25a   : > { %1809 = vmatprep.mubr.bf16.mxu1 %v5954_v54  ;;  %3622 = vmatpush3.bf16.msra.mxu1 %v4076_v63  ;;  %v1498_v12 = vmul.f32 0.6931472, %v3847_v40  ;;  %3862 = vpow2.f32 %v1452_v53  ;;  %v1519_v3 = vmul.f32 %v4847_v26, %v1518_v19  ;;  %vm4933_vm12 = vcmp.lt.f32.partialorder %v1520_v62, 0.0004427343 }
 0x25b   : > { %3623 = vmatprep.subr.bf16.mxu1 %v4077_v43  ;;  %3864 = vpow2.f32 %v1454_v33  ;;  %v1410_v26 = vand.u32 2147483647, %v4905_v11  ;;  %v1411_v37 = vand.u32 2147483647, %v4918_v35  ;;  %v1528_v5 = vmul.f32 %v4857_v32, %v1527_v38 }
 0x25c   : > { %v1504_v31 = vsel %vm1503_vm10, %v1501_v10, %v1498_v12  ;;  %vm1530_vm13 = vcmp.lt.f32.partialorder %v1529_v50, 0.0004427343  ;;  %v1536_v28 = vadd.f32 1.0, %v1535_v47  ;;  %v1538_v63 = vand.u32 2147483647, %v4886_v30 }
 0x25d   : > { %v3849_v46 = vpop.eup %3848  ;;  %v1608_v15 = vadd.f32 %v1504_v31, %v1352_v2  ;;  %v1426_v40 = vsub.f32 0.0, %v1410_v26  ;;  %v1427_v61 = vsub.f32 0.0, %v1411_v37  ;;  %v1547_v42 = vand.u32 2147483647, %v4907_v29 }
 0x25e   : > { %v3851_v51 = vpop.eup %3850  ;;  %v1507_v59 = vmul.f32 0.6931472, %v3849_v46  ;;  %3624 = vmatpush3.bf16.msra.mxu1 %v4077_v43  ;;  %v1537_v21 = vmul.f32 %v4886_v30, %v1536_v28  ;;  %vm4976_vm15 = vcmp.lt.f32.partialorder %v1538_v63, 0.0004427343  ;;  %vm1370_vm0 = vcmp.ne.f32.partialorder %v4754_v22, %v4754_v22 }
 0x25f   : > { %v1516_v45 = vmul.f32 0.6931472, %v3851_v51  ;;  %3625 = vmatprep.subr.bf16.mxu1 %v4078_v6  ;;  %v1624_v27 = vsel %vm1368_vm8, %v4746_v16, %v1608_v15  ;;  %v1544_v16 = vmul.f32 -0.5, %v4907_v29  ;;  %v1458_v50 = vmul.f32 1.442695, %v1427_v61 }
 0x260   : > { %v3853_v0 = vpop.eup %3852  ;;  %v1513_v2 = vsel %vm4923_vm11, %v1510_v13, %v1507_v59  ;;  %v3395_v32 = vadd.f32 -0.6931472, %v1624_v27  ;;  %v1356_v38 = vmax.f32 %v4788_v34, 0.0  ;;  %v1357_v33 = vmax.f32 %v4795_v9, 0.0 }
 0x261   : > { %v1609_v58 = vadd.f32 %v1513_v2, %v1353_v4  ;;  %v1525_v56 = vmul.f32 0.6931472, %v3853_v0  ;;  %v4951_v8 = vpop.eup %3854  ;;  %v1522_v36 = vsel %vm4933_vm12, %v1519_v3, %v1516_v45  ;;  %v1545_v53 = vadd.f32 1.0, %v1544_v16 }
 0x262   : > { %3626 = vmatpush3.bf16.msra.mxu1 %v4078_v6  ;;  %v4957_v60 = vpop.eup %3856  ;;  %v1550_v10 = vadd.f32 1.0, %v4951_v8  ;;  %vm1548_vm1 = vcmp.lt.f32.partialorder %v1547_v42, 0.0004427343  ;;  %v1553_v45 = vmul.f32 -0.5, %v4951_v8  ;;  %vm1372_vm2 = vcmp.ne.f32.partialorder %v4788_v34, %v4788_v34 }
 0x263   : > { %v1625_v4 = vsel %vm1369_vm9, %v4759_v57, %v1609_v58  ;;  %v1531_v39 = vsel %vm1530_vm13, %v1528_v5, %v1525_v56  ;;  %3627 = vmatprep.subr.bf16.mxu1 %v4079_v23  ;;  %v3859_v19 = vpop.eup %3858  ;;  %v1610_v57 = vadd.f32 %v1522_v36, %v1354_v18  ;;  %v1559_v62 = vadd.f32 1.0, %v4957_v60  ;;  %v4080_v18 = vld [vmem:[%s5938_s5 + $0x8] sm:$0xff]  }
 0x264   : > { %v3396_v14 = vadd.f32 -0.6931472, %v1625_v4  ;;  %v1611_v48 = vadd.f32 %v1531_v39, %v1355_v49  ;;  %3866 = vlog2.f32 %v1550_v10  ;;  %v1534_v12 = vmul.f32 0.6931472, %v3859_v19 }
 0x265   : > { %3868 = vlog2.f32 %v1559_v62  ;;  %v1626_v31 = vsel %vm1370_vm0, %v4754_v22, %v1610_v57  ;;  %v1546_v15 = vmul.f32 %v4907_v29, %v1545_v53  ;;  %v4081_v22 = vld [vmem:[%s5938_s5] sm:$0xff]   ;;  %v1562_v29 = vmul.f32 -0.5, %v4957_v60 }
 0x266   : > { %v1654_v52 = vpack.c.bf16 %v3396_v14, %v3395_v32  ;;  %3628 = vmatpush3.bf16.msra.mxu1 %v4079_v23  ;;  %v1627_v49 = vsel %vm1371_vm14, %v4773_v41, %v1611_v48  ;;  %v1540_v30 = vsel %vm4976_vm15, %v1537_v21, %v1534_v12  ;;  %v1456_v41 = vmul.f32 1.442695, %v1426_v40  ;;  %v3861_v46 = vpop.eup %3860 }
 0x267   : > { %3629 = vmatprep.subr.bf16.mxu1 %v4080_v18  ;;  %v4992_v51 = vpop.eup %3862  ;;  %v3398_v59 = vadd.f32 -0.6931472, %v1627_v49  ;;  %v1543_v13 = vmul.f32 0.6931472, %v3861_v46  ;;  %v1612_v47 = vadd.f32 %v1540_v30, %v1356_v38  ;;  %v3397_v6 = vadd.f32 -0.6931472, %v1626_v31 }
 0x268   : > { %1810 = vmatmul.mubr.bf16.gmra.mxu1 %v1654_v52  ;;  %3870 = vpow2.f32 %v1456_v41  ;;  %v1568_v3 = vadd.f32 1.0, %v4992_v51  ;;  %v5000_v1 = vpop.eup %3864  ;;  %vm1373_vm3 = vcmp.ne.f32.partialorder %v4795_v9, %v4795_v9  ;;  %v1554_v56 = vadd.f32 1.0, %v1553_v45 }
 0x269   : > { %1819 = vmatprep.mubr.bf16.mxu1 %v5954_v54  ;;  %v1549_v0 = vsel %vm1548_vm1, %v1546_v15, %v1543_v13  ;;  %3872 = vpow2.f32 %v1458_v50  ;;  %v1577_v27 = vadd.f32 1.0, %v5000_v1  ;;  %v1655_v26 = vpack.c.bf16 %v3398_v59, %v3397_v6 }
 0x26a   : > { %3630 = vmatpush3.bf16.msra.mxu1 %v4080_v18  ;;  %v1613_v2 = vadd.f32 %v1549_v0, %v1357_v33  ;;  %3874 = vlog2.f32 %v1568_v3  ;;  %v1628_v37 = vsel %vm1372_vm2, %v4788_v34, %v1612_v47  ;;  %v1556_v36 = vand.u32 2147483647, %v4951_v8 }
 0x26b   : > { %3631 = vmatprep.subr.bf16.mxu1 %v4081_v22  ;;  %3876 = vlog2.f32 %v1577_v27  ;;  %v1563_v28 = vadd.f32 1.0, %v1562_v29  ;;  %v3399_v16 = vadd.f32 -0.6931472, %v1628_v37  ;;  %v1565_v4 = vand.u32 2147483647, %v4957_v60 }
 0x26c   : > { %v1629_v58 = vsel %vm1373_vm3, %v4795_v9, %v1613_v2  ;;  %v1555_v39 = vmul.f32 %v4951_v8, %v1554_v56  ;;  %v1571_v34 = vmul.f32 -0.5, %v4992_v51  ;;  %v1358_v23 = vmax.f32 %v4814_v24, 0.0 }
 0x26d   : > { %v3400_v5 = vadd.f32 -0.6931472, %v1629_v58  ;;  %vm1557_vm4 = vcmp.lt.f32.partialorder %v1556_v36, 0.0004427343  ;;  %v1564_v40 = vmul.f32 %v4957_v60, %v1563_v28  ;;  %v1580_v61 = vmul.f32 -0.5, %v5000_v1 }
 0x26e   : > { %3632 = vmatpush3.bf16.msra.mxu1 %v4081_v22  ;;  %v1359_v19 = vmax.f32 %v4835_v44, 0.0  ;;  %vm1566_vm5 = vcmp.lt.f32.partialorder %v1565_v4, 0.0004427343  ;;  %v1572_v8 = vadd.f32 1.0, %v1571_v34  ;;  %vm1374_vm6 = vcmp.ne.f32.partialorder %v4814_v24, %v4814_v24 }
 0x26f   : > { %v1656_v9 = vpack.c.bf16 %v3400_v5, %v3399_v16  ;;  %v1574_v21 = vand.u32 2147483647, %v4992_v51  ;;  %vm1375_vm7 = vcmp.ne.f32.partialorder %v4835_v44, %v4835_v44  ;;  %v1581_v43 = vadd.f32 1.0, %v1580_v61 }
 0x270   : > { %1820 = vmatmul.mubr.bf16.gmra.mxu1 %v1655_v26  ;;  %v1583_v30 = vand.u32 2147483647, %v5000_v1  ;;  %v1573_v31 = vmul.f32 %v4992_v51, %v1572_v8  ;;  %v1360_v59 = vmax.f32 %v4884_v17, 0.0  ;;  %vm1376_vm10 = vcmp.ne.f32.partialorder %v4884_v17, %v4884_v17 }
 0x271   : > { %1829 = vmatprep.mubr.bf16.mxu1 %v5954_v54  ;;  %v3867_v63 = vpop.eup %3866  ;;  %vm1575_vm8 = vcmp.lt.f32.partialorder %v1574_v21, 0.0004427343  ;;  %v1582_v15 = vmul.f32 %v5000_v1, %v1581_v43  ;;  %vm1377_vm11 = vcmp.ne.f32.partialorder %v4895_v25, %v4895_v25  ;;  %vm1378_vm14 = vcmp.ne.f32.partialorder %v4905_v11, %v4905_v11 }
 0x272   : > { %v1552_v32 = vmul.f32 0.6931472, %v3867_v63  ;;  %v3869_v10 = vpop.eup %3868  ;;  %vm1584_vm9 = vcmp.lt.f32.partialorder %v1583_v30, 0.0004427343  ;;  %v1362_v63 = vmax.f32 %v4905_v11, 0.0  ;;  %vm1379_vm15 = vcmp.ne.f32.partialorder %v4918_v35, %v4918_v35 }
 0x273   : > { %v1561_v48 = vmul.f32 0.6931472, %v3869_v10  ;;  %v1892_v61 = vsub.s32 5, %v5956_v7 }
 0x274   : > { %v1558_v14 = vsel %vm1557_vm4, %v1555_v39, %v1552_v32  ;;  %v1363_v32 = vmax.f32 %v4918_v35, 0.0 }
 0x275   : > { %v1614_v57 = vadd.f32 %v1558_v14, %v1358_v23  ;;  %v3871_v62 = vpop.eup %3870  ;;  %v1567_v52 = vsel %vm1566_vm5, %v1564_v40, %v1561_v48 }
 0x276   : > { %v1615_v12 = vadd.f32 %v1567_v52, %v1359_v19  ;;  %v1586_v53 = vadd.f32 1.0, %v3871_v62  ;;  %v3873_v49 = vpop.eup %3872  ;;  %v1589_v6 = vmul.f32 -0.5, %v3871_v62  ;;  %v1592_v37 = vand.u32 2147483647, %v3871_v62 }
 0x277   : > { %v1630_v60 = vsel %vm1374_vm6, %v4814_v24, %v1614_v57  ;;  %v3875_v42 = vpop.eup %3874  ;;  %v1595_v41 = vadd.f32 1.0, %v3873_v49  ;;  %v1598_v0 = vmul.f32 -0.5, %v3873_v49  ;;  %v1601_v5 = vand.u32 2147483647, %v3873_v49  ;;  %v5053_v57 = vld [vmem:[%s5937_s4] sm:$0xff] }
 0x278   : > { %1830 = vmatmul.mubr.bf16.gmra.mxu1 %v1656_v9  ;;  %v1631_v18 = vsel %vm1375_vm7, %v4835_v44, %v1615_v12  ;;  %3878 = vlog2.f32 %v1586_v53  ;;  %v1570_v46 = vmul.f32 0.6931472, %v3875_v42  ;;  %v3877_v38 = vpop.eup %3876  ;;  %v3401_v33 = vadd.f32 -0.6931472, %v1630_v60 }
 0x279   : > { %1839 = vmatprep.mubr.bf16.mxu1 %v5954_v54  ;;  %v3402_v50 = vadd.f32 -0.6931472, %v1631_v18  ;;  %3880 = vlog2.f32 %v1595_v41  ;;  %v1579_v24 = vmul.f32 0.6931472, %v3877_v38  ;;  %v1361_v44 = vmax.f32 %v4895_v25, 0.0 }
 0x27a   : > { %v1576_v13 = vsel %vm1575_vm8, %v1573_v31, %v1570_v46  ;;  %v1590_v27 = vadd.f32 1.0, %v1589_v6  ;;  %v1599_v58 = vadd.f32 1.0, %v1598_v0  ;;  %vm1593_vm12 = vcmp.lt.f32.partialorder %v1592_v37, 0.0004427343 }
 0x27b   : > { %v1657_v47 = vpack.c.bf16 %v3402_v50, %v3401_v33  ;;  %v1616_v45 = vadd.f32 %v1576_v13, %v1360_v59  ;;  %v1585_v3 = vsel %vm1584_vm9, %v1582_v15, %v1579_v24  ;;  %vm1602_vm13 = vcmp.lt.f32.partialorder %v1601_v5, 0.0004427343 }
 0x27c   : > { %v1617_v51 = vadd.f32 %v1585_v3, %v1361_v44  ;;  %v1600_v4 = vmul.f32 %v3873_v49, %v1599_v58  ;;  %v1872_v19 = vsub.s32 4, %v5956_v7 }
 0x27d   : > { %v1632_v22 = vsel %vm1376_vm10, %v4884_v17, %v1616_v45  ;;  %v1591_v17 = vmul.f32 %v3871_v62, %v1590_v27 }
 0x27e   : > { %v1633_v1 = vsel %vm1377_vm11, %v4895_v25, %v1617_v51  ;;  %v3403_v2 = vadd.f32 -0.6931472, %v1632_v22  ;;  %v5059_v52 = vrot.slane %v5053_v57, %v1872_v19 }
 0x27f   : > { %v3404_v29 = vadd.f32 -0.6931472, %v1633_v1 }
 0x280   : > { %1840 = vmatmul.mubr.bf16.gmra.mxu1 %v1657_v47 }
 0x281   : > { %1849 = vmatprep.mubr.bf16.mxu1 %v5954_v54  ;;  %v1658_v26 = vpack.c.bf16 %v3404_v29, %v3403_v2 }
 0x285   : > { %v3879_v56 = vpop.eup %3878 }
 0x286   : > { %v1588_v36 = vmul.f32 0.6931472, %v3879_v56  ;;  %v3881_v28 = vpop.eup %3880 }
 0x287   : > { %v1597_v25 = vmul.f32 0.6931472, %v3881_v28 }
 0x288   : > { %1850 = vmatmul.mubr.bf16.gmra.mxu1 %v1658_v26  ;;  %v1594_v16 = vsel %vm1593_vm12, %v1591_v17, %v1588_v36 }
 0x289   : > { %1859 = vmatprep.mubr.bf16.mxu1 %v5954_v54  ;;  %v1618_v39 = vadd.f32 %v1594_v16, %v1362_v63  ;;  %v1603_v34 = vsel %vm1602_vm13, %v1600_v4, %v1597_v25 }
 0x28a   : > { %v1619_v10 = vadd.f32 %v1603_v34, %v1363_v32 }
 0x28b   : > { %v1634_v9 = vsel %vm1378_vm14, %v4905_v11, %v1618_v39  ;;  %v5056_v11 = vrot.slane %v5053_v57, %v1892_v61 }
 0x28c   : > { %v1635_v23 = vsel %vm1379_vm15, %v4918_v35, %v1619_v10  ;;  %v3405_v14 = vadd.f32 -0.6931472, %v1634_v9 }
 0x28d   : > { %v3406_v48 = vadd.f32 -0.6931472, %v1635_v23 }
 0x28f   : > { %v1659_v40 = vpack.c.bf16 %v3406_v48, %v3405_v14 }
 0x291   : > { %1860 = vmatmul.mubr.bf16.gmra.mxu1 %v1659_v40 }
 0x311   : > { %v1791_v62 = vpop.f32.mrf.mxu1 }
 0x312   : > { %v1874_v21 = vadd.f32 %v5059_v52, %v1791_v62 }
 0x313   : > { %v1793_v35 = vpop.f32.mrf.mxu1 }
 0x314   : > { %v1894_v8 = vadd.f32 %v5056_v11, %v1793_v35 }
 0x315   : > { %v1795_v12 = vpop.f32.mrf.mxu1 }
 0x316   : > { %v5063_v49 = vsub.f32 %v1874_v21, %v1894_v8  ;;  %v1875_v60 = vadd.f32 %v5059_v52, %v1795_v12 }
 0x317   : > { %v1797_v53 = vpop.f32.mrf.mxu1 }
 0x318   : > { %v1895_v43 = vadd.f32 %v5056_v11, %v1797_v53  ;;  %v1926_v41 = vmul.f32 %v5063_v49, %v5063_v49 }
 0x319   : > { %v1801_v42 = vpop.f32.mrf.mxu1 }
 0x31a   : > { %v5067_v18 = vsub.f32 %v1875_v60, %v1895_v43  ;;  %v1876_v38 = vadd.f32 %v5059_v52, %v1801_v42 }
 0x31b   : > { %v1803_v30 = vpop.f32.mrf.mxu1 }
 0x31c   : > { %v1927_v50 = vmul.f32 %v5067_v18, %v5067_v18  ;;  %v1896_v46 = vadd.f32 %v5056_v11, %v1803_v30 }
 0x31d   : > { %v1805_v31 = vpop.f32.mrf.mxu1 }
 0x31e   : > { %v1942_v33 = vpack.c.bf16 %v1927_v50, %v1926_v41  ;;  %v5075_v13 = vsub.f32 %v1876_v38, %v1896_v46  ;;  %v1877_v24 = vadd.f32 %v5059_v52, %v1805_v31 }
 0x31f   : > { %v1807_v59 = vpop.f32.mrf.mxu1 }
 0x320   : > { %v1897_v15 = vadd.f32 %v5056_v11, %v1807_v59  ;;  %3601 = vmatprep.mubr.bf16.mxu0 %v1942_v33  ;;  %v1928_v44 = vmul.f32 %v5075_v13, %v5075_v13 }
 0x322   : > { %v5079_v47 = vsub.f32 %v1877_v24, %v1897_v15 }
 0x324   : > { %v1929_v45 = vmul.f32 %v5079_v47, %v5079_v47 }
 0x326   : > { %v1943_v3 = vpack.c.bf16 %v1929_v45, %v1928_v44 }
 0x328   : > { %v1811_v51 = vpop.f32.mrf.mxu1  ;;  %3602 = vmatmul.mubr.bf16.vlgmr.msra.gmra.mxu0 %v1943_v3 }
 0x329   : > { %v1878_v0 = vadd.f32 %v5059_v52, %v1811_v51 }
 0x32a   : > { %v1813_v22 = vpop.f32.mrf.mxu1 }
 0x32b   : > { %v1898_v6 = vadd.f32 %v5056_v11, %v1813_v22 }
 0x32c   : > { %v1815_v1 = vpop.f32.mrf.mxu1 }
 0x32d   : > { %v5087_v29 = vsub.f32 %v1878_v0, %v1898_v6  ;;  %v1879_v27 = vadd.f32 %v5059_v52, %v1815_v1 }
 0x32e   : > { %v1817_v2 = vpop.f32.mrf.mxu1 }
 0x32f   : > { %v1899_v26 = vadd.f32 %v5056_v11, %v1817_v2  ;;  %v1930_v5 = vmul.f32 %v5087_v29, %v5087_v29 }
 0x330   : > { %v1821_v37 = vpop.f32.mrf.mxu1 }
 0x331   : > { %v5091_v58 = vsub.f32 %v1879_v27, %v1899_v26  ;;  %v1880_v63 = vadd.f32 %v5059_v52, %v1821_v37 }
 0x332   : > { %v1823_v56 = vpop.f32.mrf.mxu1 }
 0x333   : > { %v1931_v36 = vmul.f32 %v5091_v58, %v5091_v58  ;;  %v1900_v17 = vadd.f32 %v5056_v11, %v1823_v56 }
 0x334   : > { %v1825_v28 = vpop.f32.mrf.mxu1 }
 0x335   : > { %v1944_v16 = vpack.c.bf16 %v1931_v36, %v1930_v5  ;;  %v5099_v4 = vsub.f32 %v1880_v63, %v1900_v17  ;;  %v1881_v32 = vadd.f32 %v5059_v52, %v1825_v28 }
 0x336   : > { %v1827_v25 = vpop.f32.mrf.mxu1 }
 0x337   : > { %v1901_v39 = vadd.f32 %v5056_v11, %v1827_v25  ;;  %3605 = vmatprep.mubr.bf16.mxu0 %v1944_v16  ;;  %v1932_v23 = vmul.f32 %v5099_v4, %v5099_v4 }
 0x338   : > { %v1831_v34 = vpop.f32.mrf.mxu1 }
 0x339   : > { %v5103_v10 = vsub.f32 %v1881_v32, %v1901_v39  ;;  %v1882_v61 = vadd.f32 %v5059_v52, %v1831_v34 }
 0x33a   : > { %v1833_v9 = vpop.f32.mrf.mxu1 }
 0x33b   : > { %v1933_v14 = vmul.f32 %v5103_v10, %v5103_v10  ;;  %v1902_v48 = vadd.f32 %v5056_v11, %v1833_v9 }
 0x33c   : > { %v1835_v40 = vpop.f32.mrf.mxu1 }
 0x33d   : > { %v1945_v19 = vpack.c.bf16 %v1933_v14, %v1932_v23  ;;  %v5111_v35 = vsub.f32 %v1882_v61, %v1902_v48  ;;  %v1883_v8 = vadd.f32 %v5059_v52, %v1835_v40  ;;  %v3762_v61 = vld [vmem:[%s5936_s3 + $0x270] ss:$8 sps:$4 sm:$0xff]  }
 0x33e   : > { %v1837_v62 = vpop.f32.mrf.mxu1 }
 0x33f   : > { %v1903_v12 = vadd.f32 %v5056_v11, %v1837_v62  ;;  %3606 = vmatmul.mubr.bf16.gmra.mxu0 %v1945_v19  ;;  %v1934_v43 = vmul.f32 %v5111_v35, %v5111_v35  ;;  %v3765_v19 = vld [vmem:[%s5936_s3 + $0x260] ss:$8 sps:$4 sm:$0xff]   ;;  %v3770_v62 = vld [vmem:[%s5936_s3 + $0x254] ss:$8 sps:$4 sm:$0xff]  }
 0x340   : > { %v1841_v21 = vpop.f32.mrf.mxu1 }
 0x341   : > { %v5115_v53 = vsub.f32 %v1883_v8, %v1903_v12  ;;  %v1884_v50 = vadd.f32 %v5059_v52, %v1841_v21  ;;  %v3768_v8 = vld [vmem:[%s5936_s3 + $0x250] ss:$8 sps:$4 sm:$0xff]   ;;  %v3773_v12 = vld [vmem:[%s5936_s3 + $0x244] ss:$8 sps:$4 sm:$0xff]   ;;  %v3771_v21 = vld [vmem:[%s5936_s3 + $0x240] ss:$8 sps:$4 sm:$0xff]  }
 0x342   : > { %v1843_v60 = vpop.f32.mrf.mxu1 }
 0x343   : > { %v1935_v42 = vmul.f32 %v5115_v53, %v5115_v53  ;;  %v1904_v30 = vadd.f32 %v5056_v11, %v1843_v60  ;;  %v3776_v60 = vld [vmem:[%s5936_s3 + $0x234] ss:$8 sps:$4 sm:$0xff]  }
 0x344   : > { %v1845_v41 = vpop.f32.mrf.mxu1 }
 0x345   : > { %v1946_v46 = vpack.c.bf16 %v1935_v42, %v1934_v43  ;;  %v5123_v38 = vsub.f32 %v1884_v50, %v1904_v30  ;;  %v1885_v33 = vadd.f32 %v5059_v52, %v1845_v41  ;;  %v3774_v43 = vld [vmem:[%s5936_s3 + $0x230] ss:$8 sps:$4 sm:$0xff]   ;;  %v3779_v42 = vld [vmem:[%s5936_s3 + $0x224] ss:$8 sps:$4 sm:$0xff]   ;;  %v3777_v30 = vld [vmem:[%s5936_s3 + $0x220] ss:$8 sps:$4 sm:$0xff]  }
 0x346   : > { %v1847_v31 = vpop.f32.mrf.mxu1  ;;  %v3782_v41 = vld [vmem:[%s5936_s3 + $0x214] ss:$8 sps:$4 sm:$0xff]   ;;  %v3780_v50 = vld [vmem:[%s5936_s3 + $0x210] ss:$8 sps:$4 sm:$0xff]  }
 0x347   : > { %v1905_v59 = vadd.f32 %v5056_v11, %v1847_v31  ;;  %3609 = vmatprep.mubr.bf16.mxu0 %v1946_v46  ;;  %v1936_v45 = vmul.f32 %v5123_v38, %v5123_v38  ;;  %v3785_v46 = vld [vmem:[%s5936_s3 + $0x204] ss:$8 sps:$4 sm:$0xff]   ;;  %v3783_v31 = vld [vmem:[%s5936_s3 + $0x200] ss:$8 sps:$4 sm:$0xff]  }
 0x348   : > { %v1851_v24 = vpop.f32.mrf.mxu1 }
 0x349   : > { %v5127_v15 = vsub.f32 %v1885_v33, %v1905_v59  ;;  %v1886_v6 = vadd.f32 %v5059_v52, %v1851_v24 }
 0x34a   : > { %v1853_v44 = vpop.f32.mrf.mxu1 }
 0x34b   : > { %v1937_v3 = vmul.f32 %v5127_v15, %v5127_v15  ;;  %v1906_v51 = vadd.f32 %v5056_v11, %v1853_v44 }
 0x34c   : > { %v1855_v22 = vpop.f32.mrf.mxu1 }
 0x34d   : > { %v1947_v1 = vpack.c.bf16 %v1937_v3, %v1936_v45  ;;  %v5135_v2 = vsub.f32 %v1886_v6, %v1906_v51  ;;  %v1887_v27 = vadd.f32 %v5059_v52, %v1855_v22  ;;  %v2081_v6 = vsub.s32 6, %v5956_v7 }
 0x34e   : > { %v1857_v0 = vpop.f32.mrf.mxu1 }
 0x34f   : > { %v1907_v26 = vadd.f32 %v5056_v11, %v1857_v0  ;;  %3610 = vmatmul.mubr.bf16.gmra.mxu0 %v1947_v1  ;;  %v1938_v56 = vmul.f32 %v5135_v2, %v5135_v2  ;;  %v2101_v1 = vsub.s32 7, %v5956_v7  ;;  %v5209_v0 = vrot.slane %v5053_v57, %v2081_v6 }
 0x351   : > { %v5139_v37 = vsub.f32 %v1887_v27, %v1907_v26  ;;  %v1861_v36 = vpop.f32.mrf.mxu1 }
 0x352   : > { %v1888_v25 = vadd.f32 %v5059_v52, %v1861_v36 }
 0x353   : > { %v1939_v5 = vmul.f32 %v5139_v37, %v5139_v37  ;;  %v1863_v28 = vpop.f32.mrf.mxu1 }
 0x354   : > { %v1908_v63 = vadd.f32 %v5056_v11, %v1863_v28 }
 0x355   : > { %v1948_v17 = vpack.c.bf16 %v1939_v5, %v1938_v56  ;;  %v1865_v16 = vpop.f32.mrf.mxu1  ;;  %v5213_v56 = vrot.slane %v5053_v57, %v2101_v1 }
 0x356   : > { %v5147_v39 = vsub.f32 %v1888_v25, %v1908_v63  ;;  %v1889_v34 = vadd.f32 %v5059_v52, %v1865_v16  ;;  %v3767_v52 = vld [vmem:[%s5936_s3 + $0x264] ss:$8 sps:$4 sm:$0xff]  }
 0x357   : > { %3613 = vmatprep.mubr.bf16.mxu0 %v1948_v17  ;;  %v1867_v32 = vpop.f32.mrf.mxu1 }
 0x358   : > { %v1909_v9 = vadd.f32 %v5056_v11, %v1867_v32  ;;  %v1940_v14 = vmul.f32 %v5147_v39, %v5147_v39  ;;  %v3764_v11 = vld [vmem:[%s5936_s3 + $0x274] ss:$8 sps:$4 sm:$0xff]  }
 0x359   : > { %2528 = vmatprep.subr.bf16.mxu0 %v3764_v11 }
 0x35a   : > { %v5151_v23 = vsub.f32 %v1889_v34, %v1909_v9  ;;  %2529 = vmatpush1.bf16.msra.mxu0 %v3762_v61 }
 0x35b   : > { %2530 = vmatprep.subr.bf16.mxu0 %v3767_v52 }
 0x35c   : > { %v1941_v48 = vmul.f32 %v5151_v23, %v5151_v23 }
 0x35e   : > { %v1949_v40 = vpack.c.bf16 %v1941_v48, %v1940_v14  ;;  %2531 = vmatpush1.bf16.msra.mxu0 %v3765_v19 }
 0x35f   : > { %2532 = vmatprep.subr.bf16.mxu0 %v3770_v62 }
 0x360   : > { %3614 = vmatmul.mubr.bf16.gmra.mxu0 %v1949_v40 }
 0x361   : > { %2560 = vmatprep.mubr.bf16.mxu0 %v5954_v54 }
 0x362   : > { %2533 = vmatpush1.bf16.msra.mxu0 %v3768_v8 }
 0x363   : > { %2534 = vmatprep.subr.bf16.mxu0 %v3773_v12 }
 0x366   : > { %2535 = vmatpush1.bf16.msra.mxu0 %v3771_v21 }
 0x367   : > { %2536 = vmatprep.subr.bf16.mxu0 %v3776_v60 }
 0x36a   : > { %2537 = vmatpush1.bf16.msra.mxu0 %v3774_v43 }
 0x36b   : > { %2538 = vmatprep.subr.bf16.mxu0 %v3779_v42 }
 0x36e   : > { %2539 = vmatpush1.bf16.msra.mxu0 %v3777_v30 }
 0x36f   : > { %2540 = vmatprep.subr.bf16.mxu0 %v3782_v41 }
 0x372   : > { %2541 = vmatpush1.bf16.msra.mxu0 %v3780_v50 }
 0x373   : > { %2542 = vmatprep.subr.bf16.mxu0 %v3785_v46 }
 0x376   : > { %2543 = vmatpush1.bf16.msra.mxu0 %v3783_v31 }
 0x3e8   : > { %v3603_v33 = vpop.f32.mrf.mxu0 }
 0x3e9   : > { %v1993_v59 = vadd.f32 1e-05, %v3603_v33 }
 0x3ea   : > { %v1984_v24 = vpop.f32.mrf.mxu0 }
 0x3eb   : > { %3882 = vrsqrt.f32 %v1993_v59  ;;  %v1985_v44 = vadd.f32 1e-05, %v1984_v24 }
 0x3ec   : > { %v3604_v45 = vpop.f32.mrf.mxu0 }
 0x3ed   : > { %3884 = vrsqrt.f32 %v1985_v44  ;;  %v1996_v3 = vadd.f32 1e-05, %v3604_v45 }
 0x3ee   : > { %v1987_v51 = vpop.f32.mrf.mxu0 }
 0x3ef   : > { %3886 = vrsqrt.f32 %v1996_v3  ;;  %v1988_v22 = vadd.f32 1e-05, %v1987_v51 }
 0x3f1   : > { %3888 = vrsqrt.f32 %v1988_v22 }
 0x3f8   : > { %v3883_v27 = vpop.eup %3882 }
 0x3f9   : > { %v2065_v26 = vmul.f32 %v3883_v27, %v5075_v13 }
 0x3fa   : > { %v3885_v5 = vpop.eup %3884 }
 0x3fb   : > { %v2063_v36 = vmul.f32 %v3885_v5, %v5063_v49  ;;  %v2085_v17 = vmul.f32 %v5209_v0, %v2065_v26 }
 0x3fc   : > { %v3887_v28 = vpop.eup %3886 }
 0x3fd   : > { %v2083_v63 = vmul.f32 %v5209_v0, %v2063_v36  ;;  %v2066_v16 = vmul.f32 %v3887_v28, %v5079_v47  ;;  %v5220_v25 = vadd.f32 %v5213_v56, %v2085_v17 }
 0x3fe   : > { %v3889_v32 = vpop.eup %3888 }
 0x3ff   : > { %v5223_v34 = vadd.f32 %v5213_v56, %v2083_v63  ;;  %v2064_v57 = vmul.f32 %v3889_v32, %v5067_v18  ;;  %v3607_v13 = vpop.f32.mrf.mxu0  ;;  %v2086_v9 = vmul.f32 %v5209_v0, %v2066_v16  ;;  %v2169_v14 = vand.u32 2147483647, %v5220_v25 }
 0x400   : > { %v2009_v49 = vadd.f32 1e-05, %v3607_v13  ;;  %vm2137_vm6 = vcmp.ne.f32.partialorder %v5220_v25, %v5220_v25 }
 0x401   : > { %v2167_v48 = vand.u32 2147483647, %v5223_v34  ;;  %v2084_v40 = vmul.f32 %v5209_v0, %v2064_v57  ;;  %v2000_v47 = vpop.f32.mrf.mxu0  ;;  %v5231_v11 = vadd.f32 %v5213_v56, %v2086_v9  ;;  %v2185_v52 = vsub.f32 0.0, %v2169_v14 }
 0x402   : > { %v2001_v61 = vadd.f32 1e-05, %v2000_v47  ;;  %3890 = vrsqrt.f32 %v2009_v49  ;;  %vm2135_vm1 = vcmp.ne.f32.partialorder %v5223_v34, %v5223_v34 }
 0x403   : > { %v2183_v19 = vsub.f32 0.0, %v2167_v48  ;;  %v5234_v62 = vadd.f32 %v5213_v56, %v2084_v40  ;;  %v3608_v18 = vpop.f32.mrf.mxu0  ;;  %v2170_v42 = vand.u32 2147483647, %v5231_v11  ;;  %v2203_v30 = vmul.f32 1.442695, %v2185_v52 }
 0x404   : > { %3892 = vrsqrt.f32 %v2001_v61  ;;  %v2012_v21 = vadd.f32 1e-05, %v3608_v18  ;;  %vm2138_vm7 = vcmp.ne.f32.partialorder %v5231_v11, %v5231_v11 }
 0x405   : > { %v2199_v8 = vmul.f32 1.442695, %v2183_v19  ;;  %v2168_v12 = vand.u32 2147483647, %v5234_v62  ;;  %v2003_v60 = vpop.f32.mrf.mxu0  ;;  %v2186_v50 = vsub.f32 0.0, %v2170_v42  ;;  %v2119_v19 = vmax.f32 %v5223_v34, 0.0 }
 0x406   : > { %v2004_v43 = vadd.f32 1e-05, %v2003_v60  ;;  %vm2136_vm5 = vcmp.ne.f32.partialorder %v5234_v62, %v5234_v62 }
 0x407   : > { %3894 = vpow2.f32 %v2199_v8  ;;  %v2184_v41 = vsub.f32 0.0, %v2168_v12  ;;  %v2205_v31 = vmul.f32 1.442695, %v2186_v50  ;;  %v2122_v12 = vmax.f32 %v5231_v11, 0.0 }
 0x408   : > { %3896 = vrsqrt.f32 %v2004_v43 }
 0x409   : > { %v2201_v46 = vmul.f32 1.442695, %v2184_v41  ;;  %3898 = vpow2.f32 %v2203_v30 }
 0x40a   : > { %3900 = vrsqrt.f32 %v2012_v21 }
 0x40b   : > { %3902 = vpow2.f32 %v2201_v46 }
 0x40c   : > { %3904 = vpow2.f32 %v2205_v31 }
 0x40f   : > { %v3611_v33 = vpop.f32.mrf.mxu0  ;;  %v3891_v59 = vpop.eup %3890 }
 0x410   : > { %v2069_v6 = vmul.f32 %v3891_v59, %v5099_v4  ;;  %v2025_v13 = vadd.f32 1e-05, %v3611_v33  ;;  %v2120_v33 = vmax.f32 %v5234_v62, 0.0 }
 0x411   : > { %v3893_v24 = vpop.eup %3892  ;;  %v2016_v44 = vpop.f32.mrf.mxu0 }
 0x412   : > { %v2067_v45 = vmul.f32 %v3893_v24, %v5087_v29  ;;  %v2017_v3 = vadd.f32 1e-05, %v2016_v44  ;;  %v2089_v4 = vmul.f32 %v5209_v0, %v2069_v6 }
 0x413   : > { %v3612_v51 = vpop.f32.mrf.mxu0 }
 0x414   : > { %v3895_v22 = vpop.eup %3894  ;;  %3906 = vrsqrt.f32 %v2017_v3  ;;  %v2087_v28 = vmul.f32 %v5209_v0, %v2067_v45  ;;  %v2028_v9 = vadd.f32 1e-05, %v3612_v51  ;;  %v5258_v52 = vadd.f32 %v5213_v56, %v2089_v4 }
 0x415   : > { %v3897_v1 = vpop.eup %3896  ;;  %v2019_v27 = vpop.f32.mrf.mxu0  ;;  %v2231_v26 = vadd.f32 1.0, %v3895_v22  ;;  %v2237_v18 = vand.u32 2147483647, %v3895_v22 }
 0x416   : > { %v3899_v5 = vpop.eup %3898  ;;  %v2068_v36 = vmul.f32 %v3897_v1, %v5091_v58  ;;  %v2020_v17 = vadd.f32 1e-05, %v2019_v27  ;;  %v2234_v58 = vmul.f32 -0.5, %v3895_v22  ;;  %v5251_v48 = vadd.f32 %v5213_v56, %v2087_v28 }
 0x417   : > { %v3901_v63 = vpop.eup %3900  ;;  %3908 = vlog2.f32 %v2231_v26  ;;  %v2249_v16 = vadd.f32 1.0, %v3899_v5  ;;  %v2252_v47 = vmul.f32 -0.5, %v3899_v5  ;;  %v2255_v60 = vand.u32 2147483647, %v3899_v5 }
 0x418   : > { %v5242_v32 = vpop.eup %3902  ;;  %3910 = vrsqrt.f32 %v2020_v17  ;;  %v2088_v29 = vmul.f32 %v5209_v0, %v2068_v36  ;;  %v2070_v40 = vmul.f32 %v3901_v63, %v5103_v10  ;;  %v2235_v8 = vadd.f32 1.0, %v2234_v58 }
 0x419   : > { %v5246_v57 = vpop.eup %3904  ;;  %v2240_v49 = vadd.f32 1.0, %v5242_v32  ;;  %3912 = vlog2.f32 %v2249_v16  ;;  %v2171_v21 = vand.u32 2147483647, %v5251_v48  ;;  %v2243_v10 = vmul.f32 -0.5, %v5242_v32 }
 0x41a   : > { %v2258_v14 = vadd.f32 1.0, %v5246_v57  ;;  %v5255_v61 = vadd.f32 %v5213_v56, %v2088_v29  ;;  %v2090_v42 = vmul.f32 %v5209_v0, %v2070_v40  ;;  %v2246_v30 = vand.u32 2147483647, %v5242_v32 }
 0x41b   : > { %3914 = vlog2.f32 %v2240_v49  ;;  %v2253_v41 = vadd.f32 1.0, %v2252_v47  ;;  %v2187_v50 = vsub.f32 0.0, %v2171_v21  ;;  %v2173_v46 = vand.u32 2147483647, %v5258_v52 }
 0x41c   : > { %3916 = vlog2.f32 %v2258_v14  ;;  %v2172_v43 = vand.u32 2147483647, %v5255_v61  ;;  %vm5269_vm0 = vcmp.lt.f32.partialorder %v2237_v18, 0.0004427343  ;;  %v5274_v44 = vadd.f32 %v5213_v56, %v2090_v42 }
 0x41d   : > { %3918 = vrsqrt.f32 %v2025_v13  ;;  %v2236_v3 = vmul.f32 %v3895_v22, %v2235_v8  ;;  %v2207_v51 = vmul.f32 1.442695, %v2187_v50  ;;  %v2189_v6 = vsub.f32 0.0, %v2173_v46 }
 0x41e   : > { %3920 = vrsqrt.f32 %v2028_v9  ;;  %v2188_v24 = vsub.f32 0.0, %v2172_v43  ;;  %v2244_v27 = vadd.f32 1.0, %v2243_v10  ;;  %vm5279_vm2 = vcmp.lt.f32.partialorder %v2255_v60, 0.0004427343 }
 0x41f   : > { %v2261_v36 = vmul.f32 -0.5, %v5246_v57  ;;  %v2174_v28 = vand.u32 2147483647, %v5274_v44  ;;  %vm5285_vm3 = vcmp.lt.f32.partialorder %v2246_v30, 0.0004427343  ;;  %v2254_v22 = vmul.f32 %v3899_v5, %v2253_v41 }
 0x420   : > { %v3615_v1 = vpop.f32.mrf.mxu0  ;;  %v2209_v17 = vmul.f32 1.442695, %v2188_v24  ;;  %3922 = vpow2.f32 %v2207_v51  ;;  %v2211_v16 = vmul.f32 1.442695, %v2189_v6  ;;  %v2264_v9 = vand.u32 2147483647, %v5246_v57 }
 0x421   : > { %v3907_v31 = vpop.eup %3906  ;;  %v2190_v49 = vsub.f32 0.0, %v2174_v28  ;;  %v2041_v14 = vadd.f32 1e-05, %v3615_v1  ;;  %v2262_v21 = vadd.f32 1.0, %v2261_v36  ;;  %v2245_v46 = vmul.f32 %v5242_v32, %v2244_v27 }
 0x422   : > { %v2071_v45 = vmul.f32 %v3907_v31, %v5111_v35  ;;  %v2032_v4 = vpop.f32.mrf.mxu0  ;;  %3924 = vpow2.f32 %v2209_v17  ;;  %vm5296_vm4 = vcmp.lt.f32.partialorder %v2264_v9, 0.0004427343  ;;  %v2121_v17 = vmax.f32 %v5220_v25, 0.0 }
 0x423   : > { %v2033_v40 = vadd.f32 1e-05, %v2032_v4  ;;  %3926 = vpow2.f32 %v2211_v16  ;;  %v2213_v10 = vmul.f32 1.442695, %v2190_v49  ;;  %v2263_v32 = vmul.f32 %v5246_v57, %v2262_v21 }
 0x424   : > { %v3909_v63 = vpop.eup %3908  ;;  %v2091_v47 = vmul.f32 %v5209_v0, %v2071_v45  ;;  %v3616_v8 = vpop.f32.mrf.mxu0  ;;  %vm2139_vm9 = vcmp.ne.f32.partialorder %v5251_v48, %v5251_v48  ;;  %vm2140_vm10 = vcmp.ne.f32.partialorder %v5255_v61, %v5255_v61  ;;  %vm2142_vm14 = vcmp.ne.f32.partialorder %v5274_v44, %v5274_v44 }
 0x425   : > { %v3911_v29 = vpop.eup %3910  ;;  %v2233_v13 = vmul.f32 0.6931472, %v3909_v63  ;;  %3928 = vrsqrt.f32 %v2033_v40  ;;  %v2044_v43 = vadd.f32 1e-05, %v3616_v8  ;;  %vm2141_vm15 = vcmp.ne.f32.partialorder %v5258_v52, %v5258_v52 }
 0x426   : > { %v2072_v58 = vmul.f32 %v3911_v29, %v5115_v53  ;;  %v3913_v18 = vpop.eup %3912  ;;  %v2035_v50 = vpop.f32.mrf.mxu0  ;;  %3930 = vpow2.f32 %v2213_v10 }
 0x427   : > { %v2239_v5 = vsel %vm5269_vm0, %v2236_v3, %v2233_v13  ;;  %v2251_v30 = vmul.f32 0.6931472, %v3913_v18  ;;  %3932 = vrsqrt.f32 %v2041_v14  ;;  %v2036_v59 = vadd.f32 1e-05, %v2035_v50 }
 0x428   : > { %v3915_v60 = vpop.eup %3914  ;;  %v2375_v42 = vadd.f32 %v2239_v5, %v2119_v19  ;;  %v2092_v31 = vmul.f32 %v5209_v0, %v2072_v58  ;;  %v5301_v3 = vadd.f32 %v5213_v56, %v2091_v47  ;;  %3934 = vrsqrt.f32 %v2044_v43 }
 0x429   : > { %v3917_v41 = vpop.eup %3916  ;;  %v2242_v53 = vmul.f32 0.6931472, %v3915_v60  ;;  %3936 = vrsqrt.f32 %v2036_v59  ;;  %v2257_v36 = vsel %vm5279_vm2, %v2254_v22, %v2251_v30 }
 0x42a   : > { %v3919_v24 = vpop.eup %3918  ;;  %v2260_v6 = vmul.f32 0.6931472, %v3917_v41  ;;  %v2391_v27 = vsel %vm2135_vm1, %v5223_v34, %v2375_v42  ;;  %v5318_v57 = vadd.f32 %v5213_v56, %v2092_v31  ;;  %v2175_v26 = vand.u32 2147483647, %v5301_v3 }
 0x42b   : > { %v3921_v19 = vpop.eup %3920  ;;  %v2248_v51 = vsel %vm5285_vm3, %v2245_v46, %v2242_v53  ;;  %v3439_v22 = vadd.f32 -0.6931472, %v2391_v27  ;;  %v2377_v29 = vadd.f32 %v2257_v36, %v2121_v17  ;;  %v2123_v46 = vmax.f32 %v5251_v48, 0.0 }
 0x42c   : > { %v2376_v1 = vadd.f32 %v2248_v51, %v2120_v33  ;;  %v2266_v28 = vsel %vm5296_vm4, %v2263_v32, %v2260_v6  ;;  %v2073_v33 = vmul.f32 %v3919_v24, %v5123_v38  ;;  %v2074_v35 = vmul.f32 %v3921_v19, %v5127_v15 }
 0x42d   : > { %v2378_v34 = vadd.f32 %v2266_v28, %v2122_v12  ;;  %v5326_v4 = vpop.eup %3922  ;;  %v2176_v38 = vand.u32 2147483647, %v5318_v57  ;;  %v2191_v9 = vsub.f32 0.0, %v2175_v26  ;;  %v2393_v58 = vsel %vm2137_vm6, %v5220_v25, %v2377_v29 }
 0x42e   : > { %v2392_v63 = vsel %vm2136_vm5, %v5234_v62, %v2376_v1  ;;  %v2267_v15 = vadd.f32 1.0, %v5326_v4  ;;  %v2093_v49 = vmul.f32 %v5209_v0, %v2073_v33  ;;  %v2094_v40 = vmul.f32 %v5209_v0, %v2074_v35 }
 0x42f   : > { %v3440_v16 = vadd.f32 -0.6931472, %v2392_v63  ;;  %v5333_v62 = vpop.eup %3924  ;;  %v2394_v12 = vsel %vm2138_vm7, %v5231_v11, %v2378_v34  ;;  %v2192_v5 = vsub.f32 0.0, %v2176_v38  ;;  %v3441_v10 = vadd.f32 -0.6931472, %v2393_v58 }
 0x430   : > { %v2276_v14 = vadd.f32 1.0, %v5333_v62  ;;  %v5341_v47 = vpop.eup %3926  ;;  %3938 = vlog2.f32 %v2267_v15  ;;  %v3442_v8 = vadd.f32 -0.6931472, %v2394_v12  ;;  %v2215_v60 = vmul.f32 1.442695, %v2191_v9 }
 0x431   : > { %v2423_v13 = vpack.c.bf16 %v3440_v16, %v3439_v22  ;;  %v2285_v11 = vadd.f32 1.0, %v5341_v47  ;;  %v5348_v25 = vadd.f32 %v5213_v56, %v2093_v49  ;;  %v2270_v42 = vmul.f32 -0.5, %v5326_v4 }
 0x432   : > { %v3929_v18 = vpop.eup %3928  ;;  %3940 = vlog2.f32 %v2276_v14  ;;  %v5353_v41 = vadd.f32 %v5213_v56, %v2094_v40  ;;  %v2124_v31 = vmax.f32 %v5255_v61, 0.0  ;;  %v2273_v24 = vand.u32 2147483647, %v5326_v4 }
 0x433   : > { %2561 = vmatmul.mubr.bf16.vlgmr.msra.gmra.mxu0 %v2423_v13  ;;  %v5345_v21 = vpop.eup %3930  ;;  %3942 = vlog2.f32 %v2285_v11  ;;  %v2075_v53 = vmul.f32 %v3929_v18, %v5135_v2  ;;  %v2424_v45 = vpack.c.bf16 %v3442_v8, %v3441_v10  ;;  %v2279_v19 = vmul.f32 -0.5, %v5333_v62 }
 0x434   : > { %2570 = vmatprep.mubr.bf16.mxu0 %v5954_v54  ;;  %v3933_v43 = vpop.eup %3932  ;;  %v2294_v30 = vadd.f32 1.0, %v5345_v21  ;;  %v2217_v51 = vmul.f32 1.442695, %v2192_v5  ;;  %v2282_v1 = vand.u32 2147483647, %v5333_v62  ;;  %v2271_v2 = vadd.f32 1.0, %v2270_v42 }
 0x435   : > { %v3935_v50 = vpop.eup %3934  ;;  %v2077_v6 = vmul.f32 %v3933_v43, %v5147_v39  ;;  %v2177_v27 = vand.u32 2147483647, %v5348_v25  ;;  %v2178_v36 = vand.u32 2147483647, %v5353_v41  ;;  %v2288_v28 = vmul.f32 -0.5, %v5341_v47 }
 0x436   : > { %v3937_v59 = vpop.eup %3936  ;;  %3944 = vlog2.f32 %v2294_v30  ;;  %v2078_v17 = vmul.f32 %v3935_v50, %v5151_v23  ;;  %v2095_v39 = vmul.f32 %v5209_v0, %v2075_v53  ;;  %vm5370_vm8 = vcmp.lt.f32.partialorder %v2273_v24, 0.0004427343 }
 0x437   : > { %v2076_v32 = vmul.f32 %v3937_v59, %v5139_v37  ;;  %3946 = vpow2.f32 %v2215_v60  ;;  %v2125_v63 = vmax.f32 %v5258_v52, 0.0  ;;  %v2193_v34 = vsub.f32 0.0, %v2177_v27 }
 0x438   : > { %3948 = vpow2.f32 %v2217_v51  ;;  %v2194_v26 = vsub.f32 0.0, %v2178_v36  ;;  %v2297_v23 = vmul.f32 -0.5, %v5345_v21  ;;  %v5379_v35 = vadd.f32 %v5213_v56, %v2095_v39 }
 0x439   : > { %v2096_v37 = vmul.f32 %v5209_v0, %v2076_v32  ;;  %v2097_v16 = vmul.f32 %v5209_v0, %v2077_v6  ;;  %v2280_v29 = vadd.f32 1.0, %v2279_v19  ;;  %v2126_v13 = vmax.f32 %v5274_v44, 0.0 }
 0x43a   : > { %v2219_v38 = vmul.f32 1.442695, %v2193_v34  ;;  %v2221_v12 = vmul.f32 1.442695, %v2194_v26  ;;  %v2272_v15 = vmul.f32 %v5326_v4, %v2271_v2  ;;  %vm5389_vm11 = vcmp.lt.f32.partialorder %v2282_v1, 0.0004427343 }
 0x43b   : > { %2571 = vmatmul.mubr.bf16.gmra.mxu0 %v2424_v45  ;;  %v5382_v22 = vadd.f32 %v5213_v56, %v2096_v37  ;;  %v2289_v49 = vadd.f32 1.0, %v2288_v28  ;;  %v2098_v58 = vmul.f32 %v5209_v0, %v2078_v17  ;;  %v2291_v40 = vand.u32 2147483647, %v5341_v47 }
 0x43c   : > { %2580 = vmatprep.mubr.bf16.mxu0 %v5954_v54  ;;  %3950 = vpow2.f32 %v2219_v38  ;;  %v2179_v18 = vand.u32 2147483647, %v5379_v35  ;;  %v2298_v10 = vadd.f32 1.0, %v2297_v23  ;;  %v5398_v4 = vadd.f32 %v5213_v56, %v2097_v16 }
 0x43d   : > { %v3939_v14 = vpop.eup %3938  ;;  %v2180_v8 = vand.u32 2147483647, %v5382_v22  ;;  %3952 = vpow2.f32 %v2221_v12  ;;  %v2281_v43 = vmul.f32 %v5333_v62, %v2280_v29  ;;  %v2300_v0 = vand.u32 2147483647, %v5345_v21 }
 0x43e   : > { %v2269_v5 = vmul.f32 0.6931472, %v3939_v14  ;;  %v2195_v42 = vsub.f32 0.0, %v2179_v18  ;;  %v2290_v53 = vmul.f32 %v5341_v47, %v2289_v49  ;;  %v5406_v59 = vadd.f32 %v5213_v56, %v2098_v58 }
 0x43f   : > { %v3941_v11 = vpop.eup %3940  ;;  %v2196_v24 = vsub.f32 0.0, %v2180_v8  ;;  %vm5412_vm12 = vcmp.lt.f32.partialorder %v2291_v40, 0.0004427343  ;;  %v2299_v47 = vmul.f32 %v5345_v21, %v2298_v10  ;;  %v2181_v2 = vand.u32 2147483647, %v5398_v4 }
 0x440   : > { %v2278_v60 = vmul.f32 0.6931472, %v3941_v11  ;;  %v3943_v30 = vpop.eup %3942  ;;  %v2275_v50 = vsel %vm5370_vm8, %v2272_v15, %v2269_v5  ;;  %v2223_v6 = vmul.f32 1.442695, %v2195_v42  ;;  %vm2301_vm13 = vcmp.lt.f32.partialorder %v2300_v0, 0.0004427343 }
 0x441   : > { %v2379_v19 = vadd.f32 %v2275_v50, %v2123_v46  ;;  %v2287_v51 = vmul.f32 0.6931472, %v3943_v30  ;;  %v2182_v28 = vand.u32 2147483647, %v5406_v59  ;;  %v2225_v34 = vmul.f32 1.442695, %v2196_v24 }
 0x442   : > { %v2284_v45 = vsel %vm5389_vm11, %v2281_v43, %v2278_v60  ;;  %3954 = vpow2.f32 %v2223_v6  ;;  %v2197_v29 = vsub.f32 0.0, %v2181_v2  ;;  %vm2143_vm2 = vcmp.ne.f32.partialorder %v5301_v3, %v5301_v3 }
 0x443   : > { %v3945_v62 = vpop.eup %3944  ;;  %v2380_v32 = vadd.f32 %v2284_v45, %v2124_v31  ;;  %v2395_v46 = vsel %vm2139_vm9, %v5251_v48, %v2379_v19  ;;  %v2293_v27 = vsel %vm5412_vm12, %v2290_v53, %v2287_v51  ;;  %v2127_v45 = vmax.f32 %v5301_v3, 0.0 }
 0x444   : > { %v3947_v56 = vpop.eup %3946  ;;  %v2296_v36 = vmul.f32 0.6931472, %v3945_v62  ;;  %v3443_v39 = vadd.f32 -0.6931472, %v2395_v46  ;;  %v2381_v48 = vadd.f32 %v2293_v27, %v2125_v63  ;;  %v2227_v49 = vmul.f32 1.442695, %v2197_v29 }
 0x445   : > { %v3949_v31 = vpop.eup %3948  ;;  %v2396_v17 = vsel %vm2140_vm10, %v5255_v61, %v2380_v32  ;;  %v2303_v21 = vadd.f32 1.0, %v3947_v56  ;;  %v2198_v61 = vsub.f32 0.0, %v2182_v28  ;;  %v2306_v58 = vmul.f32 -0.5, %v3947_v56 }
 0x446   : > { %v3444_v37 = vadd.f32 -0.6931472, %v2396_v17  ;;  %v2302_v33 = vsel %vm2301_vm13, %v2299_v47, %v2296_v36  ;;  %v2312_v23 = vadd.f32 1.0, %v3949_v31  ;;  %v2397_v63 = vsel %vm2141_vm15, %v5258_v52, %v2381_v48 }
 0x447   : > { %v2382_v26 = vadd.f32 %v2302_v33, %v2126_v13  ;;  %3956 = vlog2.f32 %v2303_v21  ;;  %v2229_v14 = vmul.f32 1.442695, %v2198_v61  ;;  %v3445_v40 = vadd.f32 -0.6931472, %v2397_v63 }
 0x448   : > { %v2425_v16 = vpack.c.bf16 %v3444_v37, %v3443_v39  ;;  %3958 = vlog2.f32 %v2312_v23  ;;  %v2315_v18 = vmul.f32 -0.5, %v3949_v31  ;;  %v2307_v5 = vadd.f32 1.0, %v2306_v58 }
 0x449   : > { %v2398_v38 = vsel %vm2142_vm14, %v5274_v44, %v2382_v26  ;;  %3960 = vpow2.f32 %v2225_v34  ;;  %v3951_v12 = vpop.eup %3950  ;;  %v2309_v52 = vand.u32 2147483647, %v3947_v56  ;;  %v2318_v10 = vand.u32 2147483647, %v3949_v31 }
 0x44a   : > { %2581 = vmatmul.mubr.bf16.gmra.mxu0 %v2425_v16  ;;  %v5436_v13 = vpop.eup %3952  ;;  %v3446_v15 = vadd.f32 -0.6931472, %v2398_v38  ;;  %v2321_v9 = vadd.f32 1.0, %v3951_v12  ;;  %v2316_v43 = vadd.f32 1.0, %v2315_v18  ;;  %v2324_v42 = vmul.f32 -0.5, %v3951_v12 }
 0x44b   : > { %2590 = vmatprep.mubr.bf16.mxu0 %v5954_v54  ;;  %v2330_v44 = vadd.f32 1.0, %v5436_v13  ;;  %v2308_v50 = vmul.f32 %v3947_v56, %v2307_v5  ;;  %v2333_v53 = vmul.f32 -0.5, %v5436_v13  ;;  %v2128_v19 = vmax.f32 %v5318_v57, 0.0 }
 0x44c   : > { %3962 = vlog2.f32 %v2321_v9  ;;  %v2426_v8 = vpack.c.bf16 %v3446_v15, %v3445_v40  ;;  %vm2310_vm0 = vcmp.lt.f32.partialorder %v2309_v52, 0.0004427343  ;;  %vm2319_vm1 = vcmp.lt.f32.partialorder %v2318_v10, 0.0004427343 }
 0x44d   : > { %3964 = vlog2.f32 %v2330_v44  ;;  %v2317_v32 = vmul.f32 %v3949_v31, %v2316_v43  ;;  %v2327_v1 = vand.u32 2147483647, %v3951_v12  ;;  %v2325_v2 = vadd.f32 1.0, %v2324_v42 }
 0x44e   : > { %3966 = vpow2.f32 %v2227_v49  ;;  %v2336_v46 = vand.u32 2147483647, %v5436_v13  ;;  %v2334_v36 = vadd.f32 1.0, %v2333_v53  ;;  %vm2144_vm3 = vcmp.ne.f32.partialorder %v5318_v57, %v5318_v57 }
 0x44f   : > { %v5439_v11 = vpop.eup %3954  ;;  %3968 = vpow2.f32 %v2229_v14  ;;  %v2129_v31 = vmax.f32 %v5348_v25, 0.0  ;;  %v2130_v37 = vmax.f32 %v5353_v41, 0.0  ;;  %vm5458_vm4 = vcmp.lt.f32.partialorder %v2327_v1, 0.0004427343 }
 0x450   : > { %v2339_v60 = vadd.f32 1.0, %v5439_v11  ;;  %v2342_v28 = vmul.f32 -0.5, %v5439_v11  ;;  %vm2337_vm5 = vcmp.lt.f32.partialorder %v2336_v46, 0.0004427343  ;;  %v2335_v61 = vmul.f32 %v5436_v13, %v2334_v36 }
 0x451   : > { %v2345_v49 = vand.u32 2147483647, %v5439_v11  ;;  %vm2145_vm6 = vcmp.ne.f32.partialorder %v5348_v25, %v5348_v25  ;;  %vm2146_vm7 = vcmp.ne.f32.partialorder %v5353_v41, %v5353_v41  ;;  %vm2147_vm10 = vcmp.ne.f32.partialorder %v5379_v35, %v5379_v35 }
 0x452   : > { %2591 = vmatmul.mubr.bf16.gmra.mxu0 %v2426_v8  ;;  %3970 = vlog2.f32 %v2339_v60  ;;  %v2343_v9 = vadd.f32 1.0, %v2342_v28  ;;  %vm2148_vm11 = vcmp.ne.f32.partialorder %v5382_v22, %v5382_v22  ;;  %vm2149_vm14 = vcmp.ne.f32.partialorder %v5398_v4, %v5398_v4 }
 0x453   : > { %2600 = vmatprep.mubr.bf16.mxu0 %v5954_v54  ;;  %vm2346_vm8 = vcmp.lt.f32.partialorder %v2345_v49, 0.0004427343  ;;  %vm2150_vm15 = vcmp.ne.f32.partialorder %v5406_v59, %v5406_v59  ;;  %v5987_v49 = vsub.s32 0, %v5956_v7 }
 0x454   : > { %v3957_v0 = vpop.eup %3956  ;;  %v2344_v10 = vmul.f32 %v5439_v11, %v2343_v9  ;;  %v2132_v11 = vmax.f32 %v5382_v22, 0.0 }
 0x455   : > { %v2305_v30 = vmul.f32 0.6931472, %v3957_v0  ;;  %v3959_v24 = vpop.eup %3958 }
 0x456   : > { %v5446_v51 = vpop.eup %3960  ;;  %v2314_v62 = vmul.f32 0.6931472, %v3959_v24 }
 0x457   : > { %v2311_v6 = vsel %vm2310_vm0, %v2308_v50, %v2305_v30  ;;  %v2348_v56 = vadd.f32 1.0, %v5446_v51  ;;  %v2351_v18 = vmul.f32 -0.5, %v5446_v51  ;;  %v2131_v30 = vmax.f32 %v5379_v35, 0.0 }
 0x458   : > { %v2383_v47 = vadd.f32 %v2311_v6, %v2127_v45  ;;  %v2320_v27 = vsel %vm2319_vm1, %v2317_v32, %v2314_v62  ;;  %v2354_v50 = vand.u32 2147483647, %v5446_v51 }
 0x459   : > { %v2384_v17 = vadd.f32 %v2320_v27, %v2128_v19  ;;  %3972 = vlog2.f32 %v2348_v56  ;;  %v3963_v39 = vpop.eup %3962  ;;  %v2352_v0 = vadd.f32 1.0, %v2351_v18 }
 0x45a   : > { %v2399_v21 = vsel %vm2143_vm2, %v5301_v3, %v2383_v47  ;;  %v3965_v34 = vpop.eup %3964  ;;  %v2323_v26 = vmul.f32 0.6931472, %v3963_v39  ;;  %v2326_v3 = vmul.f32 %v3951_v12, %v2325_v2  ;;  %vm2355_vm9 = vcmp.lt.f32.partialorder %v2354_v50, 0.0004427343 }
 0x45b   : > { %v2400_v48 = vsel %vm2144_vm3, %v5318_v57, %v2384_v17  ;;  %v3967_v23 = vpop.eup %3966  ;;  %v3447_v16 = vadd.f32 -0.6931472, %v2399_v21  ;;  %v2332_v38 = vmul.f32 0.6931472, %v3965_v34  ;;  %v2134_v34 = vmax.f32 %v5406_v59, 0.0 }
 0x45c   : > { %v3448_v29 = vadd.f32 -0.6931472, %v2400_v48  ;;  %v5464_v63 = vpop.eup %3968  ;;  %v2329_v15 = vsel %vm5458_vm4, %v2326_v3, %v2323_v26  ;;  %v2357_v58 = vadd.f32 1.0, %v3967_v23  ;;  %v2360_v53 = vmul.f32 -0.5, %v3967_v23 }
 0x45d   : > { %v2338_v57 = vsel %vm2337_vm5, %v2335_v61, %v2332_v38  ;;  %v2385_v14 = vadd.f32 %v2329_v15, %v2129_v31  ;;  %v2366_v12 = vadd.f32 1.0, %v5464_v63  ;;  %v2363_v2 = vand.u32 2147483647, %v3967_v23 }
 0x45e   : > { %v2427_v44 = vpack.c.bf16 %v3448_v29, %v3447_v16  ;;  %v2386_v40 = vadd.f32 %v2338_v57, %v2130_v37  ;;  %3974 = vlog2.f32 %v2357_v58  ;;  %v2361_v32 = vadd.f32 1.0, %v2360_v53 }
 0x45f   : > { %v3971_v8 = vpop.eup %3970  ;;  %3976 = vlog2.f32 %v2366_v12  ;;  %v2401_v13 = vsel %vm2145_vm6, %v5348_v25, %v2385_v14  ;;  %v2369_v25 = vmul.f32 -0.5, %v5464_v63  ;;  %v2133_v31 = vmax.f32 %v5398_v4, 0.0 }
 0x460   : > { %2601 = vmatmul.mubr.bf16.gmra.mxu0 %v2427_v44  ;;  %v2402_v5 = vsel %vm2146_vm7, %v5353_v41, %v2386_v40  ;;  %v2341_v52 = vmul.f32 0.6931472, %v3971_v8  ;;  %v3449_v42 = vadd.f32 -0.6931472, %v2401_v13  ;;  %v2353_v41 = vmul.f32 %v5446_v51, %v2352_v0 }
 0x461   : > { %2610 = vmatprep.mubr.bf16.mxu0 %v5954_v54  ;;  %v3450_v60 = vadd.f32 -0.6931472, %v2402_v5  ;;  %v2370_v46 = vadd.f32 1.0, %v2369_v25  ;;  %v2372_v51 = vand.u32 2147483647, %v5464_v63  ;;  %v2362_v39 = vmul.f32 %v3967_v23, %v2361_v32 }
 0x462   : > { %v2347_v43 = vsel %vm2346_vm8, %v2344_v10, %v2341_v52  ;;  %vm2364_vm12 = vcmp.lt.f32.partialorder %v2363_v2, 0.0004427343  ;;  %v5986_v15 = vsub.s32 1, %v5956_v7 }
 0x463   : > { %v2428_v45 = vpack.c.bf16 %v3450_v60, %v3449_v42  ;;  %v2387_v19 = vadd.f32 %v2347_v43, %v2131_v30  ;;  %vm2373_vm13 = vcmp.lt.f32.partialorder %v2372_v51, 0.0004427343 }
 0x465   : > { %v2403_v47 = vsel %vm2147_vm10, %v5379_v35, %v2387_v19  ;;  %v2371_v35 = vmul.f32 %v5464_v63, %v2370_v46  ;;  %v5505_v63 = vld [vmem:[%s5937_s4 + $0x8] sm:$0xf] }
 0x466   : > { %v3973_v24 = vpop.eup %3972  ;;  %v3451_v17 = vadd.f32 -0.6931472, %v2403_v47 }
 0x467   : > { %v2350_v6 = vmul.f32 0.6931472, %v3973_v24 }
 0x468   : > { %2611 = vmatmul.mubr.bf16.gmra.mxu0 %v2428_v45 }
 0x469   : > { %2620 = vmatprep.mubr.bf16.mxu0 %v5954_v54  ;;  %v2356_v62 = vsel %vm2355_vm9, %v2353_v41, %v2350_v6 }
 0x46a   : > { %v2388_v1 = vadd.f32 %v2356_v62, %v2132_v11 }
 0x46b   : > { %v3975_v56 = vpop.eup %3974 }
 0x46c   : > { %v2404_v27 = vsel %vm2148_vm11, %v5382_v22, %v2388_v1  ;;  %v3977_v36 = vpop.eup %3976  ;;  %v2359_v28 = vmul.f32 0.6931472, %v3975_v56 }
 0x46d   : > { %v3452_v21 = vadd.f32 -0.6931472, %v2404_v27  ;;  %v2368_v37 = vmul.f32 0.6931472, %v3977_v36 }
 0x46e   : > { %v2365_v48 = vsel %vm2364_vm12, %v2362_v39, %v2359_v28 }
 0x46f   : > { %v2429_v33 = vpack.c.bf16 %v3452_v21, %v3451_v17  ;;  %v2374_v26 = vsel %vm2373_vm13, %v2371_v35, %v2368_v37  ;;  %v2389_v3 = vadd.f32 %v2365_v48, %v2133_v31 }
 0x470   : > { %v2390_v22 = vadd.f32 %v2374_v26, %v2134_v34 }
 0x471   : > { %2621 = vmatmul.mubr.bf16.gmra.mxu0 %v2429_v33  ;;  %v2405_v23 = vsel %vm2149_vm14, %v5398_v4, %v2389_v3  ;;  %v5515_v4 = vrot.slane %v5505_v63, %v5987_v49 }
 0x472   : > { %2630 = vmatprep.mubr.bf16.mxu0 %v5954_v54  ;;  %v2406_v16 = vsel %vm2150_vm15, %v5406_v59, %v2390_v22  ;;  %v3453_v38 = vadd.f32 -0.6931472, %v2405_v23  ;;  %v5510_v54 = vrot.slane %v5505_v63, %v5986_v15 }
 0x473   : > { %v3454_v29 = vadd.f32 -0.6931472, %v2406_v16 }
 0x475   : > { %v2430_v61 = vpack.c.bf16 %v3454_v29, %v3453_v38 }
 0x479   : > { %2631 = vmatmul.mubr.bf16.gmra.mxu0 %v2430_v61 }
 0x4f3   : > { %v2562_v9 = vpop.f32.mrf.mxu0 }
 0x4f4   : > { %v2645_v57 = vadd.f32 %v5515_v4, %v2562_v9 }
 0x4f5   : > { %v2564_v59 = vpop.f32.mrf.mxu0 }
 0x4f6   : > { %v2665_v58 = vadd.f32 %v5510_v54, %v2564_v59 }
 0x4f7   : > { %v2566_v44 = vpop.f32.mrf.mxu0 }
 0x4f8   : > { %v5519_v12 = vsub.f32 %v2645_v57, %v2665_v58  ;;  %v2646_v40 = vadd.f32 %v5515_v4, %v2566_v44 }
 0x4f9   : > { %v2568_v14 = vpop.f32.mrf.mxu0 }
 0x4fa   : > { %v2666_v18 = vadd.f32 %v5510_v54, %v2568_v14  ;;  %v2697_v52 = vmul.f32 %v5519_v12, %v5519_v12 }
 0x4fb   : > { %v2572_v8 = vpop.f32.mrf.mxu0 }
 0x4fc   : > { %v5523_v13 = vsub.f32 %v2646_v40, %v2666_v18  ;;  %v2647_v0 = vadd.f32 %v5515_v4, %v2572_v8 }
 0x4fd   : > { %v2574_v5 = vpop.f32.mrf.mxu0 }
 0x4fe   : > { %v2698_v10 = vmul.f32 %v5523_v13, %v5523_v13  ;;  %v2667_v60 = vadd.f32 %v5510_v54, %v2574_v5 }
 0x4ff   : > { %v2576_v43 = vpop.f32.mrf.mxu0 }
 0x500   : > { %v2713_v42 = vpack.c.bf16 %v2698_v10, %v2697_v52  ;;  %v5531_v50 = vsub.f32 %v2647_v0, %v2667_v60  ;;  %v2648_v53 = vadd.f32 %v5515_v4, %v2576_v43 }
 0x501   : > { %v2578_v30 = vpop.f32.mrf.mxu0 }
 0x502   : > { %v2668_v24 = vadd.f32 %v5510_v54, %v2578_v30  ;;  %3633 = vmatprep.mubr.bf16.mxu1 %v2713_v42  ;;  %v2699_v19 = vmul.f32 %v5531_v50, %v5531_v50 }
 0x504   : > { %v5535_v45 = vsub.f32 %v2648_v53, %v2668_v24 }
 0x506   : > { %v2700_v25 = vmul.f32 %v5535_v45, %v5535_v45 }
 0x508   : > { %v2714_v6 = vpack.c.bf16 %v2700_v25, %v2699_v19 }
 0x50a   : > { %3634 = vmatmul.mubr.bf16.vlgmr.msra.gmra.mxu1 %v2714_v6  ;;  %v2582_v41 = vpop.f32.mrf.mxu0 }
 0x50b   : > { %v2649_v1 = vadd.f32 %v5515_v4, %v2582_v41 }
 0x50c   : > { %v2584_v11 = vpop.f32.mrf.mxu0 }
 0x50d   : > { %v2669_v62 = vadd.f32 %v5510_v54, %v2584_v11 }
 0x50e   : > { %v2586_v32 = vpop.f32.mrf.mxu0 }
 0x50f   : > { %v5543_v2 = vsub.f32 %v2649_v1, %v2669_v62  ;;  %v2650_v46 = vadd.f32 %v5515_v4, %v2586_v32 }
 0x510   : > { %v2588_v47 = vpop.f32.mrf.mxu0 }
 0x511   : > { %v2670_v51 = vadd.f32 %v5510_v54, %v2588_v47  ;;  %v2701_v17 = vmul.f32 %v5543_v2, %v5543_v2 }
 0x512   : > { %v2592_v56 = vpop.f32.mrf.mxu0 }
 0x513   : > { %v5547_v27 = vsub.f32 %v2650_v46, %v2670_v51  ;;  %v2651_v31 = vadd.f32 %v5515_v4, %v2592_v56 }
 0x514   : > { %v2594_v36 = vpop.f32.mrf.mxu0 }
 0x515   : > { %v2702_v21 = vmul.f32 %v5547_v27, %v5547_v27  ;;  %v2671_v28 = vadd.f32 %v5510_v54, %v2594_v36 }
 0x516   : > { %v2596_v39 = vpop.f32.mrf.mxu0 }
 0x517   : > { %v2715_v37 = vpack.c.bf16 %v2702_v21, %v2701_v17  ;;  %v5555_v33 = vsub.f32 %v2651_v31, %v2671_v28  ;;  %v2652_v34 = vadd.f32 %v5515_v4, %v2596_v39 }
 0x518   : > { %v2598_v35 = vpop.f32.mrf.mxu0 }
 0x519   : > { %v2672_v48 = vadd.f32 %v5510_v54, %v2598_v35  ;;  %3637 = vmatprep.mubr.bf16.mxu1 %v2715_v37  ;;  %v2703_v3 = vmul.f32 %v5555_v33, %v5555_v33 }
 0x51b   : > { %v5559_v26 = vsub.f32 %v2652_v34, %v2672_v48 }
 0x51d   : > { %v2704_v22 = vmul.f32 %v5559_v26, %v5559_v26 }
 0x51f   : > { %v2716_v23 = vpack.c.bf16 %v2704_v22, %v2703_v3 }
 0x520   : > { %v2602_v16 = vpop.f32.mrf.mxu0 }
 0x521   : > { %3638 = vmatmul.mubr.bf16.gmra.mxu1 %v2716_v23  ;;  %v2653_v15 = vadd.f32 %v5515_v4, %v2602_v16 }
 0x522   : > { %v2604_v29 = vpop.f32.mrf.mxu0 }
 0x523   : > { %v2673_v38 = vadd.f32 %v5510_v54, %v2604_v29 }
 0x524   : > { %v2606_v61 = vpop.f32.mrf.mxu0 }
 0x525   : > { %v5567_v49 = vsub.f32 %v2653_v15, %v2673_v38  ;;  %v2654_v59 = vadd.f32 %v5515_v4, %v2606_v61 }
 0x526   : > { %v2608_v9 = vpop.f32.mrf.mxu0 }
 0x527   : > { %v2674_v58 = vadd.f32 %v5510_v54, %v2608_v9  ;;  %v2705_v40 = vmul.f32 %v5567_v49, %v5567_v49 }
 0x528   : > { %v2612_v44 = vpop.f32.mrf.mxu0 }
 0x529   : > { %v5571_v57 = vsub.f32 %v2654_v59, %v2674_v58  ;;  %v2655_v52 = vadd.f32 %v5515_v4, %v2612_v44  ;;  %v5616_v44 = vrot.slane %v5505_v63, %v1310_v20 }
 0x52a   : > { %v2614_v14 = vpop.f32.mrf.mxu0 }
 0x52b   : > { %v2706_v18 = vmul.f32 %v5571_v57, %v5571_v57  ;;  %v2675_v8 = vadd.f32 %v5510_v54, %v2614_v14 }
 0x52c   : > { %v2616_v5 = vpop.f32.mrf.mxu0 }
 0x52d   : > { %v2717_v10 = vpack.c.bf16 %v2706_v18, %v2705_v40  ;;  %v5579_v43 = vsub.f32 %v2655_v52, %v2675_v8  ;;  %v2656_v0 = vadd.f32 %v5515_v4, %v2616_v5  ;;  %v5621_v40 = vrot.slane %v5505_v63, %v1330_v55 }
 0x52e   : > { %v2618_v60 = vpop.f32.mrf.mxu0 }
 0x52f   : > { %v2676_v42 = vadd.f32 %v5510_v54, %v2618_v60  ;;  %3641 = vmatprep.mubr.bf16.mxu1 %v2717_v10  ;;  %v2707_v24 = vmul.f32 %v5579_v43, %v5579_v43 }
 0x531   : > { %v5583_v30 = vsub.f32 %v2656_v0, %v2676_v42  ;;  %v2622_v53 = vpop.f32.mrf.mxu0 }
 0x532   : > { %v2657_v62 = vadd.f32 %v5515_v4, %v2622_v53 }
 0x533   : > { %v2708_v19 = vmul.f32 %v5583_v30, %v5583_v30  ;;  %v2624_v25 = vpop.f32.mrf.mxu0 }
 0x534   : > { %v2677_v6 = vadd.f32 %v5510_v54, %v2624_v25 }
 0x535   : > { %v2626_v41 = vpop.f32.mrf.mxu0  ;;  %v2718_v11 = vpack.c.bf16 %v2708_v19, %v2707_v24 }
 0x536   : > { %v5591_v1 = vsub.f32 %v2657_v62, %v2677_v6  ;;  %v2658_v47 = vadd.f32 %v5515_v4, %v2626_v41 }
 0x537   : > { %v2628_v32 = vpop.f32.mrf.mxu0  ;;  %3642 = vmatmul.mubr.bf16.gmra.mxu1 %v2718_v11 }
 0x538   : > { %v2678_v46 = vadd.f32 %v5510_v54, %v2628_v32  ;;  %v2709_v17 = vmul.f32 %v5591_v1, %v5591_v1 }
 0x539   : > { %v2632_v51 = vpop.f32.mrf.mxu0 }
 0x53a   : > { %v5595_v56 = vsub.f32 %v2658_v47, %v2678_v46  ;;  %v2659_v31 = vadd.f32 %v5515_v4, %v2632_v51 }
 0x53b   : > { %v2634_v36 = vpop.f32.mrf.mxu0 }
 0x53c   : > { %v2710_v21 = vmul.f32 %v5595_v56, %v5595_v56  ;;  %v2679_v28 = vadd.f32 %v5510_v54, %v2634_v36 }
 0x53d   : > { %v2636_v39 = vpop.f32.mrf.mxu0 }
 0x53e   : > { %v2719_v37 = vpack.c.bf16 %v2710_v21, %v2709_v17  ;;  %v5603_v34 = vsub.f32 %v2659_v31, %v2679_v28  ;;  %v2660_v48 = vadd.f32 %v5515_v4, %v2636_v39 }
 0x53f   : > { %v2638_v35 = vpop.f32.mrf.mxu0 }
 0x540   : > { %v2680_v3 = vadd.f32 %v5510_v54, %v2638_v35  ;;  %3645 = vmatprep.mubr.bf16.mxu1 %v2719_v37  ;;  %v2711_v23 = vmul.f32 %v5603_v34, %v5603_v34 }
 0x542   : > { %v5607_v22 = vsub.f32 %v2660_v48, %v2680_v3 }
 0x544   : > { %v2712_v16 = vmul.f32 %v5607_v22, %v5607_v22 }
 0x546   : > { %v2720_v29 = vpack.c.bf16 %v2712_v16, %v2711_v23 }
 0x548   : > { %3646 = vmatmul.mubr.bf16.gmra.mxu1 %v2720_v29 }
 0x5ca   : > { %v3635_v38 = vpop.f32.mrf.mxu1 }
 0x5cb   : > { %v2764_v61 = vadd.f32 1e-05, %v3635_v38 }
 0x5cc   : > { %v2755_v15 = vpop.f32.mrf.mxu1 }
 0x5cd   : > { %3978 = vrsqrt.f32 %v2764_v61  ;;  %v2756_v9 = vadd.f32 1e-05, %v2755_v15 }
 0x5ce   : > { %v3636_v59 = vpop.f32.mrf.mxu1 }
 0x5cf   : > { %3980 = vrsqrt.f32 %v2756_v9  ;;  %v2767_v4 = vadd.f32 1e-05, %v3636_v59 }
 0x5d0   : > { %v2758_v54 = vpop.f32.mrf.mxu1 }
 0x5d1   : > { %3982 = vrsqrt.f32 %v2767_v4  ;;  %v2759_v58 = vadd.f32 1e-05, %v2758_v54 }
 0x5d3   : > { %3984 = vrsqrt.f32 %v2759_v58 }
 0x5da   : > { %v3979_v14 = vpop.eup %3978 }
 0x5db   : > { %v2836_v18 = vmul.f32 %v3979_v14, %v5531_v50 }
 0x5dc   : > { %v3981_v8 = vpop.eup %3980 }
 0x5dd   : > { %v2856_v5 = vmul.f32 %v5616_v44, %v2836_v18  ;;  %v2834_v52 = vmul.f32 %v3981_v8, %v5519_v12 }
 0x5de   : > { %v3983_v10 = vpop.eup %3982 }
 0x5df   : > { %v5627_v60 = vadd.f32 %v5621_v40, %v2856_v5  ;;  %v2854_v20 = vmul.f32 %v5616_v44, %v2834_v52  ;;  %v2837_v0 = vmul.f32 %v3983_v10, %v5535_v45 }
 0x5e0   : > { %v3985_v42 = vpop.eup %3984 }
 0x5e1   : > { %v2940_v7 = vand.u32 2147483647, %v5627_v60  ;;  %v5633_v55 = vadd.f32 %v5621_v40, %v2854_v20  ;;  %v2857_v63 = vmul.f32 %v5616_v44, %v2837_v0  ;;  %v2835_v50 = vmul.f32 %v3985_v42, %v5523_v13  ;;  %v3639_v25 = vpop.f32.mrf.mxu1 }
 0x5e2   : > { %v2780_v62 = vadd.f32 1e-05, %v3639_v25  ;;  %vm2908_vm1 = vcmp.ne.f32.partialorder %v5627_v60, %v5627_v60 }
 0x5e3   : > { %v2956_v53 = vsub.f32 0.0, %v2940_v7  ;;  %v2938_v12 = vand.u32 2147483647, %v5633_v55  ;;  %v5639_v24 = vadd.f32 %v5621_v40, %v2857_v63  ;;  %v2855_v19 = vmul.f32 %v5616_v44, %v2835_v50  ;;  %v2771_v32 = vpop.f32.mrf.mxu1 }
 0x5e4   : > { %v2772_v47 = vadd.f32 1e-05, %v2771_v32  ;;  %v2890_v42 = vmax.f32 %v5633_v55, 0.0  ;;  %vm2906_vm2 = vcmp.ne.f32.partialorder %v5633_v55, %v5633_v55 }
 0x5e5   : > { %v2974_v45 = vmul.f32 1.442695, %v2956_v53  ;;  %v2954_v6 = vsub.f32 0.0, %v2938_v12  ;;  %v2941_v41 = vand.u32 2147483647, %v5639_v24  ;;  %v5644_v11 = vadd.f32 %v5621_v40, %v2855_v19  ;;  %v3640_v36 = vpop.f32.mrf.mxu1 }
 0x5e6   : > { %v2783_v17 = vadd.f32 1e-05, %v3640_v36  ;;  %v2893_v19 = vmax.f32 %v5639_v24, 0.0  ;;  %vm2909_vm6 = vcmp.ne.f32.partialorder %v5639_v24, %v5639_v24 }
 0x5e7   : > { %3986 = vpow2.f32 %v2974_v45  ;;  %v2970_v13 = vmul.f32 1.442695, %v2954_v6  ;;  %v2957_v46 = vsub.f32 0.0, %v2941_v41  ;;  %v2939_v51 = vand.u32 2147483647, %v5644_v11  ;;  %v2774_v39 = vpop.f32.mrf.mxu1 }
 0x5e8   : > { %v2775_v37 = vadd.f32 1e-05, %v2774_v39  ;;  %v2891_v45 = vmax.f32 %v5644_v11, 0.0  ;;  %vm2907_vm7 = vcmp.ne.f32.partialorder %v5644_v11, %v5644_v11 }
 0x5e9   : > { %3988 = vpow2.f32 %v2970_v13  ;;  %v2976_v21 = vmul.f32 1.442695, %v2957_v46  ;;  %v2955_v28 = vsub.f32 0.0, %v2939_v51 }
 0x5ea   : > { %3990 = vrsqrt.f32 %v2780_v62 }
 0x5eb   : > { %3992 = vrsqrt.f32 %v2772_v47  ;;  %v2972_v31 = vmul.f32 1.442695, %v2955_v28 }
 0x5ec   : > { %3994 = vpow2.f32 %v2976_v21 }
 0x5ed   : > { %3996 = vrsqrt.f32 %v2783_v17 }
 0x5ee   : > { %3998 = vpow2.f32 %v2972_v31 }
 0x5ef   : > { %4000 = vrsqrt.f32 %v2775_v37 }
 0x5f4   : > { %v3987_v35 = vpop.eup %3986 }
 0x5f5   : > { %v3020_v48 = vadd.f32 1.0, %v3987_v35  ;;  %v3023_v15 = vmul.f32 -0.5, %v3987_v35  ;;  %v3026_v4 = vand.u32 2147483647, %v3987_v35 }
 0x5f6   : > { %v5647_v3 = vpop.eup %3988 }
 0x5f7   : > { %v3991_v23 = vpop.eup %3990  ;;  %4002 = vlog2.f32 %v3020_v48  ;;  %v3002_v16 = vadd.f32 1.0, %v5647_v3  ;;  %v3005_v14 = vmul.f32 -0.5, %v5647_v3  ;;  %v3643_v5 = vpop.f32.mrf.mxu1  ;;  %v3024_v10 = vadd.f32 1.0, %v3023_v15 }
 0x5f8   : > { %v3993_v29 = vpop.eup %3992  ;;  %v2840_v38 = vmul.f32 %v3991_v23, %v5555_v33  ;;  %vm5671_vm0 = vcmp.lt.f32.partialorder %v3026_v4, 0.0004427343  ;;  %v3008_v12 = vand.u32 2147483647, %v5647_v3  ;;  %v2796_v47 = vadd.f32 1e-05, %v3643_v5 }
 0x5f9   : > { %v5651_v61 = vpop.eup %3994  ;;  %4004 = vlog2.f32 %v3002_v16  ;;  %v2838_v9 = vmul.f32 %v3993_v29, %v5543_v2  ;;  %v2892_v2 = vmax.f32 %v5627_v60, 0.0  ;;  %v3006_v53 = vadd.f32 1.0, %v3005_v14 }
 0x5fa   : > { %v3997_v59 = vpop.eup %3996  ;;  %v3029_v54 = vadd.f32 1.0, %v5651_v61  ;;  %v2860_v18 = vmul.f32 %v5616_v44, %v2840_v38  ;;  %v3032_v25 = vmul.f32 -0.5, %v5651_v61  ;;  %v3025_v62 = vmul.f32 %v3987_v35, %v3024_v10 }
 0x5fb   : > { %v5655_v58 = vpop.eup %3998  ;;  %v2858_v8 = vmul.f32 %v5616_v44, %v2838_v9  ;;  %v2841_v33 = vmul.f32 %v3997_v59, %v5559_v26  ;;  %v2787_v26 = vpop.f32.mrf.mxu1  ;;  %v3007_v28 = vmul.f32 %v5647_v3, %v3006_v53  ;;  %v3035_v39 = vand.u32 2147483647, %v5651_v61 }
 0x5fc   : > { %4006 = vlog2.f32 %v3029_v54  ;;  %v3011_v52 = vadd.f32 1.0, %v5655_v58  ;;  %v5664_v20 = vadd.f32 %v5621_v40, %v2860_v18  ;;  %v4001_v0 = vpop.eup %4000  ;;  %v3014_v46 = vmul.f32 -0.5, %v5655_v58 }
 0x5fd   : > { %v5668_v7 = vadd.f32 %v5621_v40, %v2858_v8  ;;  %v2861_v63 = vmul.f32 %v5616_v44, %v2841_v33  ;;  %v2839_v13 = vmul.f32 %v4001_v0, %v5547_v27  ;;  %v2788_v17 = vadd.f32 1e-05, %v2787_v26  ;;  %v3644_v21 = vpop.f32.mrf.mxu1 }
 0x5fe   : > { %4008 = vlog2.f32 %v3011_v52  ;;  %v2944_v6 = vand.u32 2147483647, %v5664_v20  ;;  %v3033_v27 = vadd.f32 1.0, %v3032_v25  ;;  %v3015_v9 = vadd.f32 1.0, %v3014_v46 }
 0x5ff   : > { %v2942_v41 = vand.u32 2147483647, %v5668_v7  ;;  %v5684_v32 = vadd.f32 %v5621_v40, %v2861_v63  ;;  %v2859_v37 = vmul.f32 %v5616_v44, %v2839_v13  ;;  %4010 = vrsqrt.f32 %v2796_v47  ;;  %v2790_v4 = vpop.f32.mrf.mxu1 }
 0x600   : > { %v2960_v51 = vsub.f32 0.0, %v2944_v6  ;;  %4012 = vrsqrt.f32 %v2788_v17  ;;  %v3017_v3 = vand.u32 2147483647, %v5655_v58  ;;  %v2799_v59 = vadd.f32 1e-05, %v3644_v21 }
 0x601   : > { %v2958_v36 = vsub.f32 0.0, %v2942_v41  ;;  %v2945_v31 = vand.u32 2147483647, %v5684_v32  ;;  %v5695_v38 = vadd.f32 %v5621_v40, %v2859_v37  ;;  %vm3009_vm3 = vcmp.lt.f32.partialorder %v3008_v12, 0.0004427343 }
 0x602   : > { %v2982_v48 = vmul.f32 1.442695, %v2960_v51  ;;  %vm5700_vm4 = vcmp.lt.f32.partialorder %v3035_v39, 0.0004427343  ;;  %v3034_v0 = vmul.f32 %v5651_v61, %v3033_v27  ;;  %v2791_v63 = vadd.f32 1e-05, %v2790_v4 }
 0x603   : > { %v2978_v23 = vmul.f32 1.442695, %v2958_v36  ;;  %v2961_v29 = vsub.f32 0.0, %v2945_v31  ;;  %v2943_v5 = vand.u32 2147483647, %v5695_v38  ;;  %v3016_v61 = vmul.f32 %v5655_v58, %v3015_v9 }
 0x604   : > { %v4003_v35 = vpop.eup %4002  ;;  %4014 = vpow2.f32 %v2982_v48  ;;  %vm5717_vm5 = vcmp.lt.f32.partialorder %v3017_v3, 0.0004427343  ;;  %vm2912_vm9 = vcmp.ne.f32.partialorder %v5664_v20, %v5664_v20  ;;  %vm2910_vm10 = vcmp.ne.f32.partialorder %v5668_v7, %v5668_v7 }
 0x605   : > { %v3022_v16 = vmul.f32 0.6931472, %v4003_v35  ;;  %4016 = vpow2.f32 %v2978_v23  ;;  %v2984_v18 = vmul.f32 1.442695, %v2961_v29  ;;  %v2959_v53 = vsub.f32 0.0, %v2943_v5 }
 0x606   : > { %v4005_v15 = vpop.eup %4004  ;;  %vm2913_vm12 = vcmp.ne.f32.partialorder %v5684_v32, %v5684_v32  ;;  %vm2911_vm15 = vcmp.ne.f32.partialorder %v5695_v38, %v5695_v38 }
 0x607   : > { %v3028_v54 = vsel %vm5671_vm0, %v3025_v62, %v3022_v16  ;;  %v3004_v14 = vmul.f32 0.6931472, %v4005_v15  ;;  %4018 = vpow2.f32 %v2984_v18  ;;  %v2980_v62 = vmul.f32 1.442695, %v2959_v53 }
 0x608   : > { %v3148_v8 = vadd.f32 %v3028_v54, %v2892_v2  ;;  %4020 = vrsqrt.f32 %v2799_v59  ;;  %v3647_v13 = vpop.f32.mrf.mxu1  ;;  %v2896_v54 = vmax.f32 %v5664_v20, 0.0 }
 0x609   : > { %v4007_v52 = vpop.eup %4006  ;;  %v3010_v10 = vsel %vm3009_vm3, %v3007_v28, %v3004_v14  ;;  %4022 = vrsqrt.f32 %v2791_v63  ;;  %v2812_v46 = vadd.f32 1e-05, %v3647_v13  ;;  %v2897_v63 = vmax.f32 %v5684_v32, 0.0 }
 0x60a   : > { %v3164_v2 = vsel %vm2908_vm1, %v5627_v60, %v3148_v8  ;;  %v3146_v26 = vadd.f32 %v3010_v10, %v2890_v42  ;;  %v3031_v50 = vmul.f32 0.6931472, %v4007_v52  ;;  %4024 = vpow2.f32 %v2980_v62 }
 0x60b   : > { %v4009_v12 = vpop.eup %4008  ;;  %v3489_v25 = vadd.f32 -0.6931472, %v3164_v2  ;;  %4026 = vrsqrt.f32 %v2812_v46 }
 0x60c   : > { %v3162_v41 = vsel %vm2906_vm2, %v5633_v55, %v3146_v26  ;;  %v3037_v60 = vsel %vm5700_vm4, %v3034_v0, %v3031_v50  ;;  %v3013_v42 = vmul.f32 0.6931472, %v4009_v12  ;;  %v2803_v55 = vpop.f32.mrf.mxu1  ;;  %v4011_v39 = vpop.eup %4010  ;;  %v2894_v0 = vmax.f32 %v5668_v7, 0.0 }
 0x60d   : > { %3196 = vst [vmem:[%s5710_s22 + $0x10] sm:$0xff] %v3489_v25  ;;  %v3487_v47 = vadd.f32 -0.6931472, %v3162_v41  ;;  %v3149_v58 = vadd.f32 %v3037_v60, %v2893_v19  ;;  %v2804_v21 = vadd.f32 1e-05, %v2803_v55  ;;  %v4013_v35 = vpop.eup %4012 }
 0x60e   : > { %v3019_v51 = vsel %vm5717_vm5, %v3016_v61, %v3013_v42  ;;  %v3648_v28 = vpop.f32.mrf.mxu1 }
 0x60f   : > { %3194 = vst [vmem:[%s5710_s22] sm:$0xff] %v3487_v47  ;;  %v3165_v36 = vsel %vm2909_vm6, %v5639_v24, %v3149_v58  ;;  %v3147_v17 = vadd.f32 %v3019_v51, %v2891_v45  ;;  %4028 = vrsqrt.f32 %v2804_v21  ;;  %v2815_v37 = vadd.f32 1e-05, %v3648_v28 }
 0x610   : > { %v3490_v19 = vadd.f32 -0.6931472, %v3165_v36  ;;  %v2844_v24 = vmul.f32 %v4011_v39, %v5579_v43  ;;  %v2842_v45 = vmul.f32 %v4013_v35, %v5567_v49  ;;  %v2806_v15 = vpop.f32.mrf.mxu1 }
 0x611   : > { %v3163_v31 = vsel %vm2907_vm7, %v5644_v11, %v3147_v17  ;;  %v5743_v48 = vpop.eup %4014  ;;  %4030 = vrsqrt.f32 %v2815_v37  ;;  %v2807_v4 = vadd.f32 1e-05, %v2806_v15 }
 0x612   : > { %3197 = vst [vmem:[%s5710_s22 + $0x18] sm:$0xff] %v3490_v19  ;;  %v3488_v27 = vadd.f32 -0.6931472, %v3163_v31  ;;  %v5746_v23 = vpop.eup %4016  ;;  %v3056_v16 = vadd.f32 1.0, %v5743_v48  ;;  %v2864_v29 = vmul.f32 %v5616_v44, %v2844_v24  ;;  %v2862_v3 = vmul.f32 %v5616_v44, %v2842_v45 }
 0x613   : > { %v3038_v11 = vadd.f32 1.0, %v5746_v23  ;;  %v3059_v8 = vmul.f32 -0.5, %v5743_v48  ;;  %v3062_v33 = vand.u32 2147483647, %v5743_v48  ;;  %v3041_v53 = vmul.f32 -0.5, %v5746_v23 }
 0x614   : > { %3195 = vst [vmem:[%s5710_s22 + $0x8] sm:$0xff] %v3488_v27  ;;  %v5752_v9 = vpop.eup %4018  ;;  %4032 = vlog2.f32 %v3056_v16  ;;  %v5755_v43 = vadd.f32 %v5621_v40, %v2864_v29  ;;  %v5764_v5 = vadd.f32 %v5621_v40, %v2862_v3  ;;  %v3044_v61 = vand.u32 2147483647, %v5746_v23 }
 0x615   : > { %4034 = vlog2.f32 %v3038_v11  ;;  %v3065_v49 = vadd.f32 1.0, %v5752_v9  ;;  %v4021_v59 = vpop.eup %4020  ;;  %v3068_v12 = vmul.f32 -0.5, %v5752_v9  ;;  %v3060_v60 = vadd.f32 1.0, %v3059_v8 }
 0x616   : > { %v2948_v14 = vand.u32 2147483647, %v5755_v43  ;;  %v4023_v18 = vpop.eup %4022  ;;  %v2845_v52 = vmul.f32 %v4021_v59, %v5583_v30  ;;  %v2946_v6 = vand.u32 2147483647, %v5764_v5  ;;  %vm5777_vm8 = vcmp.lt.f32.partialorder %v3062_v33, 0.0004427343 }
 0x617   : > { %4036 = vlog2.f32 %v3065_v49  ;;  %v5767_v10 = vpop.eup %4024  ;;  %v2843_v26 = vmul.f32 %v4023_v18, %v5571_v57  ;;  %v3042_v46 = vadd.f32 1.0, %v3041_v53  ;;  %v3069_v51 = vadd.f32 1.0, %v3068_v12 }
 0x618   : > { %v2964_v2 = vsub.f32 0.0, %v2948_v14  ;;  %v4027_v50 = vpop.eup %4026  ;;  %v3047_v25 = vadd.f32 1.0, %v5767_v10  ;;  %4038 = vrsqrt.f32 %v2807_v4  ;;  %v2865_v57 = vmul.f32 %v5616_v44, %v2845_v52 }
 0x619   : > { %v2962_v62 = vsub.f32 0.0, %v2946_v6  ;;  %v2863_v13 = vmul.f32 %v5616_v44, %v2843_v26  ;;  %v2848_v47 = vmul.f32 %v4027_v50, %v5603_v34  ;;  %v3050_v17 = vmul.f32 -0.5, %v5767_v10 }
 0x61a   : > { %v2990_v30 = vmul.f32 1.442695, %v2964_v2  ;;  %4040 = vlog2.f32 %v3047_v25  ;;  %v5787_v55 = vadd.f32 %v5621_v40, %v2865_v57  ;;  %vm5797_vm11 = vcmp.lt.f32.partialorder %v3044_v61, 0.0004427343 }
 0x61b   : > { %v2986_v21 = vmul.f32 1.442695, %v2962_v62  ;;  %v5794_v19 = vadd.f32 %v5621_v40, %v2863_v13  ;;  %v2868_v34 = vmul.f32 %v5616_v44, %v2848_v47  ;;  %v3061_v35 = vmul.f32 %v5743_v48, %v3060_v60 }
 0x61c   : > { %v4029_v41 = vpop.eup %4028  ;;  %4042 = vpow2.f32 %v2990_v30  ;;  %v2949_v39 = vand.u32 2147483647, %v5787_v55  ;;  %v3071_v27 = vand.u32 2147483647, %v5752_v9  ;;  %v3043_v29 = vmul.f32 %v5746_v23, %v3042_v46 }
 0x61d   : > { %v2846_v36 = vmul.f32 %v4029_v41, %v5591_v1  ;;  %4044 = vpow2.f32 %v2986_v21  ;;  %v2947_v24 = vand.u32 2147483647, %v5794_v19  ;;  %v5811_v15 = vadd.f32 %v5621_v40, %v2868_v34 }
 0x61e   : > { %v4031_v58 = vpop.eup %4030  ;;  %v2965_v11 = vsub.f32 0.0, %v2949_v39  ;;  %v3070_v3 = vmul.f32 %v5752_v9, %v3069_v51  ;;  %v3051_v48 = vadd.f32 1.0, %v3050_v17  ;;  %vm3072_vm13 = vcmp.lt.f32.partialorder %v3071_v27, 0.0004427343 }
 0x61f   : > { %v2866_v31 = vmul.f32 %v5616_v44, %v2846_v36  ;;  %v2849_v1 = vmul.f32 %v4031_v58, %v5607_v22  ;;  %v2963_v49 = vsub.f32 0.0, %v2947_v24  ;;  %v2952_v26 = vand.u32 2147483647, %v5811_v15 }
 0x620   : > { %v2992_v14 = vmul.f32 1.442695, %v2965_v11  ;;  %v3052_v60 = vmul.f32 %v5767_v10, %v3051_v48  ;;  %vm2916_vm1 = vcmp.ne.f32.partialorder %v5755_v43, %v5755_v43  ;;  %vm2914_vm3 = vcmp.ne.f32.partialorder %v5764_v5, %v5764_v5 }
 0x621   : > { %v4033_v37 = vpop.eup %4032  ;;  %v5817_v18 = vadd.f32 %v5621_v40, %v2866_v31  ;;  %v2869_v8 = vmul.f32 %v5616_v44, %v2849_v1  ;;  %v2988_v9 = vmul.f32 1.442695, %v2963_v49  ;;  %v2968_v30 = vsub.f32 0.0, %v2952_v26 }
 0x622   : > { %v4035_v45 = vpop.eup %4034  ;;  %v3058_v16 = vmul.f32 0.6931472, %v4033_v37  ;;  %4046 = vpow2.f32 %v2992_v14  ;;  %v2900_v49 = vmax.f32 %v5755_v43, 0.0  ;;  %vm2917_vm6 = vcmp.ne.f32.partialorder %v5787_v55, %v5787_v55 }
 0x623   : > { %v3040_v22 = vmul.f32 0.6931472, %v4035_v45  ;;  %4048 = vpow2.f32 %v2988_v9  ;;  %v5839_v42 = vadd.f32 %v5621_v40, %v2869_v8  ;;  %vm2915_vm7 = vcmp.ne.f32.partialorder %v5794_v19, %v5794_v19 }
 0x624   : > { %v4037_v59 = vpop.eup %4036  ;;  %v3064_v4 = vsel %vm5777_vm8, %v3061_v35, %v3058_v16 }
 0x625   : > { %v3152_v23 = vadd.f32 %v3064_v4, %v2896_v54  ;;  %v3046_v33 = vsel %vm5797_vm11, %v3043_v29, %v3040_v22  ;;  %v3067_v52 = vmul.f32 0.6931472, %v4037_v59  ;;  %v4039_v50 = vpop.eup %4038  ;;  %v3053_v54 = vand.u32 2147483647, %v5767_v10 }
 0x626   : > { %v3150_v2 = vadd.f32 %v3046_v33, %v2894_v0  ;;  %v2847_v13 = vmul.f32 %v4039_v50, %v5595_v56  ;;  %v2895_v10 = vmax.f32 %v5695_v38, 0.0  ;;  %v2953_v56 = vand.u32 2147483647, %v5839_v42 }
 0x627   : > { %v3168_v53 = vsel %vm2912_vm9, %v5664_v20, %v3152_v23  ;;  %v3073_v12 = vsel %vm3072_vm13, %v3070_v3, %v3067_v52  ;;  %v4041_v6 = vpop.eup %4040  ;;  %v2950_v20 = vand.u32 2147483647, %v5817_v18  ;;  %vm3054_vm14 = vcmp.lt.f32.partialorder %v3053_v54, 0.0004427343 }
 0x628   : > { %v3493_v25 = vadd.f32 -0.6931472, %v3168_v53  ;;  %v3166_v0 = vsel %vm2910_vm10, %v5668_v7, %v3150_v2  ;;  %v3153_v61 = vadd.f32 %v3073_v12, %v2897_v63  ;;  %v3049_v62 = vmul.f32 0.6931472, %v4041_v6 }
 0x629   : > { %v3491_v41 = vadd.f32 -0.6931472, %v3166_v0  ;;  %v4043_v57 = vpop.eup %4042  ;;  %v2998_v63 = vmul.f32 1.442695, %v2968_v30  ;;  %v2966_v51 = vsub.f32 0.0, %v2950_v20  ;;  %v2867_v21 = vmul.f32 %v5616_v44, %v2847_v13 }
 0x62a   : > { %3200 = vst [vmem:[%s5710_s22 + $0x30] sm:$0xff] %v3493_v25  ;;  %v3169_v7 = vsel %vm2913_vm12, %v5684_v32, %v3153_v61  ;;  %v3092_v58 = vadd.f32 1.0, %v4043_v57  ;;  %v3055_v46 = vsel %vm3054_vm14, %v3052_v60, %v3049_v62  ;;  %v4045_v17 = vpop.eup %4044  ;;  %v2969_v31 = vsub.f32 0.0, %v2953_v56 }
 0x62b   : > { %3198 = vst [vmem:[%s5710_s22 + $0x20] sm:$0xff] %v3491_v41  ;;  %v3494_v47 = vadd.f32 -0.6931472, %v3169_v7  ;;  %4050 = vpow2.f32 %v2998_v63  ;;  %v3151_v36 = vadd.f32 %v3055_v46, %v2895_v10  ;;  %v2994_v32 = vmul.f32 1.442695, %v2966_v51 }
 0x62c   : > { %4052 = vlog2.f32 %v3092_v58  ;;  %v3074_v28 = vadd.f32 1.0, %v4045_v17  ;;  %v5856_v1 = vadd.f32 %v5621_v40, %v2867_v21  ;;  %v3000_v37 = vmul.f32 1.442695, %v2969_v31 }
 0x62d   : > { %3201 = vst [vmem:[%s5710_s22 + $0x38] sm:$0xff] %v3494_v47  ;;  %v3167_v34 = vsel %vm2911_vm15, %v5695_v38, %v3151_v36  ;;  %4054 = vpow2.f32 %v2994_v32  ;;  %v3095_v27 = vmul.f32 -0.5, %v4043_v57  ;;  %v3077_v11 = vmul.f32 -0.5, %v4045_v17 }
 0x62e   : > { %v3492_v39 = vadd.f32 -0.6931472, %v3167_v34  ;;  %4056 = vlog2.f32 %v3074_v28  ;;  %v2951_v24 = vand.u32 2147483647, %v5856_v1  ;;  %v3098_v40 = vand.u32 2147483647, %v4043_v57 }
 0x62f   : > { %v4047_v35 = vpop.eup %4046  ;;  %4058 = vpow2.f32 %v3000_v37  ;;  %v3096_v29 = vadd.f32 1.0, %v3095_v27  ;;  %v3078_v8 = vadd.f32 1.0, %v3077_v11  ;;  %v3080_v33 = vand.u32 2147483647, %v4045_v17 }
 0x630   : > { %3199 = vst [vmem:[%s5710_s22 + $0x28] sm:$0xff] %v3492_v39  ;;  %v5860_v45 = vpop.eup %4048  ;;  %v3101_v16 = vadd.f32 1.0, %v4047_v35  ;;  %v2967_v38 = vsub.f32 0.0, %v2951_v24  ;;  %v3104_v23 = vmul.f32 -0.5, %v4047_v35  ;;  %vm3099_vm0 = vcmp.lt.f32.partialorder %v3098_v40, 0.0004427343 }
 0x631   : > { %v3083_v44 = vadd.f32 1.0, %v5860_v45  ;;  %v3097_v14 = vmul.f32 %v4043_v57, %v3096_v29  ;;  %v3086_v52 = vmul.f32 -0.5, %v5860_v45  ;;  %v2898_v53 = vmax.f32 %v5764_v5, 0.0 }
 0x632   : > { %4060 = vlog2.f32 %v3101_v16  ;;  %v2996_v22 = vmul.f32 1.442695, %v2967_v38  ;;  %v3079_v25 = vmul.f32 %v4045_v17, %v3078_v8  ;;  %v3105_v0 = vadd.f32 1.0, %v3104_v23 }
 0x633   : > { %4062 = vlog2.f32 %v3083_v44  ;;  %v3107_v61 = vand.u32 2147483647, %v4047_v35  ;;  %vm3081_vm2 = vcmp.lt.f32.partialorder %v3080_v33, 0.0004427343  ;;  %v3087_v6 = vadd.f32 1.0, %v3086_v52 }
 0x634   : > { %4064 = vpow2.f32 %v2996_v22  ;;  %v3089_v62 = vand.u32 2147483647, %v5860_v45  ;;  %v3106_v47 = vmul.f32 %v4047_v35, %v3105_v0  ;;  %v2899_v28 = vmax.f32 %v5794_v19, 0.0 }
 0x635   : > { %vm3108_vm4 = vcmp.lt.f32.partialorder %v3107_v61, 0.0004427343  ;;  %v3088_v51 = vmul.f32 %v5860_v45, %v3087_v6  ;;  %v2904_v27 = vmax.f32 %v5811_v15, 0.0  ;;  %vm2920_vm9 = vcmp.ne.f32.partialorder %v5811_v15, %v5811_v15 }
 0x636   : > { %vm3090_vm5 = vcmp.lt.f32.partialorder %v3089_v62, 0.0004427343  ;;  %vm2918_vm11 = vcmp.ne.f32.partialorder %v5817_v18, %v5817_v18  ;;  %vm2921_vm13 = vcmp.ne.f32.partialorder %v5839_v42, %v5839_v42  ;;  %vm2919_vm15 = vcmp.ne.f32.partialorder %v5856_v1, %v5856_v1 }
 0x638   : > { %v5863_v3 = vpop.eup %4050 }
 0x639   : > { %v4053_v48 = vpop.eup %4052  ;;  %v3128_v59 = vadd.f32 1.0, %v5863_v3  ;;  %v3131_v57 = vmul.f32 -0.5, %v5863_v3 }
 0x63a   : > { %v3094_v4 = vmul.f32 0.6931472, %v4053_v48  ;;  %v5868_v9 = vpop.eup %4054 }
 0x63b   : > { %4066 = vlog2.f32 %v3128_v59  ;;  %v4057_v26 = vpop.eup %4056  ;;  %v3110_v12 = vadd.f32 1.0, %v5868_v9  ;;  %v3132_v32 = vadd.f32 1.0, %v3131_v57  ;;  %v3113_v56 = vmul.f32 -0.5, %v5868_v9 }
 0x63c   : > { %v3100_v2 = vsel %vm3099_vm0, %v3097_v14, %v3094_v4  ;;  %v3076_v54 = vmul.f32 0.6931472, %v4057_v26  ;;  %v5875_v41 = vpop.eup %4058  ;;  %v3116_v48 = vand.u32 2147483647, %v5868_v9  ;;  %v2903_v57 = vmax.f32 %v5856_v1, 0.0 }
 0x63d   : > { %v3156_v50 = vadd.f32 %v3100_v2, %v2900_v49  ;;  %4068 = vlog2.f32 %v3110_v12  ;;  %v3137_v63 = vadd.f32 1.0, %v5875_v41  ;;  %v3133_v16 = vmul.f32 %v5863_v3, %v3132_v32 }
 0x63e   : > { %v3082_v20 = vsel %vm3081_vm2, %v3079_v25, %v3076_v54  ;;  %v3114_v44 = vadd.f32 1.0, %v3113_v56  ;;  %v3140_v22 = vmul.f32 -0.5, %v5875_v41  ;;  %vm3117_vm10 = vcmp.lt.f32.partialorder %v3116_v48, 0.0004427343 }
 0x63f   : > { %v3172_v30 = vsel %vm2916_vm1, %v5755_v43, %v3156_v50  ;;  %v3154_v7 = vadd.f32 %v3082_v20, %v2898_v53  ;;  %v4061_v13 = vpop.eup %4060  ;;  %v2901_v43 = vmax.f32 %v5787_v55, 0.0  ;;  %4070 = vlog2.f32 %v3137_v63 }
 0x640   : > { %v3497_v60 = vadd.f32 -0.6931472, %v3172_v30  ;;  %v4063_v10 = vpop.eup %4062  ;;  %v3103_v46 = vmul.f32 0.6931472, %v4061_v13  ;;  %v3141_v14 = vadd.f32 1.0, %v3140_v22 }
 0x641   : > { %v3170_v58 = vsel %vm2914_vm3, %v5764_v5, %v3154_v7  ;;  %v3085_v17 = vmul.f32 0.6931472, %v4063_v10  ;;  %v5887_v21 = vpop.eup %4064  ;;  %v3134_v5 = vand.u32 2147483647, %v5863_v3  ;;  %v2902_v3 = vmax.f32 %v5817_v18, 0.0 }
 0x642   : > { %3204 = vst [vmem:[%s5710_s22 + $0x50] sm:$0xff] %v3497_v60  ;;  %v3495_v36 = vadd.f32 -0.6931472, %v3170_v58  ;;  %v3109_v34 = vsel %vm3108_vm4, %v3106_v47, %v3103_v46  ;;  %v3119_v37 = vadd.f32 1.0, %v5887_v21  ;;  %v3143_v23 = vand.u32 2147483647, %v5875_v41 }
 0x643   : > { %v3157_v39 = vadd.f32 %v3109_v34, %v2901_v43  ;;  %v3091_v31 = vsel %vm3090_vm5, %v3088_v51, %v3085_v17  ;;  %vm3135_vm8 = vcmp.lt.f32.partialorder %v3134_v5, 0.0004427343  ;;  %v3122_v33 = vmul.f32 -0.5, %v5887_v21 }
 0x644   : > { %3202 = vst [vmem:[%s5710_s22 + $0x40] sm:$0xff] %v3495_v36  ;;  %v3155_v35 = vadd.f32 %v3091_v31, %v2899_v28  ;;  %4072 = vlog2.f32 %v3119_v37  ;;  %vm3144_vm12 = vcmp.lt.f32.partialorder %v3143_v23, 0.0004427343  ;;  %v3125_v61 = vand.u32 2147483647, %v5887_v21 }
 0x645   : > { %v3173_v45 = vsel %vm2917_vm6, %v5787_v55, %v3157_v39  ;;  %v3123_v54 = vadd.f32 1.0, %v3122_v33 }
 0x646   : > { %v3498_v38 = vadd.f32 -0.6931472, %v3173_v45  ;;  %v3171_v29 = vsel %vm2915_vm7, %v5794_v19, %v3155_v35  ;;  %v3115_v19 = vmul.f32 %v5868_v9, %v3114_v44  ;;  %v3142_v9 = vmul.f32 %v5875_v41, %v3141_v14 }
 0x647   : > { %v3496_v40 = vadd.f32 -0.6931472, %v3171_v29  ;;  %vm3126_vm14 = vcmp.lt.f32.partialorder %v3125_v61, 0.0004427343 }
 0x648   : > { %v4067_v24 = vpop.eup %4066  ;;  %3205 = vst [vmem:[%s5710_s22 + $0x58] sm:$0xff] %v3498_v38 }
 0x649   : > { %v3130_v11 = vmul.f32 0.6931472, %v4067_v24  ;;  %3203 = vst [vmem:[%s5710_s22 + $0x48] sm:$0xff] %v3496_v40 }
 0x64a   : > { %v4069_v59 = vpop.eup %4068 }
 0x64b   : > { %v3136_v49 = vsel %vm3135_vm8, %v3133_v16, %v3130_v11  ;;  %v3112_v4 = vmul.f32 0.6931472, %v4069_v59 }
 0x64c   : > { %v3160_v55 = vadd.f32 %v3136_v49, %v2904_v27  ;;  %v4071_v26 = vpop.eup %4070 }
 0x64d   : > { %v3118_v2 = vsel %vm3117_vm10, %v3115_v19, %v3112_v4  ;;  %v3139_v53 = vmul.f32 0.6931472, %v4071_v26 }
 0x64e   : > { %v3176_v8 = vsel %vm2920_vm9, %v5811_v15, %v3160_v55  ;;  %v3158_v50 = vadd.f32 %v3118_v2, %v2902_v3  ;;  %v2905_v15 = vmax.f32 %v5839_v42, 0.0 }
 0x64f   : > { %v3501_v52 = vadd.f32 -0.6931472, %v3176_v8  ;;  %v3145_v0 = vsel %vm3144_vm12, %v3142_v9, %v3139_v53 }
 0x650   : > { %v3174_v12 = vsel %vm2918_vm11, %v5817_v18, %v3158_v50  ;;  %v3161_v30 = vadd.f32 %v3145_v0, %v2905_v15  ;;  %v3124_v18 = vmul.f32 %v5887_v21, %v3123_v54 }
 0x651   : > { %3208 = vst [vmem:[%s5710_s22 + $0x70] sm:$0xff] %v3501_v52  ;;  %v3499_v25 = vadd.f32 -0.6931472, %v3174_v12  ;;  %v4073_v6 = vpop.eup %4072 }
 0x652   : > { %v3177_v41 = vsel %vm2921_vm13, %v5839_v42, %v3161_v30  ;;  %v3121_v60 = vmul.f32 0.6931472, %v4073_v6 }
 0x653   : > { %3206 = vst [vmem:[%s5710_s22 + $0x60] sm:$0xff] %v3499_v25  ;;  %v3502_v20 = vadd.f32 -0.6931472, %v3177_v41 }
 0x654   : > { %v3127_v7 = vsel %vm3126_vm14, %v3124_v18, %v3121_v60 }
 0x655   : > { %3209 = vst [vmem:[%s5710_s22 + $0x78] sm:$0xff] %v3502_v20  ;;  %v3159_v62 = vadd.f32 %v3127_v7, %v2903_v57 }
 0x657   : > { %v3175_v63 = vsel %vm2919_vm15, %v5856_v1, %v3159_v62 }
 0x658   : > { %v3500_v13 = vadd.f32 -0.6931472, %v3175_v63 }
 0x65a   : > { %3207 = vst [vmem:[%s5710_s22 + $0x68] sm:$0xff] %v3500_v13 }
 0x65b PF: > { %s16_s21 = sadd.s32 1, %s4089_s21  }
 0x65c   : > { %p13_p4 = scmp.ge.s32.totalorder %s16_s21, 4  }
 0x65e   :  { %15 = sbr.rel (!%p13_p4) target bundleno = 1 (0x1), region = 84 }

</bundles_post_ra>
